<compile_context>
chip_gen: v7x
topology: tpu7x:2x2x1
jax: 0.10.0
libtpu: 0.0.40
codegen_flags: <defaults>
</compile_context>

<pallas_src>
import functools

import jax
import jax.numpy as jnp
from jax import lax
from jax.experimental import pallas as pl
from jax.experimental.pallas import tpu as pltpu

DILATIONS = (3, 6, 9)


def _multi_atrous_kernel(x_ref, wc_ref, wo_ref, bd_ref, bg_ref, o_ref, acc_ref,
                         *, d_list, Wp, Cb, Lv, base, inv_hw):
    """Grid = (batch, Cin-chunk).  Shapes seen by the kernel:

    x_ref  : (1, Ck, Lpad)    zero-padded image chunk, spatially flattened with
                              padded row stride Wp.
    wc_ref : (4*Cb, Ck)       stacked center-tap weights: 3 dilated-center taps
                              followed by the GAP 1x1 conv weight.
    wo_ref : (3, 8, Cb, Ck)   the 8 non-center taps of each dilated conv.
    bd_ref : (3, Cb, 1)       dilated-conv biases (f32).
    bg_ref : (Cb, 1)          GAP-branch bias (f32).
    o_ref  : (1, 4*Cb, Lv)    channels-first, lane-dense output window.
    acc_ref: (4*Cb, Lv) f32   VMEM accumulator resident across the Cin axis.
    """
    k = pl.program_id(1)

    @pl.when(k == 0)
    def _init():
        acc_ref[...] = jnp.zeros_like(acc_ref)

    # Shared center tap (ky = kx = 1): one stacked matmul feeds all three
    # dilated branches and the GAP projection (rows 3*Cb:4*Cb of wc).
    xc = x_ref[0, :, base:base + Lv]                          # (Ck, Lv)
    c_all = jnp.dot(wc_ref[...], xc,
                    preferred_element_type=jnp.float32)        # (4*Cb, Lv) f32

    # The 8 non-center taps of each dilated 3x3 conv.  padding == dilation, so
    # every tap is a plain contiguous lane window of the padded flat image.
    for bi, d in enumerate(d_list):
        acc = c_all[bi * Cb:(bi + 1) * Cb, :]
        ti = 0
        for ky in range(3):
            for kx in range(3):
                if ky == 1 and kx == 1:
                    continue
                s = base + (ky - 1) * d * Wp + (kx - 1) * d
                win = x_ref[0, :, s:s + Lv]                   # (Ck, Lv)
                acc = acc + jnp.dot(wo_ref[bi, ti], win,
                                    preferred_element_type=jnp.float32)
                ti += 1
        acc_ref[bi * Cb:(bi + 1) * Cb, :] += acc
    acc_ref[3 * Cb:4 * Cb, :] += c_all[3 * Cb:4 * Cb, :]

    @pl.when(k == pl.num_programs(1) - 1)
    def _finalize():
        # dilated branches: add bias in-place in the f32 accumulator
        for bi in range(3):
            acc_ref[bi * Cb:(bi + 1) * Cb, :] += bd_ref[bi]
        # GAP branch: every pad lane of the window is zero, so the full
        # lane-sum / (H*W) is the exact AdaptiveAvgPool2d(1) -> 1x1 conv; the
        # bilinear upsample of a 1x1 map is a constant broadcast.
        gap = jnp.sum(acc_ref[3 * Cb:4 * Cb, :], axis=1, keepdims=True) * inv_hw
        g = jnp.maximum(gap + bg_ref[...], 0.0)               # (Cb, 1)
        acc_ref[3 * Cb:4 * Cb, :] = jnp.broadcast_to(g, (Cb, Lv))
        # one full, lane-dense, unmasked store of the whole output block
        o_ref[0] = acc_ref[...].astype(o_ref.dtype)


def _vmem_limit_bytes():
    """75% of this chip's VMEM (headroom for pipeline buffers), <= 96 MiB."""
    try:
        cap = pltpu.get_tpu_info().vmem_capacity_bytes
    except Exception:
        cap = 64 * 1024 * 1024
    return int(min(cap * 3 // 4, 96 * 1024 * 1024))


def multi_atrous(x_nchw, w_dil, b_dil, w_gap, b_gap, size,
                 compute_dtype=jnp.bfloat16):
    """x_nchw: (N, Cin, H, W); w_dil: (3, Cb, Cin, 3, 3) OIHW; b_dil: (3, Cb);
    w_gap: (Cb, Cin); b_gap: (Cb,).  Returns (N, 4*Cb, H, W) like PyTorch."""
    N, Cin, H, W = x_nchw.shape
    assert H == size and W == size, "gap branch upsample size must match H, W"
    Cb = w_dil.shape[1]
    Cout = 4 * Cb
    p = max(DILATIONS)
    Wp = W + 2 * p
    base = p * Wp + p                       # flat index of output pixel (0, 0)
    Lv = ((H * Wp + 127) // 128) * 128      # lane-dense working spatial length

    # One padded materialization covering every tap window and the lane tail:
    # total flat length must reach base + p*Wp + p + Lv = 2*base + Lv.
    need = 2 * base + Lv
    rows_total = -(-need // Wp)             # ceil division
    Lpad = rows_total * Wp
    pad_bot = rows_total - H - p
    # Safety (review): tap windows stay in bounds and the whole lane tail of
    # the output window lies in zero pad, which also makes the GAP sum exact.
    assert Lpad >= 2 * base + Lv
    assert pad_bot >= p

    # Cin-reduction chunk size (second grid axis).  Keeps per-step blocks
    # within v7x's 64 MiB VMEM at production widths; chunk stays (8,128)-legal.
    ck = Cin
    for cand in (512, 384, 256, 128):
        if Cin > cand and Cin % cand == 0:
            ck = cand
            break
    nk = Cin // ck

    # --- glue (plain XLA): cast, single pad, free contiguous reshape ---------
    xc = x_nchw.astype(compute_dtype)
    x_pad = jnp.pad(xc, ((0, 0), (0, 0), (p, pad_bot), (p, p)))
    x_flat = x_pad.reshape(N, Cin, Lpad)

    # weights: (branch, O, I, ky, kx) -> per-tap (O, I) matrices
    wd = jnp.transpose(w_dil, (0, 3, 4, 1, 2)).reshape(3, 9, Cb, Cin)
    # stacked center-tap weight: 3 dilated center taps + the GAP 1x1 conv
    wc_w = jnp.concatenate([wd[0, 4], wd[1, 4], wd[2, 4], w_gap],
                           axis=0).astype(compute_dtype)          # (4*Cb, Cin)
    keep = jnp.array([0, 1, 2, 3, 5, 6, 7, 8], dtype=jnp.int32)
    wo_w = wd[:, keep].astype(compute_dtype)                      # (3, 8, Cb, Cin)
    bd = b_dil.reshape(3, Cb, 1).astype(jnp.float32)
    bg = b_gap.reshape(Cb, 1).astype(jnp.float32)

    kernel = functools.partial(_multi_atrous_kernel, d_list=DILATIONS, Wp=Wp,
                               Cb=Cb, Lv=Lv, base=base, inv_hw=1.0 / (H * W))

    weights_const = nk == 1   # weight index maps constant across the grid

    def _run(single_buffer):
        def const_spec(shape, idx):
            if single_buffer:
                return pl.BlockSpec(shape, idx, pipeline_mode=pl.Buffered(1))
            return pl.BlockSpec(shape, idx)

        def weight_spec(shape, idx):
            if single_buffer and weights_const:
                return pl.BlockSpec(shape, idx, pipeline_mode=pl.Buffered(1))
            return pl.BlockSpec(shape, idx)

        # TODO(synk): for batch-1 inference on v7x add a parallel spatial-tile
        # grid axis so both TensorCores are used (also shrinks blocks further).
        return pl.pallas_call(
            kernel,
            out_shape=jax.ShapeDtypeStruct((N, Cout, Lv), x_nchw.dtype),
            grid_spec=pltpu.PrefetchScalarGridSpec(
                num_scalar_prefetch=0,
                grid=(N, nk),
                in_specs=[
                    pl.BlockSpec((1, ck, Lpad), lambda n, k: (n, k, 0)),
                    weight_spec((Cout, ck), lambda n, k: (0, k)),
                    weight_spec((3, 8, Cb, ck), lambda n, k: (0, 0, 0, k)),
                    const_spec((3, Cb, 1), lambda n, k: (0, 0, 0)),
                    const_spec((Cb, 1), lambda n, k: (0, 0)),
                ],
                out_specs=pl.BlockSpec((1, Cout, Lv), lambda n, k: (n, 0, 0)),
                scratch_shapes=[pltpu.VMEM((Cout, Lv), jnp.float32)],
            ),
            compiler_params=pltpu.CompilerParams(
                dimension_semantics=("parallel", "arbitrary"),
                vmem_limit_bytes=_vmem_limit_bytes(),
            ),
        )(x_flat, wc_w, wo_w, bd, bg)

    try:
        out_flat = _run(True)
    except Exception:
        # pipeline_mode=pl.Buffered(1) unsupported on this build: default specs
        out_flat = _run(False)

    # valid output pixel (h, w) lives at flat position h*Wp + w
    # TODO(synk): for mem-bound shapes fold this un-pad into the consumer
    # kernel instead of a separate HBM round trip.
    out = out_flat[:, :, :H * Wp].reshape(N, Cout, H, Wp)[:, :, :, :W]
    return out  # already NCHW, matching PyTorch


def multi_atrous_reference(x, w_dil, b_dil, w_gap, b_gap, size):
    """Pure-JAX (XLA) reference matching the PyTorch module semantics."""
    outs = []
    for i, d in enumerate(DILATIONS):
        o = lax.conv_general_dilated(
            x, w_dil[i], window_strides=(1, 1),
            padding=((d, d), (d, d)), rhs_dilation=(d, d),
            dimension_numbers=("NCHW", "OIHW", "NCHW"))
        outs.append(o + b_dil[i][None, :, None, None])
    gap = jnp.mean(x, axis=(2, 3))                     # (N, Cin)
    g = jnp.maximum(gap @ w_gap.T + b_gap, 0.0)        # (N, Cb)
    outs.append(jnp.broadcast_to(g[:, :, None, None],
                                 (x.shape[0], g.shape[1], size, size)))
    return jnp.concatenate(outs, axis=1)


if __name__ == "__main__":
    # small, module-consistent shapes
    N, Cin, size = 2, 4, 16
    out_channel = 16
    Cb = out_channel // 4

    key = jax.random.PRNGKey(0)
    k_x, k_w, k_b, k_wg, k_bg = jax.random.split(key, 5)

    x = jax.random.normal(k_x, (N, Cin, size, size), dtype=jnp.float32)
    # deterministic synthetic parameters (Conv2d shapes from __init__)
    w_dil = 0.1 * jax.random.normal(k_w, (3, Cb, Cin, 3, 3), dtype=jnp.float32)
    b_dil = 0.1 * jax.random.normal(k_b, (3, Cb), dtype=jnp.float32)
    w_gap = 0.1 * jax.random.normal(k_wg, (Cb, Cin), dtype=jnp.float32)
    b_gap = 0.1 * jax.random.normal(k_bg, (Cb,), dtype=jnp.float32)

    ref = jax.block_until_ready(
        multi_atrous_reference(x, w_dil, b_dil, w_gap, b_gap, size))

    # f32 compute path: tight check against the XLA reference
    out_f32 = jax.block_until_ready(
        multi_atrous(x, w_dil, b_dil, w_gap, b_gap, size,
                     compute_dtype=jnp.float32))
    assert out_f32.shape == (N, out_channel, size, size), out_f32.shape
    assert jnp.allclose(out_f32, ref, rtol=1e-4, atol=1e-4), float(
        jnp.max(jnp.abs(out_f32 - ref)))

    # bf16 compute path (production default, f32 accumulation): looser check
    out_bf16 = jax.block_until_ready(
        multi_atrous(x, w_dil, b_dil, w_gap, b_gap, size))
    assert out_bf16.shape == (N, out_channel, size, size), out_bf16.shape
    assert jnp.allclose(out_bf16, ref, rtol=3e-2, atol=3e-2), float(
        jnp.max(jnp.abs(out_bf16 - ref)))

    print("KERNEL_OK")
</pallas_src>

<mosaic_0001>
module attributes {stable_mosaic.version = 11 : i64} {
  func.func @_multi_atrous_kernel(%arg0: i32, %arg1: i32, %arg2: memref<1x4x1292xf32, #tpu.memory_space<vmem>>, %arg3: memref<16x4xf32, #tpu.memory_space<vmem>>, %arg4: memref<3x8x4x4xf32, #tpu.memory_space<vmem>>, %arg5: memref<3x4x1xf32, #tpu.memory_space<vmem>>, %arg6: memref<4x1xf32, #tpu.memory_space<vmem>>, %arg7: memref<1x16x640xf32, #tpu.memory_space<vmem>>, %arg8: memref<16x640xf32, #tpu.memory_space<vmem>>) attributes {dimension_semantics = [#tpu.dimension_semantics<parallel>, #tpu.dimension_semantics<arbitrary>], iteration_bounds = array<i64: 2, 1>, scalar_prefetch = 0 : i64, scratch_operands = 1 : i64, tpu.core_type = #tpu.core_type<tc>, window_params = [{transform_indices = @transform_0, window_bounds = array<i64: 1, 4, 1292>}, {pipeline_mode = #tpu.pipeline_mode<synchronous>, transform_indices = @transform_1, window_bounds = array<i64: 16, 4>}, {pipeline_mode = #tpu.pipeline_mode<synchronous>, transform_indices = @transform_2, window_bounds = array<i64: 3, 8, 4, 4>}, {pipeline_mode = #tpu.pipeline_mode<synchronous>, transform_indices = @transform_3, window_bounds = array<i64: 3, 4, 1>}, {pipeline_mode = #tpu.pipeline_mode<synchronous>, transform_indices = @transform_4, window_bounds = array<i64: 4, 1>}, {transform_indices = @transform_5, window_bounds = array<i64: 1, 16, 640>}]} {
    %c0_i32 = arith.constant 0 : i32
    %0 = arith.cmpi eq, %arg1, %c0_i32 : i32
    %1 = arith.extui %0 : i1 to i32
    %c0_i32_0 = arith.constant 0 : i32
    %2 = arith.cmpi ne, %1, %c0_i32_0 : i32
    scf.if %2 {
      %cst_182 = arith.constant 0.000000e+00 : f32
      %170 = vector.broadcast %cst_182 : f32 to vector<16x640xf32>
      %c0_183 = arith.constant 0 : index
      %c0_184 = arith.constant 0 : index
      %171 = vector.load %arg8[%c0_183, %c0_184] : memref<16x640xf32, #tpu.memory_space<vmem>>, vector<16x640xf32>
      tpu.vector_store %arg8[%c0_183, %c0_184], %170 {strides = array<i32>} : memref<16x640xf32, #tpu.memory_space<vmem>>, vector<16x640xf32>,
    } else {
    }
    %c0 = arith.constant 0 : index
    %c0_1 = arith.constant 0 : index
    %c315 = arith.constant 315 : index
    %3 = vector.load %arg2[%c0, %c0_1, %c315] : memref<1x4x1292xf32, #tpu.memory_space<vmem>>, vector<1x4x640xf32>
    %4 = vector.shape_cast %3 : vector<1x4x640xf32> to vector<4x640xf32>
    %c0_2 = arith.constant 0 : index
    %c0_3 = arith.constant 0 : index
    %5 = vector.load %arg3[%c0_2, %c0_3] : memref<16x4xf32, #tpu.memory_space<vmem>>, vector<16x4xf32>
    %cst = arith.constant dense<0.000000e+00> : vector<16x640xf32>
    %6 = tpu.matmul %5, %4, %cst {dimension_numbers = #tpu.dot_dimension_numbers<[1], [0], [0], [1], [0, 0, 1, 1], [], []>} : vector<16x4xf32>, vector<4x640xf32>, vector<16x640xf32> -> vector<16x640xf32>
    %7 = vector.extract_strided_slice %6 {offsets = [0, 0], sizes = [4, 640], strides = [1, 1]} : vector<16x640xf32> to vector<4x640xf32>
    %c0_4 = arith.constant 0 : index
    %c0_5 = arith.constant 0 : index
    %c210 = arith.constant 210 : index
    %8 = vector.load %arg2[%c0_4, %c0_5, %c210] : memref<1x4x1292xf32, #tpu.memory_space<vmem>>, vector<1x4x640xf32>
    %9 = vector.shape_cast %8 : vector<1x4x640xf32> to vector<4x640xf32>
    %c0_6 = arith.constant 0 : index
    %c0_7 = arith.constant 0 : index
    %c0_8 = arith.constant 0 : index
    %c0_9 = arith.constant 0 : index
    %10 = vector.load %arg4[%c0_6, %c0_7, %c0_8, %c0_9] : memref<3x8x4x4xf32, #tpu.memory_space<vmem>>, vector<1x1x4x4xf32>
    %11 = vector.shape_cast %10 : vector<1x1x4x4xf32> to vector<4x4xf32>
    %cst_10 = arith.constant dense<0.000000e+00> : vector<4x640xf32>
    %12 = tpu.matmul %11, %9, %cst_10 {dimension_numbers = #tpu.dot_dimension_numbers<[1], [0], [0], [1], [0, 0, 1, 1], [], []>} : vector<4x4xf32>, vector<4x640xf32>, vector<4x640xf32> -> vector<4x640xf32>
    %13 = arith.addf %7, %12 : vector<4x640xf32>
    %c0_11 = arith.constant 0 : index
    %c0_12 = arith.constant 0 : index
    %c213 = arith.constant 213 : index
    %14 = vector.load %arg2[%c0_11, %c0_12, %c213] : memref<1x4x1292xf32, #tpu.memory_space<vmem>>, vector<1x4x640xf32>
    %15 = vector.shape_cast %14 : vector<1x4x640xf32> to vector<4x640xf32>
    %c0_13 = arith.constant 0 : index
    %c1 = arith.constant 1 : index
    %c0_14 = arith.constant 0 : index
    %c0_15 = arith.constant 0 : index
    %16 = vector.load %arg4[%c0_13, %c1, %c0_14, %c0_15] : memref<3x8x4x4xf32, #tpu.memory_space<vmem>>, vector<1x1x4x4xf32>
    %17 = vector.shape_cast %16 : vector<1x1x4x4xf32> to vector<4x4xf32>
    %cst_16 = arith.constant dense<0.000000e+00> : vector<4x640xf32>
    %18 = tpu.matmul %17, %15, %cst_16 {dimension_numbers = #tpu.dot_dimension_numbers<[1], [0], [0], [1], [0, 0, 1, 1], [], []>} : vector<4x4xf32>, vector<4x640xf32>, vector<4x640xf32> -> vector<4x640xf32>
    %19 = arith.addf %13, %18 : vector<4x640xf32>
    %c0_17 = arith.constant 0 : index
    %c0_18 = arith.constant 0 : index
    %c216 = arith.constant 216 : index
    %20 = vector.load %arg2[%c0_17, %c0_18, %c216] : memref<1x4x1292xf32, #tpu.memory_space<vmem>>, vector<1x4x640xf32>
    %21 = vector.shape_cast %20 : vector<1x4x640xf32> to vector<4x640xf32>
    %c0_19 = arith.constant 0 : index
    %c2 = arith.constant 2 : index
    %c0_20 = arith.constant 0 : index
    %c0_21 = arith.constant 0 : index
    %22 = vector.load %arg4[%c0_19, %c2, %c0_20, %c0_21] : memref<3x8x4x4xf32, #tpu.memory_space<vmem>>, vector<1x1x4x4xf32>
    %23 = vector.shape_cast %22 : vector<1x1x4x4xf32> to vector<4x4xf32>
    %cst_22 = arith.constant dense<0.000000e+00> : vector<4x640xf32>
    %24 = tpu.matmul %23, %21, %cst_22 {dimension_numbers = #tpu.dot_dimension_numbers<[1], [0], [0], [1], [0, 0, 1, 1], [], []>} : vector<4x4xf32>, vector<4x640xf32>, vector<4x640xf32> -> vector<4x640xf32>
    %25 = arith.addf %19, %24 : vector<4x640xf32>
    %c0_23 = arith.constant 0 : index
    %c0_24 = arith.constant 0 : index
    %c312 = arith.constant 312 : index
    %26 = vector.load %arg2[%c0_23, %c0_24, %c312] : memref<1x4x1292xf32, #tpu.memory_space<vmem>>, vector<1x4x640xf32>
    %27 = vector.shape_cast %26 : vector<1x4x640xf32> to vector<4x640xf32>
    %c0_25 = arith.constant 0 : index
    %c3 = arith.constant 3 : index
    %c0_26 = arith.constant 0 : index
    %c0_27 = arith.constant 0 : index
    %28 = vector.load %arg4[%c0_25, %c3, %c0_26, %c0_27] : memref<3x8x4x4xf32, #tpu.memory_space<vmem>>, vector<1x1x4x4xf32>
    %29 = vector.shape_cast %28 : vector<1x1x4x4xf32> to vector<4x4xf32>
    %cst_28 = arith.constant dense<0.000000e+00> : vector<4x640xf32>
    %30 = tpu.matmul %29, %27, %cst_28 {dimension_numbers = #tpu.dot_dimension_numbers<[1], [0], [0], [1], [0, 0, 1, 1], [], []>} : vector<4x4xf32>, vector<4x640xf32>, vector<4x640xf32> -> vector<4x640xf32>
    %31 = arith.addf %25, %30 : vector<4x640xf32>
    %c0_29 = arith.constant 0 : index
    %c0_30 = arith.constant 0 : index
    %c318 = arith.constant 318 : index
    %32 = vector.load %arg2[%c0_29, %c0_30, %c318] : memref<1x4x1292xf32, #tpu.memory_space<vmem>>, vector<1x4x640xf32>
    %33 = vector.shape_cast %32 : vector<1x4x640xf32> to vector<4x640xf32>
    %c0_31 = arith.constant 0 : index
    %c4 = arith.constant 4 : index
    %c0_32 = arith.constant 0 : index
    %c0_33 = arith.constant 0 : index
    %34 = vector.load %arg4[%c0_31, %c4, %c0_32, %c0_33] : memref<3x8x4x4xf32, #tpu.memory_space<vmem>>, vector<1x1x4x4xf32>
    %35 = vector.shape_cast %34 : vector<1x1x4x4xf32> to vector<4x4xf32>
    %cst_34 = arith.constant dense<0.000000e+00> : vector<4x640xf32>
    %36 = tpu.matmul %35, %33, %cst_34 {dimension_numbers = #tpu.dot_dimension_numbers<[1], [0], [0], [1], [0, 0, 1, 1], [], []>} : vector<4x4xf32>, vector<4x640xf32>, vector<4x640xf32> -> vector<4x640xf32>
    %37 = arith.addf %31, %36 : vector<4x640xf32>
    %c0_35 = arith.constant 0 : index
    %c0_36 = arith.constant 0 : index
    %c414 = arith.constant 414 : index
    %38 = vector.load %arg2[%c0_35, %c0_36, %c414] : memref<1x4x1292xf32, #tpu.memory_space<vmem>>, vector<1x4x640xf32>
    %39 = vector.shape_cast %38 : vector<1x4x640xf32> to vector<4x640xf32>
    %c0_37 = arith.constant 0 : index
    %c5 = arith.constant 5 : index
    %c0_38 = arith.constant 0 : index
    %c0_39 = arith.constant 0 : index
    %40 = vector.load %arg4[%c0_37, %c5, %c0_38, %c0_39] : memref<3x8x4x4xf32, #tpu.memory_space<vmem>>, vector<1x1x4x4xf32>
    %41 = vector.shape_cast %40 : vector<1x1x4x4xf32> to vector<4x4xf32>
    %cst_40 = arith.constant dense<0.000000e+00> : vector<4x640xf32>
    %42 = tpu.matmul %41, %39, %cst_40 {dimension_numbers = #tpu.dot_dimension_numbers<[1], [0], [0], [1], [0, 0, 1, 1], [], []>} : vector<4x4xf32>, vector<4x640xf32>, vector<4x640xf32> -> vector<4x640xf32>
    %43 = arith.addf %37, %42 : vector<4x640xf32>
    %c0_41 = arith.constant 0 : index
    %c0_42 = arith.constant 0 : index
    %c417 = arith.constant 417 : index
    %44 = vector.load %arg2[%c0_41, %c0_42, %c417] : memref<1x4x1292xf32, #tpu.memory_space<vmem>>, vector<1x4x640xf32>
    %45 = vector.shape_cast %44 : vector<1x4x640xf32> to vector<4x640xf32>
    %c0_43 = arith.constant 0 : index
    %c6 = arith.constant 6 : index
    %c0_44 = arith.constant 0 : index
    %c0_45 = arith.constant 0 : index
    %46 = vector.load %arg4[%c0_43, %c6, %c0_44, %c0_45] : memref<3x8x4x4xf32, #tpu.memory_space<vmem>>, vector<1x1x4x4xf32>
    %47 = vector.shape_cast %46 : vector<1x1x4x4xf32> to vector<4x4xf32>
    %cst_46 = arith.constant dense<0.000000e+00> : vector<4x640xf32>
    %48 = tpu.matmul %47, %45, %cst_46 {dimension_numbers = #tpu.dot_dimension_numbers<[1], [0], [0], [1], [0, 0, 1, 1], [], []>} : vector<4x4xf32>, vector<4x640xf32>, vector<4x640xf32> -> vector<4x640xf32>
    %49 = arith.addf %43, %48 : vector<4x640xf32>
    %c0_47 = arith.constant 0 : index
    %c0_48 = arith.constant 0 : index
    %c420 = arith.constant 420 : index
    %50 = vector.load %arg2[%c0_47, %c0_48, %c420] : memref<1x4x1292xf32, #tpu.memory_space<vmem>>, vector<1x4x640xf32>
    %51 = vector.shape_cast %50 : vector<1x4x640xf32> to vector<4x640xf32>
    %c0_49 = arith.constant 0 : index
    %c7 = arith.constant 7 : index
    %c0_50 = arith.constant 0 : index
    %c0_51 = arith.constant 0 : index
    %52 = vector.load %arg4[%c0_49, %c7, %c0_50, %c0_51] : memref<3x8x4x4xf32, #tpu.memory_space<vmem>>, vector<1x1x4x4xf32>
    %53 = vector.shape_cast %52 : vector<1x1x4x4xf32> to vector<4x4xf32>
    %cst_52 = arith.constant dense<0.000000e+00> : vector<4x640xf32>
    %54 = tpu.matmul %53, %51, %cst_52 {dimension_numbers = #tpu.dot_dimension_numbers<[1], [0], [0], [1], [0, 0, 1, 1], [], []>} : vector<4x4xf32>, vector<4x640xf32>, vector<4x640xf32> -> vector<4x640xf32>
    %55 = arith.addf %49, %54 : vector<4x640xf32>
    %c0_53 = arith.constant 0 : index
    %c0_54 = arith.constant 0 : index
    %56 = vector.load %arg8[%c0_53, %c0_54] : memref<16x640xf32, #tpu.memory_space<vmem>>, vector<4x640xf32>
    %57 = arith.addf %56, %55 : vector<4x640xf32>
    %c0_55 = arith.constant 0 : index
    %c0_56 = arith.constant 0 : index
    %58 = vector.load %arg8[%c0_55, %c0_56] : memref<16x640xf32, #tpu.memory_space<vmem>>, vector<4x640xf32>
    tpu.vector_store %arg8[%c0_55, %c0_56], %57 {strides = array<i32>} : memref<16x640xf32, #tpu.memory_space<vmem>>, vector<4x640xf32>,
    %59 = vector.extract_strided_slice %6 {offsets = [4, 0], sizes = [4, 640], strides = [1, 1]} : vector<16x640xf32> to vector<4x640xf32>
    %c0_57 = arith.constant 0 : index
    %c0_58 = arith.constant 0 : index
    %c105 = arith.constant 105 : index
    %60 = vector.load %arg2[%c0_57, %c0_58, %c105] : memref<1x4x1292xf32, #tpu.memory_space<vmem>>, vector<1x4x640xf32>
    %61 = vector.shape_cast %60 : vector<1x4x640xf32> to vector<4x640xf32>
    %c1_59 = arith.constant 1 : index
    %c0_60 = arith.constant 0 : index
    %c0_61 = arith.constant 0 : index
    %c0_62 = arith.constant 0 : index
    %62 = vector.load %arg4[%c1_59, %c0_60, %c0_61, %c0_62] : memref<3x8x4x4xf32, #tpu.memory_space<vmem>>, vector<1x1x4x4xf32>
    %63 = vector.shape_cast %62 : vector<1x1x4x4xf32> to vector<4x4xf32>
    %cst_63 = arith.constant dense<0.000000e+00> : vector<4x640xf32>
    %64 = tpu.matmul %63, %61, %cst_63 {dimension_numbers = #tpu.dot_dimension_numbers<[1], [0], [0], [1], [0, 0, 1, 1], [], []>} : vector<4x4xf32>, vector<4x640xf32>, vector<4x640xf32> -> vector<4x640xf32>
    %65 = arith.addf %59, %64 : vector<4x640xf32>
    %c0_64 = arith.constant 0 : index
    %c0_65 = arith.constant 0 : index
    %c111 = arith.constant 111 : index
    %66 = vector.load %arg2[%c0_64, %c0_65, %c111] : memref<1x4x1292xf32, #tpu.memory_space<vmem>>, vector<1x4x640xf32>
    %67 = vector.shape_cast %66 : vector<1x4x640xf32> to vector<4x640xf32>
    %c1_66 = arith.constant 1 : index
    %c1_67 = arith.constant 1 : index
    %c0_68 = arith.constant 0 : index
    %c0_69 = arith.constant 0 : index
    %68 = vector.load %arg4[%c1_66, %c1_67, %c0_68, %c0_69] : memref<3x8x4x4xf32, #tpu.memory_space<vmem>>, vector<1x1x4x4xf32>
    %69 = vector.shape_cast %68 : vector<1x1x4x4xf32> to vector<4x4xf32>
    %cst_70 = arith.constant dense<0.000000e+00> : vector<4x640xf32>
    %70 = tpu.matmul %69, %67, %cst_70 {dimension_numbers = #tpu.dot_dimension_numbers<[1], [0], [0], [1], [0, 0, 1, 1], [], []>} : vector<4x4xf32>, vector<4x640xf32>, vector<4x640xf32> -> vector<4x640xf32>
    %71 = arith.addf %65, %70 : vector<4x640xf32>
    %c0_71 = arith.constant 0 : index
    %c0_72 = arith.constant 0 : index
    %c117 = arith.constant 117 : index
    %72 = vector.load %arg2[%c0_71, %c0_72, %c117] : memref<1x4x1292xf32, #tpu.memory_space<vmem>>, vector<1x4x640xf32>
    %73 = vector.shape_cast %72 : vector<1x4x640xf32> to vector<4x640xf32>
    %c1_73 = arith.constant 1 : index
    %c2_74 = arith.constant 2 : index
    %c0_75 = arith.constant 0 : index
    %c0_76 = arith.constant 0 : index
    %74 = vector.load %arg4[%c1_73, %c2_74, %c0_75, %c0_76] : memref<3x8x4x4xf32, #tpu.memory_space<vmem>>, vector<1x1x4x4xf32>
    %75 = vector.shape_cast %74 : vector<1x1x4x4xf32> to vector<4x4xf32>
    %cst_77 = arith.constant dense<0.000000e+00> : vector<4x640xf32>
    %76 = tpu.matmul %75, %73, %cst_77 {dimension_numbers = #tpu.dot_dimension_numbers<[1], [0], [0], [1], [0, 0, 1, 1], [], []>} : vector<4x4xf32>, vector<4x640xf32>, vector<4x640xf32> -> vector<4x640xf32>
    %77 = arith.addf %71, %76 : vector<4x640xf32>
    %c0_78 = arith.constant 0 : index
    %c0_79 = arith.constant 0 : index
    %c309 = arith.constant 309 : index
    %78 = vector.load %arg2[%c0_78, %c0_79, %c309] : memref<1x4x1292xf32, #tpu.memory_space<vmem>>, vector<1x4x640xf32>
    %79 = vector.shape_cast %78 : vector<1x4x640xf32> to vector<4x640xf32>
    %c1_80 = arith.constant 1 : index
    %c3_81 = arith.constant 3 : index
    %c0_82 = arith.constant 0 : index
    %c0_83 = arith.constant 0 : index
    %80 = vector.load %arg4[%c1_80, %c3_81, %c0_82, %c0_83] : memref<3x8x4x4xf32, #tpu.memory_space<vmem>>, vector<1x1x4x4xf32>
    %81 = vector.shape_cast %80 : vector<1x1x4x4xf32> to vector<4x4xf32>
    %cst_84 = arith.constant dense<0.000000e+00> : vector<4x640xf32>
    %82 = tpu.matmul %81, %79, %cst_84 {dimension_numbers = #tpu.dot_dimension_numbers<[1], [0], [0], [1], [0, 0, 1, 1], [], []>} : vector<4x4xf32>, vector<4x640xf32>, vector<4x640xf32> -> vector<4x640xf32>
    %83 = arith.addf %77, %82 : vector<4x640xf32>
    %c0_85 = arith.constant 0 : index
    %c0_86 = arith.constant 0 : index
    %c321 = arith.constant 321 : index
    %84 = vector.load %arg2[%c0_85, %c0_86, %c321] : memref<1x4x1292xf32, #tpu.memory_space<vmem>>, vector<1x4x640xf32>
    %85 = vector.shape_cast %84 : vector<1x4x640xf32> to vector<4x640xf32>
    %c1_87 = arith.constant 1 : index
    %c4_88 = arith.constant 4 : index
    %c0_89 = arith.constant 0 : index
    %c0_90 = arith.constant 0 : index
    %86 = vector.load %arg4[%c1_87, %c4_88, %c0_89, %c0_90] : memref<3x8x4x4xf32, #tpu.memory_space<vmem>>, vector<1x1x4x4xf32>
    %87 = vector.shape_cast %86 : vector<1x1x4x4xf32> to vector<4x4xf32>
    %cst_91 = arith.constant dense<0.000000e+00> : vector<4x640xf32>
    %88 = tpu.matmul %87, %85, %cst_91 {dimension_numbers = #tpu.dot_dimension_numbers<[1], [0], [0], [1], [0, 0, 1, 1], [], []>} : vector<4x4xf32>, vector<4x640xf32>, vector<4x640xf32> -> vector<4x640xf32>
    %89 = arith.addf %83, %88 : vector<4x640xf32>
    %c0_92 = arith.constant 0 : index
    %c0_93 = arith.constant 0 : index
    %c513 = arith.constant 513 : index
    %90 = vector.load %arg2[%c0_92, %c0_93, %c513] : memref<1x4x1292xf32, #tpu.memory_space<vmem>>, vector<1x4x640xf32>
    %91 = vector.shape_cast %90 : vector<1x4x640xf32> to vector<4x640xf32>
    %c1_94 = arith.constant 1 : index
    %c5_95 = arith.constant 5 : index
    %c0_96 = arith.constant 0 : index
    %c0_97 = arith.constant 0 : index
    %92 = vector.load %arg4[%c1_94, %c5_95, %c0_96, %c0_97] : memref<3x8x4x4xf32, #tpu.memory_space<vmem>>, vector<1x1x4x4xf32>
    %93 = vector.shape_cast %92 : vector<1x1x4x4xf32> to vector<4x4xf32>
    %cst_98 = arith.constant dense<0.000000e+00> : vector<4x640xf32>
    %94 = tpu.matmul %93, %91, %cst_98 {dimension_numbers = #tpu.dot_dimension_numbers<[1], [0], [0], [1], [0, 0, 1, 1], [], []>} : vector<4x4xf32>, vector<4x640xf32>, vector<4x640xf32> -> vector<4x640xf32>
    %95 = arith.addf %89, %94 : vector<4x640xf32>
    %c0_99 = arith.constant 0 : index
    %c0_100 = arith.constant 0 : index
    %c519 = arith.constant 519 : index
    %96 = vector.load %arg2[%c0_99, %c0_100, %c519] : memref<1x4x1292xf32, #tpu.memory_space<vmem>>, vector<1x4x640xf32>
    %97 = vector.shape_cast %96 : vector<1x4x640xf32> to vector<4x640xf32>
    %c1_101 = arith.constant 1 : index
    %c6_102 = arith.constant 6 : index
    %c0_103 = arith.constant 0 : index
    %c0_104 = arith.constant 0 : index
    %98 = vector.load %arg4[%c1_101, %c6_102, %c0_103, %c0_104] : memref<3x8x4x4xf32, #tpu.memory_space<vmem>>, vector<1x1x4x4xf32>
    %99 = vector.shape_cast %98 : vector<1x1x4x4xf32> to vector<4x4xf32>
    %cst_105 = arith.constant dense<0.000000e+00> : vector<4x640xf32>
    %100 = tpu.matmul %99, %97, %cst_105 {dimension_numbers = #tpu.dot_dimension_numbers<[1], [0], [0], [1], [0, 0, 1, 1], [], []>} : vector<4x4xf32>, vector<4x640xf32>, vector<4x640xf32> -> vector<4x640xf32>
    %101 = arith.addf %95, %100 : vector<4x640xf32>
    %c0_106 = arith.constant 0 : index
    %c0_107 = arith.constant 0 : index
    %c525 = arith.constant 525 : index
    %102 = vector.load %arg2[%c0_106, %c0_107, %c525] : memref<1x4x1292xf32, #tpu.memory_space<vmem>>, vector<1x4x640xf32>
    %103 = vector.shape_cast %102 : vector<1x4x640xf32> to vector<4x640xf32>
    %c1_108 = arith.constant 1 : index
    %c7_109 = arith.constant 7 : index
    %c0_110 = arith.constant 0 : index
    %c0_111 = arith.constant 0 : index
    %104 = vector.load %arg4[%c1_108, %c7_109, %c0_110, %c0_111] : memref<3x8x4x4xf32, #tpu.memory_space<vmem>>, vector<1x1x4x4xf32>
    %105 = vector.shape_cast %104 : vector<1x1x4x4xf32> to vector<4x4xf32>
    %cst_112 = arith.constant dense<0.000000e+00> : vector<4x640xf32>
    %106 = tpu.matmul %105, %103, %cst_112 {dimension_numbers = #tpu.dot_dimension_numbers<[1], [0], [0], [1], [0, 0, 1, 1], [], []>} : vector<4x4xf32>, vector<4x640xf32>, vector<4x640xf32> -> vector<4x640xf32>
    %107 = arith.addf %101, %106 : vector<4x640xf32>
    %c4_113 = arith.constant 4 : index
    %c0_114 = arith.constant 0 : index
    %108 = vector.load %arg8[%c4_113, %c0_114] : memref<16x640xf32, #tpu.memory_space<vmem>>, vector<4x640xf32>
    %109 = arith.addf %108, %107 : vector<4x640xf32>
    %c4_115 = arith.constant 4 : index
    %c0_116 = arith.constant 0 : index
    %110 = vector.load %arg8[%c4_115, %c0_116] : memref<16x640xf32, #tpu.memory_space<vmem>>, vector<4x640xf32>
    tpu.vector_store %arg8[%c4_115, %c0_116], %109 {strides = array<i32>} : memref<16x640xf32, #tpu.memory_space<vmem>>, vector<4x640xf32>,
    %111 = vector.extract_strided_slice %6 {offsets = [8, 0], sizes = [4, 640], strides = [1, 1]} : vector<16x640xf32> to vector<4x640xf32>
    %c0_117 = arith.constant 0 : index
    %c0_118 = arith.constant 0 : index
    %c0_119 = arith.constant 0 : index
    %112 = vector.load %arg2[%c0_117, %c0_118, %c0_119] : memref<1x4x1292xf32, #tpu.memory_space<vmem>>, vector<1x4x640xf32>
    %113 = vector.shape_cast %112 : vector<1x4x640xf32> to vector<4x640xf32>
    %c2_120 = arith.constant 2 : index
    %c0_121 = arith.constant 0 : index
    %c0_122 = arith.constant 0 : index
    %c0_123 = arith.constant 0 : index
    %114 = vector.load %arg4[%c2_120, %c0_121, %c0_122, %c0_123] : memref<3x8x4x4xf32, #tpu.memory_space<vmem>>, vector<1x1x4x4xf32>
    %115 = vector.shape_cast %114 : vector<1x1x4x4xf32> to vector<4x4xf32>
    %cst_124 = arith.constant dense<0.000000e+00> : vector<4x640xf32>
    %116 = tpu.matmul %115, %113, %cst_124 {dimension_numbers = #tpu.dot_dimension_numbers<[1], [0], [0], [1], [0, 0, 1, 1], [], []>} : vector<4x4xf32>, vector<4x640xf32>, vector<4x640xf32> -> vector<4x640xf32>
    %117 = arith.addf %111, %116 : vector<4x640xf32>
    %c0_125 = arith.constant 0 : index
    %c0_126 = arith.constant 0 : index
    %c9 = arith.constant 9 : index
    %118 = vector.load %arg2[%c0_125, %c0_126, %c9] : memref<1x4x1292xf32, #tpu.memory_space<vmem>>, vector<1x4x640xf32>
    %119 = vector.shape_cast %118 : vector<1x4x640xf32> to vector<4x640xf32>
    %c2_127 = arith.constant 2 : index
    %c1_128 = arith.constant 1 : index
    %c0_129 = arith.constant 0 : index
    %c0_130 = arith.constant 0 : index
    %120 = vector.load %arg4[%c2_127, %c1_128, %c0_129, %c0_130] : memref<3x8x4x4xf32, #tpu.memory_space<vmem>>, vector<1x1x4x4xf32>
    %121 = vector.shape_cast %120 : vector<1x1x4x4xf32> to vector<4x4xf32>
    %cst_131 = arith.constant dense<0.000000e+00> : vector<4x640xf32>
    %122 = tpu.matmul %121, %119, %cst_131 {dimension_numbers = #tpu.dot_dimension_numbers<[1], [0], [0], [1], [0, 0, 1, 1], [], []>} : vector<4x4xf32>, vector<4x640xf32>, vector<4x640xf32> -> vector<4x640xf32>
    %123 = arith.addf %117, %122 : vector<4x640xf32>
    %c0_132 = arith.constant 0 : index
    %c0_133 = arith.constant 0 : index
    %c18 = arith.constant 18 : index
    %124 = vector.load %arg2[%c0_132, %c0_133, %c18] : memref<1x4x1292xf32, #tpu.memory_space<vmem>>, vector<1x4x640xf32>
    %125 = vector.shape_cast %124 : vector<1x4x640xf32> to vector<4x640xf32>
    %c2_134 = arith.constant 2 : index
    %c2_135 = arith.constant 2 : index
    %c0_136 = arith.constant 0 : index
    %c0_137 = arith.constant 0 : index
    %126 = vector.load %arg4[%c2_134, %c2_135, %c0_136, %c0_137] : memref<3x8x4x4xf32, #tpu.memory_space<vmem>>, vector<1x1x4x4xf32>
    %127 = vector.shape_cast %126 : vector<1x1x4x4xf32> to vector<4x4xf32>
    %cst_138 = arith.constant dense<0.000000e+00> : vector<4x640xf32>
    %128 = tpu.matmul %127, %125, %cst_138 {dimension_numbers = #tpu.dot_dimension_numbers<[1], [0], [0], [1], [0, 0, 1, 1], [], []>} : vector<4x4xf32>, vector<4x640xf32>, vector<4x640xf32> -> vector<4x640xf32>
    %129 = arith.addf %123, %128 : vector<4x640xf32>
    %c0_139 = arith.constant 0 : index
    %c0_140 = arith.constant 0 : index
    %c306 = arith.constant 306 : index
    %130 = vector.load %arg2[%c0_139, %c0_140, %c306] : memref<1x4x1292xf32, #tpu.memory_space<vmem>>, vector<1x4x640xf32>
    %131 = vector.shape_cast %130 : vector<1x4x640xf32> to vector<4x640xf32>
    %c2_141 = arith.constant 2 : index
    %c3_142 = arith.constant 3 : index
    %c0_143 = arith.constant 0 : index
    %c0_144 = arith.constant 0 : index
    %132 = vector.load %arg4[%c2_141, %c3_142, %c0_143, %c0_144] : memref<3x8x4x4xf32, #tpu.memory_space<vmem>>, vector<1x1x4x4xf32>
    %133 = vector.shape_cast %132 : vector<1x1x4x4xf32> to vector<4x4xf32>
    %cst_145 = arith.constant dense<0.000000e+00> : vector<4x640xf32>
    %134 = tpu.matmul %133, %131, %cst_145 {dimension_numbers = #tpu.dot_dimension_numbers<[1], [0], [0], [1], [0, 0, 1, 1], [], []>} : vector<4x4xf32>, vector<4x640xf32>, vector<4x640xf32> -> vector<4x640xf32>
    %135 = arith.addf %129, %134 : vector<4x640xf32>
    %c0_146 = arith.constant 0 : index
    %c0_147 = arith.constant 0 : index
    %c324 = arith.constant 324 : index
    %136 = vector.load %arg2[%c0_146, %c0_147, %c324] : memref<1x4x1292xf32, #tpu.memory_space<vmem>>, vector<1x4x640xf32>
    %137 = vector.shape_cast %136 : vector<1x4x640xf32> to vector<4x640xf32>
    %c2_148 = arith.constant 2 : index
    %c4_149 = arith.constant 4 : index
    %c0_150 = arith.constant 0 : index
    %c0_151 = arith.constant 0 : index
    %138 = vector.load %arg4[%c2_148, %c4_149, %c0_150, %c0_151] : memref<3x8x4x4xf32, #tpu.memory_space<vmem>>, vector<1x1x4x4xf32>
    %139 = vector.shape_cast %138 : vector<1x1x4x4xf32> to vector<4x4xf32>
    %cst_152 = arith.constant dense<0.000000e+00> : vector<4x640xf32>
    %140 = tpu.matmul %139, %137, %cst_152 {dimension_numbers = #tpu.dot_dimension_numbers<[1], [0], [0], [1], [0, 0, 1, 1], [], []>} : vector<4x4xf32>, vector<4x640xf32>, vector<4x640xf32> -> vector<4x640xf32>
    %141 = arith.addf %135, %140 : vector<4x640xf32>
    %c0_153 = arith.constant 0 : index
    %c0_154 = arith.constant 0 : index
    %c612 = arith.constant 612 : index
    %142 = vector.load %arg2[%c0_153, %c0_154, %c612] : memref<1x4x1292xf32, #tpu.memory_space<vmem>>, vector<1x4x640xf32>
    %143 = vector.shape_cast %142 : vector<1x4x640xf32> to vector<4x640xf32>
    %c2_155 = arith.constant 2 : index
    %c5_156 = arith.constant 5 : index
    %c0_157 = arith.constant 0 : index
    %c0_158 = arith.constant 0 : index
    %144 = vector.load %arg4[%c2_155, %c5_156, %c0_157, %c0_158] : memref<3x8x4x4xf32, #tpu.memory_space<vmem>>, vector<1x1x4x4xf32>
    %145 = vector.shape_cast %144 : vector<1x1x4x4xf32> to vector<4x4xf32>
    %cst_159 = arith.constant dense<0.000000e+00> : vector<4x640xf32>
    %146 = tpu.matmul %145, %143, %cst_159 {dimension_numbers = #tpu.dot_dimension_numbers<[1], [0], [0], [1], [0, 0, 1, 1], [], []>} : vector<4x4xf32>, vector<4x640xf32>, vector<4x640xf32> -> vector<4x640xf32>
    %147 = arith.addf %141, %146 : vector<4x640xf32>
    %c0_160 = arith.constant 0 : index
    %c0_161 = arith.constant 0 : index
    %c621 = arith.constant 621 : index
    %148 = vector.load %arg2[%c0_160, %c0_161, %c621] : memref<1x4x1292xf32, #tpu.memory_space<vmem>>, vector<1x4x640xf32>
    %149 = vector.shape_cast %148 : vector<1x4x640xf32> to vector<4x640xf32>
    %c2_162 = arith.constant 2 : index
    %c6_163 = arith.constant 6 : index
    %c0_164 = arith.constant 0 : index
    %c0_165 = arith.constant 0 : index
    %150 = vector.load %arg4[%c2_162, %c6_163, %c0_164, %c0_165] : memref<3x8x4x4xf32, #tpu.memory_space<vmem>>, vector<1x1x4x4xf32>
    %151 = vector.shape_cast %150 : vector<1x1x4x4xf32> to vector<4x4xf32>
    %cst_166 = arith.constant dense<0.000000e+00> : vector<4x640xf32>
    %152 = tpu.matmul %151, %149, %cst_166 {dimension_numbers = #tpu.dot_dimension_numbers<[1], [0], [0], [1], [0, 0, 1, 1], [], []>} : vector<4x4xf32>, vector<4x640xf32>, vector<4x640xf32> -> vector<4x640xf32>
    %153 = arith.addf %147, %152 : vector<4x640xf32>
    %c0_167 = arith.constant 0 : index
    %c0_168 = arith.constant 0 : index
    %c630 = arith.constant 630 : index
    %154 = vector.load %arg2[%c0_167, %c0_168, %c630] : memref<1x4x1292xf32, #tpu.memory_space<vmem>>, vector<1x4x640xf32>
    %155 = vector.shape_cast %154 : vector<1x4x640xf32> to vector<4x640xf32>
    %c2_169 = arith.constant 2 : index
    %c7_170 = arith.constant 7 : index
    %c0_171 = arith.constant 0 : index
    %c0_172 = arith.constant 0 : index
    %156 = vector.load %arg4[%c2_169, %c7_170, %c0_171, %c0_172] : memref<3x8x4x4xf32, #tpu.memory_space<vmem>>, vector<1x1x4x4xf32>
    %157 = vector.shape_cast %156 : vector<1x1x4x4xf32> to vector<4x4xf32>
    %cst_173 = arith.constant dense<0.000000e+00> : vector<4x640xf32>
    %158 = tpu.matmul %157, %155, %cst_173 {dimension_numbers = #tpu.dot_dimension_numbers<[1], [0], [0], [1], [0, 0, 1, 1], [], []>} : vector<4x4xf32>, vector<4x640xf32>, vector<4x640xf32> -> vector<4x640xf32>
    %159 = arith.addf %153, %158 : vector<4x640xf32>
    %c8 = arith.constant 8 : index
    %c0_174 = arith.constant 0 : index
    %160 = vector.load %arg8[%c8, %c0_174] : memref<16x640xf32, #tpu.memory_space<vmem>>, vector<4x640xf32>
    %161 = arith.addf %160, %159 : vector<4x640xf32>
    %c8_175 = arith.constant 8 : index
    %c0_176 = arith.constant 0 : index
    %162 = vector.load %arg8[%c8_175, %c0_176] : memref<16x640xf32, #tpu.memory_space<vmem>>, vector<4x640xf32>
    tpu.vector_store %arg8[%c8_175, %c0_176], %161 {strides = array<i32>} : memref<16x640xf32, #tpu.memory_space<vmem>>, vector<4x640xf32>,
    %c12 = arith.constant 12 : index
    %c0_177 = arith.constant 0 : index
    %163 = vector.load %arg8[%c12, %c0_177] : memref<16x640xf32, #tpu.memory_space<vmem>>, vector<4x640xf32>
    %164 = vector.extract_strided_slice %6 {offsets = [12, 0], sizes = [4, 640], strides = [1, 1]} : vector<16x640xf32> to vector<4x640xf32>
    %165 = arith.addf %163, %164 : vector<4x640xf32>
    %c12_178 = arith.constant 12 : index
    %c0_179 = arith.constant 0 : index
    %166 = vector.load %arg8[%c12_178, %c0_179] : memref<16x640xf32, #tpu.memory_space<vmem>>, vector<4x640xf32>
    tpu.vector_store %arg8[%c12_178, %c0_179], %165 {strides = array<i32>} : memref<16x640xf32, #tpu.memory_space<vmem>>, vector<4x640xf32>,
    %c0_i32_180 = arith.constant 0 : i32
    %167 = arith.cmpi eq, %arg1, %c0_i32_180 : i32
    %168 = arith.extui %167 : i1 to i32
    %c0_i32_181 = arith.constant 0 : i32
    %169 = arith.cmpi ne, %168, %c0_i32_181 : i32
    scf.if %169 {
      %c0_182 = arith.constant 0 : index
      %c0_183 = arith.constant 0 : index
      %170 = vector.load %arg8[%c0_182, %c0_183] : memref<16x640xf32, #tpu.memory_space<vmem>>, vector<4x640xf32>
      %c0_184 = arith.constant 0 : index
      %c0_185 = arith.constant 0 : index
      %c0_186 = arith.constant 0 : index
      %171 = vector.load %arg5[%c0_184, %c0_185, %c0_186] : memref<3x4x1xf32, #tpu.memory_space<vmem>>, vector<1x4x1xf32>
      %172 = vector.shape_cast %171 : vector<1x4x1xf32> to vector<4x1xf32>
      %173 = vector.broadcast %172 : vector<4x1xf32> to vector<4x640xf32>
      %174 = arith.addf %170, %173 : vector<4x640xf32>
      %c0_187 = arith.constant 0 : index
      %c0_188 = arith.constant 0 : index
      %175 = vector.load %arg8[%c0_187, %c0_188] : memref<16x640xf32, #tpu.memory_space<vmem>>, vector<4x640xf32>
      tpu.vector_store %arg8[%c0_187, %c0_188], %174 {strides = array<i32>} : memref<16x640xf32, #tpu.memory_space<vmem>>, vector<4x640xf32>,
      %c4_189 = arith.constant 4 : index
      %c0_190 = arith.constant 0 : index
      %176 = vector.load %arg8[%c4_189, %c0_190] : memref<16x640xf32, #tpu.memory_space<vmem>>, vector<4x640xf32>
      %c1_191 = arith.constant 1 : index
      %c0_192 = arith.constant 0 : index
      %c0_193 = arith.constant 0 : index
      %177 = vector.load %arg5[%c1_191, %c0_192, %c0_193] : memref<3x4x1xf32, #tpu.memory_space<vmem>>, vector<1x4x1xf32>
      %178 = vector.shape_cast %177 : vector<1x4x1xf32> to vector<4x1xf32>
      %179 = vector.broadcast %178 : vector<4x1xf32> to vector<4x640xf32>
      %180 = arith.addf %176, %179 : vector<4x640xf32>
      %c4_194 = arith.constant 4 : index
      %c0_195 = arith.constant 0 : index
      %181 = vector.load %arg8[%c4_194, %c0_195] : memref<16x640xf32, #tpu.memory_space<vmem>>, vector<4x640xf32>
      tpu.vector_store %arg8[%c4_194, %c0_195], %180 {strides = array<i32>} : memref<16x640xf32, #tpu.memory_space<vmem>>, vector<4x640xf32>,
      %c8_196 = arith.constant 8 : index
      %c0_197 = arith.constant 0 : index
      %182 = vector.load %arg8[%c8_196, %c0_197] : memref<16x640xf32, #tpu.memory_space<vmem>>, vector<4x640xf32>
      %c2_198 = arith.constant 2 : index
      %c0_199 = arith.constant 0 : index
      %c0_200 = arith.constant 0 : index
      %183 = vector.load %arg5[%c2_198, %c0_199, %c0_200] : memref<3x4x1xf32, #tpu.memory_space<vmem>>, vector<1x4x1xf32>
      %184 = vector.shape_cast %183 : vector<1x4x1xf32> to vector<4x1xf32>
      %185 = vector.broadcast %184 : vector<4x1xf32> to vector<4x640xf32>
      %186 = arith.addf %182, %185 : vector<4x640xf32>
      %c8_201 = arith.constant 8 : index
      %c0_202 = arith.constant 0 : index
      %187 = vector.load %arg8[%c8_201, %c0_202] : memref<16x640xf32, #tpu.memory_space<vmem>>, vector<4x640xf32>
      tpu.vector_store %arg8[%c8_201, %c0_202], %186 {strides = array<i32>} : memref<16x640xf32, #tpu.memory_space<vmem>>, vector<4x640xf32>,
      %c12_203 = arith.constant 12 : index
      %c0_204 = arith.constant 0 : index
      %188 = vector.load %arg8[%c12_203, %c0_204] : memref<16x640xf32, #tpu.memory_space<vmem>>, vector<4x640xf32>
      %cst_205 = arith.constant dense<0.000000e+00> : vector<4xf32>
      %189 = vector.multi_reduction <add>, %188, %cst_205 [1] : vector<4x640xf32> to vector<4xf32>
      %190 = vector.shape_cast %189 : vector<4xf32> to vector<4x1xf32>
      %cst_206 = arith.constant 3.906250e-03 : f32
      %191 = vector.broadcast %cst_206 : f32 to vector<4x1xf32>
      %192 = arith.mulf %190, %191 : vector<4x1xf32>
      %c0_207 = arith.constant 0 : index
      %c0_208 = arith.constant 0 : index
      %193 = vector.load %arg6[%c0_207, %c0_208] : memref<4x1xf32, #tpu.memory_space<vmem>>, vector<4x1xf32>
      %194 = arith.addf %192, %193 : vector<4x1xf32>
      %cst_209 = arith.constant 0.000000e+00 : f32
      %195 = vector.broadcast %cst_209 : f32 to vector<4x1xf32>
      %196 = arith.maximumf %194, %195 : vector<4x1xf32>
      %197 = vector.shape_cast %196 : vector<4x1xf32> to vector<4x1xf32>
      %198 = vector.broadcast %197 : vector<4x1xf32> to vector<4x640xf32>
      %c12_210 = arith.constant 12 : index
      %c0_211 = arith.constant 0 : index
      %199 = vector.load %arg8[%c12_210, %c0_211] : memref<16x640xf32, #tpu.memory_space<vmem>>, vector<4x640xf32>
      tpu.vector_store %arg8[%c12_210, %c0_211], %198 {strides = array<i32>} : memref<16x640xf32, #tpu.memory_space<vmem>>, vector<4x640xf32>,
      %c0_212 = arith.constant 0 : index
      %c0_213 = arith.constant 0 : index
      %200 = vector.load %arg8[%c0_212, %c0_213] : memref<16x640xf32, #tpu.memory_space<vmem>>, vector<16x640xf32>
      %c0_214 = arith.constant 0 : index
      %c0_215 = arith.constant 0 : index
      %c0_216 = arith.constant 0 : index
      %201 = vector.load %arg7[%c0_214, %c0_215, %c0_216] : memref<1x16x640xf32, #tpu.memory_space<vmem>>, vector<1x16x640xf32>
      %202 = vector.shape_cast %201 : vector<1x16x640xf32> to vector<16x640xf32>
      %203 = vector.shape_cast %200 : vector<16x640xf32> to vector<1x16x640xf32>
      tpu.vector_store %arg7[%c0_214, %c0_215, %c0_216], %203 {strides = array<i32>} : memref<1x16x640xf32, #tpu.memory_space<vmem>>, vector<1x16x640xf32>,
    } else {
    }
    return
  }
  func.func @transform_0(%arg0: i32, %arg1: i32) -> (i32, i32, i32) {
    %c0_i32 = arith.constant 0 : i32
    %c0_i32_0 = arith.constant 0 : i32
    return %arg0, %arg1, %c0_i32 : i32, i32, i32
  }
  func.func @transform_1(%arg0: i32, %arg1: i32) -> (i32, i32) {
    %c0_i32 = arith.constant 0 : i32
    %c0_i32_0 = arith.constant 0 : i32
    return %c0_i32, %arg1 : i32, i32
  }
  func.func @transform_2(%arg0: i32, %arg1: i32) -> (i32, i32, i32, i32) {
    %c0_i32 = arith.constant 0 : i32
    %c0_i32_0 = arith.constant 0 : i32
    %c0_i32_1 = arith.constant 0 : i32
    %c0_i32_2 = arith.constant 0 : i32
    return %c0_i32, %c0_i32_0, %c0_i32_1, %arg1 : i32, i32, i32, i32
  }
  func.func @transform_3(%arg0: i32, %arg1: i32) -> (i32, i32, i32) {
    %c0_i32 = arith.constant 0 : i32
    %c0_i32_0 = arith.constant 0 : i32
    %c0_i32_1 = arith.constant 0 : i32
    %c0_i32_2 = arith.constant 0 : i32
    return %c0_i32, %c0_i32_0, %c0_i32_1 : i32, i32, i32
  }
  func.func @transform_4(%arg0: i32, %arg1: i32) -> (i32, i32) {
    %c0_i32 = arith.constant 0 : i32
    %c0_i32_0 = arith.constant 0 : i32
    %c0_i32_1 = arith.constant 0 : i32
    return %c0_i32, %c0_i32_0 : i32, i32
  }
  func.func @transform_5(%arg0: i32, %arg1: i32) -> (i32, i32, i32) {
    %c0_i32 = arith.constant 0 : i32
    %c0_i32_0 = arith.constant 0 : i32
    %c0_i32_1 = arith.constant 0 : i32
    return %arg0, %c0_i32, %c0_i32_0 : i32, i32, i32
  }
}

module attributes {stable_mosaic.version = 11 : i64} {
  func.func @_multi_atrous_kernel(%arg0: i32, %arg1: i32, %arg2: memref<1x4x1292xf32, #tpu.memory_space<vmem>>, %arg3: memref<16x4xf32, #tpu.memory_space<vmem>>, %arg4: memref<3x8x4x4xf32, #tpu.memory_space<vmem>>, %arg5: memref<3x4x1xf32, #tpu.memory_space<vmem>>, %arg6: memref<4x1xf32, #tpu.memory_space<vmem>>, %arg7: memref<1x16x640xf32, #tpu.memory_space<vmem>>, %arg8: memref<16x640xf32, #tpu.memory_space<vmem>>) attributes {dimension_semantics = [#tpu.dimension_semantics<parallel>, #tpu.dimension_semantics<arbitrary>], iteration_bounds = array<i64: 2, 1>, scalar_prefetch = 0 : i64, scratch_operands = 1 : i64, tpu.core_type = #tpu.core_type<tc>, window_params = [{transform_indices = @transform_0, window_bounds = array<i64: 1, 4, 1292>}, {transform_indices = @transform_1, window_bounds = array<i64: 16, 4>}, {transform_indices = @transform_2, window_bounds = array<i64: 3, 8, 4, 4>}, {pipeline_mode = #tpu.pipeline_mode<synchronous>, transform_indices = @transform_3, window_bounds = array<i64: 3, 4, 1>}, {pipeline_mode = #tpu.pipeline_mode<synchronous>, transform_indices = @transform_4, window_bounds = array<i64: 4, 1>}, {transform_indices = @transform_5, window_bounds = array<i64: 1, 16, 640>}]} {
    %c0_i32 = arith.constant 0 : i32
    %0 = arith.cmpi eq, %arg1, %c0_i32 : i32
    %1 = arith.extui %0 : i1 to i32
    %c0_i32_0 = arith.constant 0 : i32
    %2 = arith.cmpi ne, %1, %c0_i32_0 : i32
    scf.if %2 {
      %cst_182 = arith.constant 0.000000e+00 : f32
      %170 = vector.broadcast %cst_182 : f32 to vector<16x640xf32>
      %c0_183 = arith.constant 0 : index
      %c0_184 = arith.constant 0 : index
      %171 = vector.load %arg8[%c0_183, %c0_184] : memref<16x640xf32, #tpu.memory_space<vmem>>, vector<16x640xf32>
      tpu.vector_store %arg8[%c0_183, %c0_184], %170 {strides = array<i32>} : memref<16x640xf32, #tpu.memory_space<vmem>>, vector<16x640xf32>,
    } else {
    }
    %c0 = arith.constant 0 : index
    %c0_1 = arith.constant 0 : index
    %c315 = arith.constant 315 : index
    %3 = vector.load %arg2[%c0, %c0_1, %c315] : memref<1x4x1292xf32, #tpu.memory_space<vmem>>, vector<1x4x640xf32>
    %4 = vector.shape_cast %3 : vector<1x4x640xf32> to vector<4x640xf32>
    %c0_2 = arith.constant 0 : index
    %c0_3 = arith.constant 0 : index
    %5 = vector.load %arg3[%c0_2, %c0_3] : memref<16x4xf32, #tpu.memory_space<vmem>>, vector<16x4xf32>
    %cst = arith.constant dense<0.000000e+00> : vector<16x640xf32>
    %6 = tpu.matmul %5, %4, %cst {dimension_numbers = #tpu.dot_dimension_numbers<[1], [0], [0], [1], [0, 0, 1, 1], [], []>} : vector<16x4xf32>, vector<4x640xf32>, vector<16x640xf32> -> vector<16x640xf32>
    %7 = vector.extract_strided_slice %6 {offsets = [0, 0], sizes = [4, 640], strides = [1, 1]} : vector<16x640xf32> to vector<4x640xf32>
    %c0_4 = arith.constant 0 : index
    %c0_5 = arith.constant 0 : index
    %c210 = arith.constant 210 : index
    %8 = vector.load %arg2[%c0_4, %c0_5, %c210] : memref<1x4x1292xf32, #tpu.memory_space<vmem>>, vector<1x4x640xf32>
    %9 = vector.shape_cast %8 : vector<1x4x640xf32> to vector<4x640xf32>
    %c0_6 = arith.constant 0 : index
    %c0_7 = arith.constant 0 : index
    %c0_8 = arith.constant 0 : index
    %c0_9 = arith.constant 0 : index
    %10 = vector.load %arg4[%c0_6, %c0_7, %c0_8, %c0_9] : memref<3x8x4x4xf32, #tpu.memory_space<vmem>>, vector<1x1x4x4xf32>
    %11 = vector.shape_cast %10 : vector<1x1x4x4xf32> to vector<4x4xf32>
    %cst_10 = arith.constant dense<0.000000e+00> : vector<4x640xf32>
    %12 = tpu.matmul %11, %9, %cst_10 {dimension_numbers = #tpu.dot_dimension_numbers<[1], [0], [0], [1], [0, 0, 1, 1], [], []>} : vector<4x4xf32>, vector<4x640xf32>, vector<4x640xf32> -> vector<4x640xf32>
    %13 = arith.addf %7, %12 : vector<4x640xf32>
    %c0_11 = arith.constant 0 : index
    %c0_12 = arith.constant 0 : index
    %c213 = arith.constant 213 : index
    %14 = vector.load %arg2[%c0_11, %c0_12, %c213] : memref<1x4x1292xf32, #tpu.memory_space<vmem>>, vector<1x4x640xf32>
    %15 = vector.shape_cast %14 : vector<1x4x640xf32> to vector<4x640xf32>
    %c0_13 = arith.constant 0 : index
    %c1 = arith.constant 1 : index
    %c0_14 = arith.constant 0 : index
    %c0_15 = arith.constant 0 : index
    %16 = vector.load %arg4[%c0_13, %c1, %c0_14, %c0_15] : memref<3x8x4x4xf32, #tpu.memory_space<vmem>>, vector<1x1x4x4xf32>
    %17 = vector.shape_cast %16 : vector<1x1x4x4xf32> to vector<4x4xf32>
    %cst_16 = arith.constant dense<0.000000e+00> : vector<4x640xf32>
    %18 = tpu.matmul %17, %15, %cst_16 {dimension_numbers = #tpu.dot_dimension_numbers<[1], [0], [0], [1], [0, 0, 1, 1], [], []>} : vector<4x4xf32>, vector<4x640xf32>, vector<4x640xf32> -> vector<4x640xf32>
    %19 = arith.addf %13, %18 : vector<4x640xf32>
    %c0_17 = arith.constant 0 : index
    %c0_18 = arith.constant 0 : index
    %c216 = arith.constant 216 : index
    %20 = vector.load %arg2[%c0_17, %c0_18, %c216] : memref<1x4x1292xf32, #tpu.memory_space<vmem>>, vector<1x4x640xf32>
    %21 = vector.shape_cast %20 : vector<1x4x640xf32> to vector<4x640xf32>
    %c0_19 = arith.constant 0 : index
    %c2 = arith.constant 2 : index
    %c0_20 = arith.constant 0 : index
    %c0_21 = arith.constant 0 : index
    %22 = vector.load %arg4[%c0_19, %c2, %c0_20, %c0_21] : memref<3x8x4x4xf32, #tpu.memory_space<vmem>>, vector<1x1x4x4xf32>
    %23 = vector.shape_cast %22 : vector<1x1x4x4xf32> to vector<4x4xf32>
    %cst_22 = arith.constant dense<0.000000e+00> : vector<4x640xf32>
    %24 = tpu.matmul %23, %21, %cst_22 {dimension_numbers = #tpu.dot_dimension_numbers<[1], [0], [0], [1], [0, 0, 1, 1], [], []>} : vector<4x4xf32>, vector<4x640xf32>, vector<4x640xf32> -> vector<4x640xf32>
    %25 = arith.addf %19, %24 : vector<4x640xf32>
    %c0_23 = arith.constant 0 : index
    %c0_24 = arith.constant 0 : index
    %c312 = arith.constant 312 : index
    %26 = vector.load %arg2[%c0_23, %c0_24, %c312] : memref<1x4x1292xf32, #tpu.memory_space<vmem>>, vector<1x4x640xf32>
    %27 = vector.shape_cast %26 : vector<1x4x640xf32> to vector<4x640xf32>
    %c0_25 = arith.constant 0 : index
    %c3 = arith.constant 3 : index
    %c0_26 = arith.constant 0 : index
    %c0_27 = arith.constant 0 : index
    %28 = vector.load %arg4[%c0_25, %c3, %c0_26, %c0_27] : memref<3x8x4x4xf32, #tpu.memory_space<vmem>>, vector<1x1x4x4xf32>
    %29 = vector.shape_cast %28 : vector<1x1x4x4xf32> to vector<4x4xf32>
    %cst_28 = arith.constant dense<0.000000e+00> : vector<4x640xf32>
    %30 = tpu.matmul %29, %27, %cst_28 {dimension_numbers = #tpu.dot_dimension_numbers<[1], [0], [0], [1], [0, 0, 1, 1], [], []>} : vector<4x4xf32>, vector<4x640xf32>, vector<4x640xf32> -> vector<4x640xf32>
    %31 = arith.addf %25, %30 : vector<4x640xf32>
    %c0_29 = arith.constant 0 : index
    %c0_30 = arith.constant 0 : index
    %c318 = arith.constant 318 : index
    %32 = vector.load %arg2[%c0_29, %c0_30, %c318] : memref<1x4x1292xf32, #tpu.memory_space<vmem>>, vector<1x4x640xf32>
    %33 = vector.shape_cast %32 : vector<1x4x640xf32> to vector<4x640xf32>
    %c0_31 = arith.constant 0 : index
    %c4 = arith.constant 4 : index
    %c0_32 = arith.constant 0 : index
    %c0_33 = arith.constant 0 : index
    %34 = vector.load %arg4[%c0_31, %c4, %c0_32, %c0_33] : memref<3x8x4x4xf32, #tpu.memory_space<vmem>>, vector<1x1x4x4xf32>
    %35 = vector.shape_cast %34 : vector<1x1x4x4xf32> to vector<4x4xf32>
    %cst_34 = arith.constant dense<0.000000e+00> : vector<4x640xf32>
    %36 = tpu.matmul %35, %33, %cst_34 {dimension_numbers = #tpu.dot_dimension_numbers<[1], [0], [0], [1], [0, 0, 1, 1], [], []>} : vector<4x4xf32>, vector<4x640xf32>, vector<4x640xf32> -> vector<4x640xf32>
    %37 = arith.addf %31, %36 : vector<4x640xf32>
    %c0_35 = arith.constant 0 : index
    %c0_36 = arith.constant 0 : index
    %c414 = arith.constant 414 : index
    %38 = vector.load %arg2[%c0_35, %c0_36, %c414] : memref<1x4x1292xf32, #tpu.memory_space<vmem>>, vector<1x4x640xf32>
    %39 = vector.shape_cast %38 : vector<1x4x640xf32> to vector<4x640xf32>
    %c0_37 = arith.constant 0 : index
    %c5 = arith.constant 5 : index
    %c0_38 = arith.constant 0 : index
    %c0_39 = arith.constant 0 : index
    %40 = vector.load %arg4[%c0_37, %c5, %c0_38, %c0_39] : memref<3x8x4x4xf32, #tpu.memory_space<vmem>>, vector<1x1x4x4xf32>
    %41 = vector.shape_cast %40 : vector<1x1x4x4xf32> to vector<4x4xf32>
    %cst_40 = arith.constant dense<0.000000e+00> : vector<4x640xf32>
    %42 = tpu.matmul %41, %39, %cst_40 {dimension_numbers = #tpu.dot_dimension_numbers<[1], [0], [0], [1], [0, 0, 1, 1], [], []>} : vector<4x4xf32>, vector<4x640xf32>, vector<4x640xf32> -> vector<4x640xf32>
    %43 = arith.addf %37, %42 : vector<4x640xf32>
    %c0_41 = arith.constant 0 : index
    %c0_42 = arith.constant 0 : index
    %c417 = arith.constant 417 : index
    %44 = vector.load %arg2[%c0_41, %c0_42, %c417] : memref<1x4x1292xf32, #tpu.memory_space<vmem>>, vector<1x4x640xf32>
    %45 = vector.shape_cast %44 : vector<1x4x640xf32> to vector<4x640xf32>
    %c0_43 = arith.constant 0 : index
    %c6 = arith.constant 6 : index
    %c0_44 = arith.constant 0 : index
    %c0_45 = arith.constant 0 : index
    %46 = vector.load %arg4[%c0_43, %c6, %c0_44, %c0_45] : memref<3x8x4x4xf32, #tpu.memory_space<vmem>>, vector<1x1x4x4xf32>
    %47 = vector.shape_cast %46 : vector<1x1x4x4xf32> to vector<4x4xf32>
    %cst_46 = arith.constant dense<0.000000e+00> : vector<4x640xf32>
    %48 = tpu.matmul %47, %45, %cst_46 {dimension_numbers = #tpu.dot_dimension_numbers<[1], [0], [0], [1], [0, 0, 1, 1], [], []>} : vector<4x4xf32>, vector<4x640xf32>, vector<4x640xf32> -> vector<4x640xf32>
    %49 = arith.addf %43, %48 : vector<4x640xf32>
    %c0_47 = arith.constant 0 : index
    %c0_48 = arith.constant 0 : index
    %c420 = arith.constant 420 : index
    %50 = vector.load %arg2[%c0_47, %c0_48, %c420] : memref<1x4x1292xf32, #tpu.memory_space<vmem>>, vector<1x4x640xf32>
    %51 = vector.shape_cast %50 : vector<1x4x640xf32> to vector<4x640xf32>
    %c0_49 = arith.constant 0 : index
    %c7 = arith.constant 7 : index
    %c0_50 = arith.constant 0 : index
    %c0_51 = arith.constant 0 : index
    %52 = vector.load %arg4[%c0_49, %c7, %c0_50, %c0_51] : memref<3x8x4x4xf32, #tpu.memory_space<vmem>>, vector<1x1x4x4xf32>
    %53 = vector.shape_cast %52 : vector<1x1x4x4xf32> to vector<4x4xf32>
    %cst_52 = arith.constant dense<0.000000e+00> : vector<4x640xf32>
    %54 = tpu.matmul %53, %51, %cst_52 {dimension_numbers = #tpu.dot_dimension_numbers<[1], [0], [0], [1], [0, 0, 1, 1], [], []>} : vector<4x4xf32>, vector<4x640xf32>, vector<4x640xf32> -> vector<4x640xf32>
    %55 = arith.addf %49, %54 : vector<4x640xf32>
    %c0_53 = arith.constant 0 : index
    %c0_54 = arith.constant 0 : index
    %56 = vector.load %arg8[%c0_53, %c0_54] : memref<16x640xf32, #tpu.memory_space<vmem>>, vector<4x640xf32>
    %57 = arith.addf %56, %55 : vector<4x640xf32>
    %c0_55 = arith.constant 0 : index
    %c0_56 = arith.constant 0 : index
    %58 = vector.load %arg8[%c0_55, %c0_56] : memref<16x640xf32, #tpu.memory_space<vmem>>, vector<4x640xf32>
    tpu.vector_store %arg8[%c0_55, %c0_56], %57 {strides = array<i32>} : memref<16x640xf32, #tpu.memory_space<vmem>>, vector<4x640xf32>,
    %59 = vector.extract_strided_slice %6 {offsets = [4, 0], sizes = [4, 640], strides = [1, 1]} : vector<16x640xf32> to vector<4x640xf32>
    %c0_57 = arith.constant 0 : index
    %c0_58 = arith.constant 0 : index
    %c105 = arith.constant 105 : index
    %60 = vector.load %arg2[%c0_57, %c0_58, %c105] : memref<1x4x1292xf32, #tpu.memory_space<vmem>>, vector<1x4x640xf32>
    %61 = vector.shape_cast %60 : vector<1x4x640xf32> to vector<4x640xf32>
    %c1_59 = arith.constant 1 : index
    %c0_60 = arith.constant 0 : index
    %c0_61 = arith.constant 0 : index
    %c0_62 = arith.constant 0 : index
    %62 = vector.load %arg4[%c1_59, %c0_60, %c0_61, %c0_62] : memref<3x8x4x4xf32, #tpu.memory_space<vmem>>, vector<1x1x4x4xf32>
    %63 = vector.shape_cast %62 : vector<1x1x4x4xf32> to vector<4x4xf32>
    %cst_63 = arith.constant dense<0.000000e+00> : vector<4x640xf32>
    %64 = tpu.matmul %63, %61, %cst_63 {dimension_numbers = #tpu.dot_dimension_numbers<[1], [0], [0], [1], [0, 0, 1, 1], [], []>} : vector<4x4xf32>, vector<4x640xf32>, vector<4x640xf32> -> vector<4x640xf32>
    %65 = arith.addf %59, %64 : vector<4x640xf32>
    %c0_64 = arith.constant 0 : index
    %c0_65 = arith.constant 0 : index
    %c111 = arith.constant 111 : index
    %66 = vector.load %arg2[%c0_64, %c0_65, %c111] : memref<1x4x1292xf32, #tpu.memory_space<vmem>>, vector<1x4x640xf32>
    %67 = vector.shape_cast %66 : vector<1x4x640xf32> to vector<4x640xf32>
    %c1_66 = arith.constant 1 : index
    %c1_67 = arith.constant 1 : index
    %c0_68 = arith.constant 0 : index
    %c0_69 = arith.constant 0 : index
    %68 = vector.load %arg4[%c1_66, %c1_67, %c0_68, %c0_69] : memref<3x8x4x4xf32, #tpu.memory_space<vmem>>, vector<1x1x4x4xf32>
    %69 = vector.shape_cast %68 : vector<1x1x4x4xf32> to vector<4x4xf32>
    %cst_70 = arith.constant dense<0.000000e+00> : vector<4x640xf32>
    %70 = tpu.matmul %69, %67, %cst_70 {dimension_numbers = #tpu.dot_dimension_numbers<[1], [0], [0], [1], [0, 0, 1, 1], [], []>} : vector<4x4xf32>, vector<4x640xf32>, vector<4x640xf32> -> vector<4x640xf32>
    %71 = arith.addf %65, %70 : vector<4x640xf32>
    %c0_71 = arith.constant 0 : index
    %c0_72 = arith.constant 0 : index
    %c117 = arith.constant 117 : index
    %72 = vector.load %arg2[%c0_71, %c0_72, %c117] : memref<1x4x1292xf32, #tpu.memory_space<vmem>>, vector<1x4x640xf32>
    %73 = vector.shape_cast %72 : vector<1x4x640xf32> to vector<4x640xf32>
    %c1_73 = arith.constant 1 : index
    %c2_74 = arith.constant 2 : index
    %c0_75 = arith.constant 0 : index
    %c0_76 = arith.constant 0 : index
    %74 = vector.load %arg4[%c1_73, %c2_74, %c0_75, %c0_76] : memref<3x8x4x4xf32, #tpu.memory_space<vmem>>, vector<1x1x4x4xf32>
    %75 = vector.shape_cast %74 : vector<1x1x4x4xf32> to vector<4x4xf32>
    %cst_77 = arith.constant dense<0.000000e+00> : vector<4x640xf32>
    %76 = tpu.matmul %75, %73, %cst_77 {dimension_numbers = #tpu.dot_dimension_numbers<[1], [0], [0], [1], [0, 0, 1, 1], [], []>} : vector<4x4xf32>, vector<4x640xf32>, vector<4x640xf32> -> vector<4x640xf32>
    %77 = arith.addf %71, %76 : vector<4x640xf32>
    %c0_78 = arith.constant 0 : index
    %c0_79 = arith.constant 0 : index
    %c309 = arith.constant 309 : index
    %78 = vector.load %arg2[%c0_78, %c0_79, %c309] : memref<1x4x1292xf32, #tpu.memory_space<vmem>>, vector<1x4x640xf32>
    %79 = vector.shape_cast %78 : vector<1x4x640xf32> to vector<4x640xf32>
    %c1_80 = arith.constant 1 : index
    %c3_81 = arith.constant 3 : index
    %c0_82 = arith.constant 0 : index
    %c0_83 = arith.constant 0 : index
    %80 = vector.load %arg4[%c1_80, %c3_81, %c0_82, %c0_83] : memref<3x8x4x4xf32, #tpu.memory_space<vmem>>, vector<1x1x4x4xf32>
    %81 = vector.shape_cast %80 : vector<1x1x4x4xf32> to vector<4x4xf32>
    %cst_84 = arith.constant dense<0.000000e+00> : vector<4x640xf32>
    %82 = tpu.matmul %81, %79, %cst_84 {dimension_numbers = #tpu.dot_dimension_numbers<[1], [0], [0], [1], [0, 0, 1, 1], [], []>} : vector<4x4xf32>, vector<4x640xf32>, vector<4x640xf32> -> vector<4x640xf32>
    %83 = arith.addf %77, %82 : vector<4x640xf32>
    %c0_85 = arith.constant 0 : index
    %c0_86 = arith.constant 0 : index
    %c321 = arith.constant 321 : index
    %84 = vector.load %arg2[%c0_85, %c0_86, %c321] : memref<1x4x1292xf32, #tpu.memory_space<vmem>>, vector<1x4x640xf32>
    %85 = vector.shape_cast %84 : vector<1x4x640xf32> to vector<4x640xf32>
    %c1_87 = arith.constant 1 : index
    %c4_88 = arith.constant 4 : index
    %c0_89 = arith.constant 0 : index
    %c0_90 = arith.constant 0 : index
    %86 = vector.load %arg4[%c1_87, %c4_88, %c0_89, %c0_90] : memref<3x8x4x4xf32, #tpu.memory_space<vmem>>, vector<1x1x4x4xf32>
    %87 = vector.shape_cast %86 : vector<1x1x4x4xf32> to vector<4x4xf32>
    %cst_91 = arith.constant dense<0.000000e+00> : vector<4x640xf32>
    %88 = tpu.matmul %87, %85, %cst_91 {dimension_numbers = #tpu.dot_dimension_numbers<[1], [0], [0], [1], [0, 0, 1, 1], [], []>} : vector<4x4xf32>, vector<4x640xf32>, vector<4x640xf32> -> vector<4x640xf32>
    %89 = arith.addf %83, %88 : vector<4x640xf32>
    %c0_92 = arith.constant 0 : index
    %c0_93 = arith.constant 0 : index
    %c513 = arith.constant 513 : index
    %90 = vector.load %arg2[%c0_92, %c0_93, %c513] : memref<1x4x1292xf32, #tpu.memory_space<vmem>>, vector<1x4x640xf32>
    %91 = vector.shape_cast %90 : vector<1x4x640xf32> to vector<4x640xf32>
    %c1_94 = arith.constant 1 : index
    %c5_95 = arith.constant 5 : index
    %c0_96 = arith.constant 0 : index
    %c0_97 = arith.constant 0 : index
    %92 = vector.load %arg4[%c1_94, %c5_95, %c0_96, %c0_97] : memref<3x8x4x4xf32, #tpu.memory_space<vmem>>, vector<1x1x4x4xf32>
    %93 = vector.shape_cast %92 : vector<1x1x4x4xf32> to vector<4x4xf32>
    %cst_98 = arith.constant dense<0.000000e+00> : vector<4x640xf32>
    %94 = tpu.matmul %93, %91, %cst_98 {dimension_numbers = #tpu.dot_dimension_numbers<[1], [0], [0], [1], [0, 0, 1, 1], [], []>} : vector<4x4xf32>, vector<4x640xf32>, vector<4x640xf32> -> vector<4x640xf32>
    %95 = arith.addf %89, %94 : vector<4x640xf32>
    %c0_99 = arith.constant 0 : index
    %c0_100 = arith.constant 0 : index
    %c519 = arith.constant 519 : index
    %96 = vector.load %arg2[%c0_99, %c0_100, %c519] : memref<1x4x1292xf32, #tpu.memory_space<vmem>>, vector<1x4x640xf32>
    %97 = vector.shape_cast %96 : vector<1x4x640xf32> to vector<4x640xf32>
    %c1_101 = arith.constant 1 : index
    %c6_102 = arith.constant 6 : index
    %c0_103 = arith.constant 0 : index
    %c0_104 = arith.constant 0 : index
    %98 = vector.load %arg4[%c1_101, %c6_102, %c0_103, %c0_104] : memref<3x8x4x4xf32, #tpu.memory_space<vmem>>, vector<1x1x4x4xf32>
    %99 = vector.shape_cast %98 : vector<1x1x4x4xf32> to vector<4x4xf32>
    %cst_105 = arith.constant dense<0.000000e+00> : vector<4x640xf32>
    %100 = tpu.matmul %99, %97, %cst_105 {dimension_numbers = #tpu.dot_dimension_numbers<[1], [0], [0], [1], [0, 0, 1, 1], [], []>} : vector<4x4xf32>, vector<4x640xf32>, vector<4x640xf32> -> vector<4x640xf32>
    %101 = arith.addf %95, %100 : vector<4x640xf32>
    %c0_106 = arith.constant 0 : index
    %c0_107 = arith.constant 0 : index
    %c525 = arith.constant 525 : index
    %102 = vector.load %arg2[%c0_106, %c0_107, %c525] : memref<1x4x1292xf32, #tpu.memory_space<vmem>>, vector<1x4x640xf32>
    %103 = vector.shape_cast %102 : vector<1x4x640xf32> to vector<4x640xf32>
    %c1_108 = arith.constant 1 : index
    %c7_109 = arith.constant 7 : index
    %c0_110 = arith.constant 0 : index
    %c0_111 = arith.constant 0 : index
    %104 = vector.load %arg4[%c1_108, %c7_109, %c0_110, %c0_111] : memref<3x8x4x4xf32, #tpu.memory_space<vmem>>, vector<1x1x4x4xf32>
    %105 = vector.shape_cast %104 : vector<1x1x4x4xf32> to vector<4x4xf32>
    %cst_112 = arith.constant dense<0.000000e+00> : vector<4x640xf32>
    %106 = tpu.matmul %105, %103, %cst_112 {dimension_numbers = #tpu.dot_dimension_numbers<[1], [0], [0], [1], [0, 0, 1, 1], [], []>} : vector<4x4xf32>, vector<4x640xf32>, vector<4x640xf32> -> vector<4x640xf32>
    %107 = arith.addf %101, %106 : vector<4x640xf32>
    %c4_113 = arith.constant 4 : index
    %c0_114 = arith.constant 0 : index
    %108 = vector.load %arg8[%c4_113, %c0_114] : memref<16x640xf32, #tpu.memory_space<vmem>>, vector<4x640xf32>
    %109 = arith.addf %108, %107 : vector<4x640xf32>
    %c4_115 = arith.constant 4 : index
    %c0_116 = arith.constant 0 : index
    %110 = vector.load %arg8[%c4_115, %c0_116] : memref<16x640xf32, #tpu.memory_space<vmem>>, vector<4x640xf32>
    tpu.vector_store %arg8[%c4_115, %c0_116], %109 {strides = array<i32>} : memref<16x640xf32, #tpu.memory_space<vmem>>, vector<4x640xf32>,
    %111 = vector.extract_strided_slice %6 {offsets = [8, 0], sizes = [4, 640], strides = [1, 1]} : vector<16x640xf32> to vector<4x640xf32>
    %c0_117 = arith.constant 0 : index
    %c0_118 = arith.constant 0 : index
    %c0_119 = arith.constant 0 : index
    %112 = vector.load %arg2[%c0_117, %c0_118, %c0_119] : memref<1x4x1292xf32, #tpu.memory_space<vmem>>, vector<1x4x640xf32>
    %113 = vector.shape_cast %112 : vector<1x4x640xf32> to vector<4x640xf32>
    %c2_120 = arith.constant 2 : index
    %c0_121 = arith.constant 0 : index
    %c0_122 = arith.constant 0 : index
    %c0_123 = arith.constant 0 : index
    %114 = vector.load %arg4[%c2_120, %c0_121, %c0_122, %c0_123] : memref<3x8x4x4xf32, #tpu.memory_space<vmem>>, vector<1x1x4x4xf32>
    %115 = vector.shape_cast %114 : vector<1x1x4x4xf32> to vector<4x4xf32>
    %cst_124 = arith.constant dense<0.000000e+00> : vector<4x640xf32>
    %116 = tpu.matmul %115, %113, %cst_124 {dimension_numbers = #tpu.dot_dimension_numbers<[1], [0], [0], [1], [0, 0, 1, 1], [], []>} : vector<4x4xf32>, vector<4x640xf32>, vector<4x640xf32> -> vector<4x640xf32>
    %117 = arith.addf %111, %116 : vector<4x640xf32>
    %c0_125 = arith.constant 0 : index
    %c0_126 = arith.constant 0 : index
    %c9 = arith.constant 9 : index
    %118 = vector.load %arg2[%c0_125, %c0_126, %c9] : memref<1x4x1292xf32, #tpu.memory_space<vmem>>, vector<1x4x640xf32>
    %119 = vector.shape_cast %118 : vector<1x4x640xf32> to vector<4x640xf32>
    %c2_127 = arith.constant 2 : index
    %c1_128 = arith.constant 1 : index
    %c0_129 = arith.constant 0 : index
    %c0_130 = arith.constant 0 : index
    %120 = vector.load %arg4[%c2_127, %c1_128, %c0_129, %c0_130] : memref<3x8x4x4xf32, #tpu.memory_space<vmem>>, vector<1x1x4x4xf32>
    %121 = vector.shape_cast %120 : vector<1x1x4x4xf32> to vector<4x4xf32>
    %cst_131 = arith.constant dense<0.000000e+00> : vector<4x640xf32>
    %122 = tpu.matmul %121, %119, %cst_131 {dimension_numbers = #tpu.dot_dimension_numbers<[1], [0], [0], [1], [0, 0, 1, 1], [], []>} : vector<4x4xf32>, vector<4x640xf32>, vector<4x640xf32> -> vector<4x640xf32>
    %123 = arith.addf %117, %122 : vector<4x640xf32>
    %c0_132 = arith.constant 0 : index
    %c0_133 = arith.constant 0 : index
    %c18 = arith.constant 18 : index
    %124 = vector.load %arg2[%c0_132, %c0_133, %c18] : memref<1x4x1292xf32, #tpu.memory_space<vmem>>, vector<1x4x640xf32>
    %125 = vector.shape_cast %124 : vector<1x4x640xf32> to vector<4x640xf32>
    %c2_134 = arith.constant 2 : index
    %c2_135 = arith.constant 2 : index
    %c0_136 = arith.constant 0 : index
    %c0_137 = arith.constant 0 : index
    %126 = vector.load %arg4[%c2_134, %c2_135, %c0_136, %c0_137] : memref<3x8x4x4xf32, #tpu.memory_space<vmem>>, vector<1x1x4x4xf32>
    %127 = vector.shape_cast %126 : vector<1x1x4x4xf32> to vector<4x4xf32>
    %cst_138 = arith.constant dense<0.000000e+00> : vector<4x640xf32>
    %128 = tpu.matmul %127, %125, %cst_138 {dimension_numbers = #tpu.dot_dimension_numbers<[1], [0], [0], [1], [0, 0, 1, 1], [], []>} : vector<4x4xf32>, vector<4x640xf32>, vector<4x640xf32> -> vector<4x640xf32>
    %129 = arith.addf %123, %128 : vector<4x640xf32>
    %c0_139 = arith.constant 0 : index
    %c0_140 = arith.constant 0 : index
    %c306 = arith.constant 306 : index
    %130 = vector.load %arg2[%c0_139, %c0_140, %c306] : memref<1x4x1292xf32, #tpu.memory_space<vmem>>, vector<1x4x640xf32>
    %131 = vector.shape_cast %130 : vector<1x4x640xf32> to vector<4x640xf32>
    %c2_141 = arith.constant 2 : index
    %c3_142 = arith.constant 3 : index
    %c0_143 = arith.constant 0 : index
    %c0_144 = arith.constant 0 : index
    %132 = vector.load %arg4[%c2_141, %c3_142, %c0_143, %c0_144] : memref<3x8x4x4xf32, #tpu.memory_space<vmem>>, vector<1x1x4x4xf32>
    %133 = vector.shape_cast %132 : vector<1x1x4x4xf32> to vector<4x4xf32>
    %cst_145 = arith.constant dense<0.000000e+00> : vector<4x640xf32>
    %134 = tpu.matmul %133, %131, %cst_145 {dimension_numbers = #tpu.dot_dimension_numbers<[1], [0], [0], [1], [0, 0, 1, 1], [], []>} : vector<4x4xf32>, vector<4x640xf32>, vector<4x640xf32> -> vector<4x640xf32>
    %135 = arith.addf %129, %134 : vector<4x640xf32>
    %c0_146 = arith.constant 0 : index
    %c0_147 = arith.constant 0 : index
    %c324 = arith.constant 324 : index
    %136 = vector.load %arg2[%c0_146, %c0_147, %c324] : memref<1x4x1292xf32, #tpu.memory_space<vmem>>, vector<1x4x640xf32>
    %137 = vector.shape_cast %136 : vector<1x4x640xf32> to vector<4x640xf32>
    %c2_148 = arith.constant 2 : index
    %c4_149 = arith.constant 4 : index
    %c0_150 = arith.constant 0 : index
    %c0_151 = arith.constant 0 : index
    %138 = vector.load %arg4[%c2_148, %c4_149, %c0_150, %c0_151] : memref<3x8x4x4xf32, #tpu.memory_space<vmem>>, vector<1x1x4x4xf32>
    %139 = vector.shape_cast %138 : vector<1x1x4x4xf32> to vector<4x4xf32>
    %cst_152 = arith.constant dense<0.000000e+00> : vector<4x640xf32>
    %140 = tpu.matmul %139, %137, %cst_152 {dimension_numbers = #tpu.dot_dimension_numbers<[1], [0], [0], [1], [0, 0, 1, 1], [], []>} : vector<4x4xf32>, vector<4x640xf32>, vector<4x640xf32> -> vector<4x640xf32>
    %141 = arith.addf %135, %140 : vector<4x640xf32>
    %c0_153 = arith.constant 0 : index
    %c0_154 = arith.constant 0 : index
    %c612 = arith.constant 612 : index
    %142 = vector.load %arg2[%c0_153, %c0_154, %c612] : memref<1x4x1292xf32, #tpu.memory_space<vmem>>, vector<1x4x640xf32>
    %143 = vector.shape_cast %142 : vector<1x4x640xf32> to vector<4x640xf32>
    %c2_155 = arith.constant 2 : index
    %c5_156 = arith.constant 5 : index
    %c0_157 = arith.constant 0 : index
    %c0_158 = arith.constant 0 : index
    %144 = vector.load %arg4[%c2_155, %c5_156, %c0_157, %c0_158] : memref<3x8x4x4xf32, #tpu.memory_space<vmem>>, vector<1x1x4x4xf32>
    %145 = vector.shape_cast %144 : vector<1x1x4x4xf32> to vector<4x4xf32>
    %cst_159 = arith.constant dense<0.000000e+00> : vector<4x640xf32>
    %146 = tpu.matmul %145, %143, %cst_159 {dimension_numbers = #tpu.dot_dimension_numbers<[1], [0], [0], [1], [0, 0, 1, 1], [], []>} : vector<4x4xf32>, vector<4x640xf32>, vector<4x640xf32> -> vector<4x640xf32>
    %147 = arith.addf %141, %146 : vector<4x640xf32>
    %c0_160 = arith.constant 0 : index
    %c0_161 = arith.constant 0 : index
    %c621 = arith.constant 621 : index
    %148 = vector.load %arg2[%c0_160, %c0_161, %c621] : memref<1x4x1292xf32, #tpu.memory_space<vmem>>, vector<1x4x640xf32>
    %149 = vector.shape_cast %148 : vector<1x4x640xf32> to vector<4x640xf32>
    %c2_162 = arith.constant 2 : index
    %c6_163 = arith.constant 6 : index
    %c0_164 = arith.constant 0 : index
    %c0_165 = arith.constant 0 : index
    %150 = vector.load %arg4[%c2_162, %c6_163, %c0_164, %c0_165] : memref<3x8x4x4xf32, #tpu.memory_space<vmem>>, vector<1x1x4x4xf32>
    %151 = vector.shape_cast %150 : vector<1x1x4x4xf32> to vector<4x4xf32>
    %cst_166 = arith.constant dense<0.000000e+00> : vector<4x640xf32>
    %152 = tpu.matmul %151, %149, %cst_166 {dimension_numbers = #tpu.dot_dimension_numbers<[1], [0], [0], [1], [0, 0, 1, 1], [], []>} : vector<4x4xf32>, vector<4x640xf32>, vector<4x640xf32> -> vector<4x640xf32>
    %153 = arith.addf %147, %152 : vector<4x640xf32>
    %c0_167 = arith.constant 0 : index
    %c0_168 = arith.constant 0 : index
    %c630 = arith.constant 630 : index
    %154 = vector.load %arg2[%c0_167, %c0_168, %c630] : memref<1x4x1292xf32, #tpu.memory_space<vmem>>, vector<1x4x640xf32>
    %155 = vector.shape_cast %154 : vector<1x4x640xf32> to vector<4x640xf32>
    %c2_169 = arith.constant 2 : index
    %c7_170 = arith.constant 7 : index
    %c0_171 = arith.constant 0 : index
    %c0_172 = arith.constant 0 : index
    %156 = vector.load %arg4[%c2_169, %c7_170, %c0_171, %c0_172] : memref<3x8x4x4xf32, #tpu.memory_space<vmem>>, vector<1x1x4x4xf32>
    %157 = vector.shape_cast %156 : vector<1x1x4x4xf32> to vector<4x4xf32>
    %cst_173 = arith.constant dense<0.000000e+00> : vector<4x640xf32>
    %158 = tpu.matmul %157, %155, %cst_173 {dimension_numbers = #tpu.dot_dimension_numbers<[1], [0], [0], [1], [0, 0, 1, 1], [], []>} : vector<4x4xf32>, vector<4x640xf32>, vector<4x640xf32> -> vector<4x640xf32>
    %159 = arith.addf %153, %158 : vector<4x640xf32>
    %c8 = arith.constant 8 : index
    %c0_174 = arith.constant 0 : index
    %160 = vector.load %arg8[%c8, %c0_174] : memref<16x640xf32, #tpu.memory_space<vmem>>, vector<4x640xf32>
    %161 = arith.addf %160, %159 : vector<4x640xf32>
    %c8_175 = arith.constant 8 : index
    %c0_176 = arith.constant 0 : index
    %162 = vector.load %arg8[%c8_175, %c0_176] : memref<16x640xf32, #tpu.memory_space<vmem>>, vector<4x640xf32>
    tpu.vector_store %arg8[%c8_175, %c0_176], %161 {strides = array<i32>} : memref<16x640xf32, #tpu.memory_space<vmem>>, vector<4x640xf32>,
    %c12 = arith.constant 12 : index
    %c0_177 = arith.constant 0 : index
    %163 = vector.load %arg8[%c12, %c0_177] : memref<16x640xf32, #tpu.memory_space<vmem>>, vector<4x640xf32>
    %164 = vector.extract_strided_slice %6 {offsets = [12, 0], sizes = [4, 640], strides = [1, 1]} : vector<16x640xf32> to vector<4x640xf32>
    %165 = arith.addf %163, %164 : vector<4x640xf32>
    %c12_178 = arith.constant 12 : index
    %c0_179 = arith.constant 0 : index
    %166 = vector.load %arg8[%c12_178, %c0_179] : memref<16x640xf32, #tpu.memory_space<vmem>>, vector<4x640xf32>
    tpu.vector_store %arg8[%c12_178, %c0_179], %165 {strides = array<i32>} : memref<16x640xf32, #tpu.memory_space<vmem>>, vector<4x640xf32>,
    %c0_i32_180 = arith.constant 0 : i32
    %167 = arith.cmpi eq, %arg1, %c0_i32_180 : i32
    %168 = arith.extui %167 : i1 to i32
    %c0_i32_181 = arith.constant 0 : i32
    %169 = arith.cmpi ne, %168, %c0_i32_181 : i32
    scf.if %169 {
      %c0_182 = arith.constant 0 : index
      %c0_183 = arith.constant 0 : index
      %170 = vector.load %arg8[%c0_182, %c0_183] : memref<16x640xf32, #tpu.memory_space<vmem>>, vector<4x640xf32>
      %c0_184 = arith.constant 0 : index
      %c0_185 = arith.constant 0 : index
      %c0_186 = arith.constant 0 : index
      %171 = vector.load %arg5[%c0_184, %c0_185, %c0_186] : memref<3x4x1xf32, #tpu.memory_space<vmem>>, vector<1x4x1xf32>
      %172 = vector.shape_cast %171 : vector<1x4x1xf32> to vector<4x1xf32>
      %173 = vector.broadcast %172 : vector<4x1xf32> to vector<4x640xf32>
      %174 = arith.addf %170, %173 : vector<4x640xf32>
      %c0_187 = arith.constant 0 : index
      %c0_188 = arith.constant 0 : index
      %175 = vector.load %arg8[%c0_187, %c0_188] : memref<16x640xf32, #tpu.memory_space<vmem>>, vector<4x640xf32>
      tpu.vector_store %arg8[%c0_187, %c0_188], %174 {strides = array<i32>} : memref<16x640xf32, #tpu.memory_space<vmem>>, vector<4x640xf32>,
      %c4_189 = arith.constant 4 : index
      %c0_190 = arith.constant 0 : index
      %176 = vector.load %arg8[%c4_189, %c0_190] : memref<16x640xf32, #tpu.memory_space<vmem>>, vector<4x640xf32>
      %c1_191 = arith.constant 1 : index
      %c0_192 = arith.constant 0 : index
      %c0_193 = arith.constant 0 : index
      %177 = vector.load %arg5[%c1_191, %c0_192, %c0_193] : memref<3x4x1xf32, #tpu.memory_space<vmem>>, vector<1x4x1xf32>
      %178 = vector.shape_cast %177 : vector<1x4x1xf32> to vector<4x1xf32>
      %179 = vector.broadcast %178 : vector<4x1xf32> to vector<4x640xf32>
      %180 = arith.addf %176, %179 : vector<4x640xf32>
      %c4_194 = arith.constant 4 : index
      %c0_195 = arith.constant 0 : index
      %181 = vector.load %arg8[%c4_194, %c0_195] : memref<16x640xf32, #tpu.memory_space<vmem>>, vector<4x640xf32>
      tpu.vector_store %arg8[%c4_194, %c0_195], %180 {strides = array<i32>} : memref<16x640xf32, #tpu.memory_space<vmem>>, vector<4x640xf32>,
      %c8_196 = arith.constant 8 : index
      %c0_197 = arith.constant 0 : index
      %182 = vector.load %arg8[%c8_196, %c0_197] : memref<16x640xf32, #tpu.memory_space<vmem>>, vector<4x640xf32>
      %c2_198 = arith.constant 2 : index
      %c0_199 = arith.constant 0 : index
      %c0_200 = arith.constant 0 : index
      %183 = vector.load %arg5[%c2_198, %c0_199, %c0_200] : memref<3x4x1xf32, #tpu.memory_space<vmem>>, vector<1x4x1xf32>
      %184 = vector.shape_cast %183 : vector<1x4x1xf32> to vector<4x1xf32>
      %185 = vector.broadcast %184 : vector<4x1xf32> to vector<4x640xf32>
      %186 = arith.addf %182, %185 : vector<4x640xf32>
      %c8_201 = arith.constant 8 : index
      %c0_202 = arith.constant 0 : index
      %187 = vector.load %arg8[%c8_201, %c0_202] : memref<16x640xf32, #tpu.memory_space<vmem>>, vector<4x640xf32>
      tpu.vector_store %arg8[%c8_201, %c0_202], %186 {strides = array<i32>} : memref<16x640xf32, #tpu.memory_space<vmem>>, vector<4x640xf32>,
      %c12_203 = arith.constant 12 : index
      %c0_204 = arith.constant 0 : index
      %188 = vector.load %arg8[%c12_203, %c0_204] : memref<16x640xf32, #tpu.memory_space<vmem>>, vector<4x640xf32>
      %cst_205 = arith.constant dense<0.000000e+00> : vector<4xf32>
      %189 = vector.multi_reduction <add>, %188, %cst_205 [1] : vector<4x640xf32> to vector<4xf32>
      %190 = vector.shape_cast %189 : vector<4xf32> to vector<4x1xf32>
      %cst_206 = arith.constant 3.906250e-03 : f32
      %191 = vector.broadcast %cst_206 : f32 to vector<4x1xf32>
      %192 = arith.mulf %190, %191 : vector<4x1xf32>
      %c0_207 = arith.constant 0 : index
      %c0_208 = arith.constant 0 : index
      %193 = vector.load %arg6[%c0_207, %c0_208] : memref<4x1xf32, #tpu.memory_space<vmem>>, vector<4x1xf32>
      %194 = arith.addf %192, %193 : vector<4x1xf32>
      %cst_209 = arith.constant 0.000000e+00 : f32
      %195 = vector.broadcast %cst_209 : f32 to vector<4x1xf32>
      %196 = arith.maximumf %194, %195 : vector<4x1xf32>
      %197 = vector.shape_cast %196 : vector<4x1xf32> to vector<4x1xf32>
      %198 = vector.broadcast %197 : vector<4x1xf32> to vector<4x640xf32>
      %c12_210 = arith.constant 12 : index
      %c0_211 = arith.constant 0 : index
      %199 = vector.load %arg8[%c12_210, %c0_211] : memref<16x640xf32, #tpu.memory_space<vmem>>, vector<4x640xf32>
      tpu.vector_store %arg8[%c12_210, %c0_211], %198 {strides = array<i32>} : memref<16x640xf32, #tpu.memory_space<vmem>>, vector<4x640xf32>,
      %c0_212 = arith.constant 0 : index
      %c0_213 = arith.constant 0 : index
      %200 = vector.load %arg8[%c0_212, %c0_213] : memref<16x640xf32, #tpu.memory_space<vmem>>, vector<16x640xf32>
      %c0_214 = arith.constant 0 : index
      %c0_215 = arith.constant 0 : index
      %c0_216 = arith.constant 0 : index
      %201 = vector.load %arg7[%c0_214, %c0_215, %c0_216] : memref<1x16x640xf32, #tpu.memory_space<vmem>>, vector<1x16x640xf32>
      %202 = vector.shape_cast %201 : vector<1x16x640xf32> to vector<16x640xf32>
      %203 = vector.shape_cast %200 : vector<16x640xf32> to vector<1x16x640xf32>
      tpu.vector_store %arg7[%c0_214, %c0_215, %c0_216], %203 {strides = array<i32>} : memref<1x16x640xf32, #tpu.memory_space<vmem>>, vector<1x16x640xf32>,
    } else {
    }
    return
  }
  func.func @transform_0(%arg0: i32, %arg1: i32) -> (i32, i32, i32) {
    %c0_i32 = arith.constant 0 : i32
    %c0_i32_0 = arith.constant 0 : i32
    return %arg0, %arg1, %c0_i32 : i32, i32, i32
  }
  func.func @transform_1(%arg0: i32, %arg1: i32) -> (i32, i32) {
    %c0_i32 = arith.constant 0 : i32
    %c0_i32_0 = arith.constant 0 : i32
    return %c0_i32, %arg1 : i32, i32
  }
  func.func @transform_2(%arg0: i32, %arg1: i32) -> (i32, i32, i32, i32) {
    %c0_i32 = arith.constant 0 : i32
    %c0_i32_0 = arith.constant 0 : i32
    %c0_i32_1 = arith.constant 0 : i32
    %c0_i32_2 = arith.constant 0 : i32
    return %c0_i32, %c0_i32_0, %c0_i32_1, %arg1 : i32, i32, i32, i32
  }
  func.func @transform_3(%arg0: i32, %arg1: i32) -> (i32, i32, i32) {
    %c0_i32 = arith.constant 0 : i32
    %c0_i32_0 = arith.constant 0 : i32
    %c0_i32_1 = arith.constant 0 : i32
    %c0_i32_2 = arith.constant 0 : i32
    return %c0_i32, %c0_i32_0, %c0_i32_1 : i32, i32, i32
  }
  func.func @transform_4(%arg0: i32, %arg1: i32) -> (i32, i32) {
    %c0_i32 = arith.constant 0 : i32
    %c0_i32_0 = arith.constant 0 : i32
    %c0_i32_1 = arith.constant 0 : i32
    return %c0_i32, %c0_i32_0 : i32, i32
  }
  func.func @transform_5(%arg0: i32, %arg1: i32) -> (i32, i32, i32) {
    %c0_i32 = arith.constant 0 : i32
    %c0_i32_0 = arith.constant 0 : i32
    %c0_i32_1 = arith.constant 0 : i32
    return %arg0, %c0_i32, %c0_i32_0 : i32, i32, i32
  }
}

</mosaic_0001>

<bundles_post_ra>
// kernel: tpu_custom_call.1
= control target key start
LH: loop header
LB: loop body
LE: loop exit
PB: predicated region body
PF: predicated region fallthrough
CT: control target
= control target key end

     0   :  { %10 = vsyncpa [#allocation4], 0  ;;  %s8884_s0 = inlined_call_operand.vmem [shape: f32[2,4,1292], index: 0, kind: input, shape index: {}]   ;;  %s8885_s1 = inlined_call_operand.vmem [shape: f32[16,4], index: 1, kind: input, shape index: {}]   ;;  %s8886_s2 = inlined_call_operand.vmem [shape: f32[3,8,4,4], index: 2, kind: input, shape index: {}]   ;;  %s8887_s3 = inlined_call_operand.vmem [shape: f32[3,4,1], index: 3, kind: input, shape index: {}]   ;;  %s8888_s4 = inlined_call_operand.vmem [shape: f32[4,1], index: 4, kind: input, shape index: {}]   ;;  %s8889_s5 = inlined_call_operand.hbm [shape: f32[2,16,640], index: 5, kind: output, shape index: {}]  }
   0x1   :  { %12 = vsyncpa [#allocation4 + $0x1], 0  ;;  %s7915_s18 = smov 0   ;;  %s7917_s19 = smov 0  }
   0x2   :  { %s7919_s20 = smov 0   ;;  %s7921_s21 = smov 0  }
   0x3   :  { %s7923_s22 = smov 0   ;;  %s7925_s23 = smov 0  }
   0x4 LB: > { %s7195_s24 = sadd.s32 4294967295, %s7854_s23   ;;  %s7196_s25 = sadd.s32 4294967294, %s7854_s23   ;;  %s7854_s23 = sphi %s7925_s23, %s18_s23   ;;  %s7850_s22 = sphi %s7923_s22, %s8896_s22   ;;  %s7846_s21 = sphi %s7921_s21, %s8895_s21   ;;  %s7842_s20 = sphi %s7919_s20, %s8894_s20   ;;  %s7838_s19 = sphi %s7917_s19, %s8893_s19   ;;  %s7834_s18 = sphi %s7915_s18, %s8892_s18  }
   0x5   : > { %s30_s26 = sadd.s32 1, %s7850_s22  ;;  %s159_s27 = sadd.s32 1, %s7842_s20 }
   0x6   : > { %p32_p0 = scmp.ge.s32.totalorder %s30_s26, 2  ;;  %p169_p1 = scmp.ne.s32.totalorder %s7842_s20, %s7838_s19 }
   0x7   : > { %p170_p2 = scmp.eq.s32.totalorder %s7195_s24, 1  ;;  %p175_p3 = scmp.ne.s32.totalorder %s7838_s19, %s7834_s18 }
   0x8   : > { %s8898_s26 = smov (%p32_p0, %s30_s26), 0  ;;  %p176_p5 = scmp.eq.s32.totalorder %s7196_s25, 1 }
   0x9   : > { %p7955_p4 = por %p170_p2, %p169_p1  ;;  %s156_s29 = ssub.s32 %s7850_s22, %s8898_s26 }
   0xa   : > { %p7201_p6 = scmp.ge.s32.totalorder %s7854_s23, 1  ;;  %p157_p7 = scmp.eq.s32.totalorder %s156_s29, 0 }
   0xb   : > { %p7962_p8 = por %p176_p5, %p175_p3  ;;  %p226_p9 = scmp.lt.s32.totalorder %s7854_s23, 3 }
   0xc   : > { %s7968_s6 = scalar_select %p157_p7, %s7842_s20, %s159_s27  }
   0xd   : > { %p227_p10 = pnand %p7201_p6, %p226_p9 }
   0xe   : > { %p266_p11 = scmp.lt.s32.totalorder (!%p227_p10), %s7846_s21, 1  ;;  %v7856_v0 = vmov (!%p227_p10), 0.0   ;;  %s7857_s12 = smov (!%p227_p10), 69   ;;  %vm320_vm0 = vcmask (!%p227_p10), 564224   ;;  %vm333_vm1 = vcmask (!%p227_p10), 1043456   ;;  %v300_v23 = vld [vmem:[%s8885_s1] sm:$0xff] (!%p227_p10) }
   0xf   : > { %230 = sbr.rel (%p227_p10) target bundleno = 689 (0x2b1), region = 40  ;;  %408 = vmatprep.mubr.f32.mxu0 (!%p227_p10), %v7856_v0  ;;  %287 = vst [vmem:[#allocation2] sm:$0xff] (!%p227_p10), %v7856_v0  ;;  %288 = vst [vmem:[#allocation2 + $0x8] sm:$0xff] (!%p227_p10), %v7856_v0  ;;  %485 = vmatprep.mubr.f32.mxu1 (!%p227_p10), %v7856_v0  ;;  %s7858_s13 = smov (!%p227_p10), 46   ;;  %vm326_vm2 = vcmask (!%p227_p10), 31744   ;;  %vm595_vm3 = vcmask (!%p227_p10), 375808  }
  0x10   : > { %289 = vst [vmem:[#allocation2 + $0x10] sm:$0xff] (!%p227_p10), %v7856_v0  ;;  %290 = vst [vmem:[#allocation2 + $0x18] sm:$0xff] (!%p227_p10), %v7856_v0  ;;  %s7859_s14 = smov (!%p227_p10), 43   ;;  %s7860_s15 = smov (!%p227_p10), 40   ;;  %v301_v29 = vld [vmem:[%s8885_s1 + $0x8] sm:$0xff] (!%p227_p10)  ;;  %vm854_vm4 = vcmask (!%p227_p10), 351232  }
  0x11   : > { %291 = vst [vmem:[#allocation2 + $0x20] sm:$0xff] (!%p227_p10), %v7856_v0  ;;  %292 = vst [vmem:[#allocation2 + $0x28] sm:$0xff] (!%p227_p10), %v7856_v0  ;;  %s7861_s16 = smov (!%p227_p10), 72   ;;  %s7862_s17 = smov (!%p227_p10), 66   ;;  %v576_v37 = vld [vmem:[%s8886_s2] sm:$0xf] (!%p227_p10) }
  0x12   : > { %293 = vst [vmem:[#allocation2 + $0x30] sm:$0xff] (!%p227_p10), %v7856_v0  ;;  %294 = vst [vmem:[#allocation2 + $0x38] sm:$0xff] (!%p227_p10), %v7856_v0  ;;  %s7863_s24 = smov (!%p227_p10), 98   ;;  %s7864_s25 = smov (!%p227_p10), 95   ;;  %vm7869_vm5 = vmmov (!%p227_p10), 0   ;;  %vm1113_vm6 = vcmask (!%p227_p10), 326656  }
  0x13   : > { %295 = vst [vmem:[#allocation2 + $0x40] sm:$0xff] (!%p227_p10), %v7856_v0  ;;  %296 = vst [vmem:[#allocation2 + $0x48] sm:$0xff] (!%p227_p10), %v7856_v0  ;;  %s7865_s27 = smov (!%p227_p10), 92   ;;  %s7866_s29 = smov (!%p227_p10), 23   ;;  %v7222_v45 = vld [vmem:[%s8886_s2 + $0x4] sm:$0xf] (!%p227_p10) }
  0x14   : > { %v7231_v61 = vld [vmem:[%s8886_s2 + $0x8] sm:$0xf] (!%p227_p10)  ;;  %vm1372_vm7 = vcmask (!%p227_p10), 588800   ;;  %s7872_s10 = smov (!%p227_p10), 127   ;;  %vm1631_vm8 = vcmask (!%p227_p10), 539648   ;;  %vm1890_vm9 = vcmask (!%p227_p10), 801792  }
  0x15   : > { %vm2149_vm10 = vcmask (!%p227_p10), 777216   ;;  %vm2408_vm11 = vcmask (!%p227_p10), 752640   ;;  %s7877_s9 = smov (!%p227_p10), 110   ;;  %vm2682_vm12 = vcmask (!%p227_p10), 187392   ;;  %vm2956_vm13 = vcmask (!%p227_p10), 138240  }
  0x16   : > { %s267_s7 = scalar_select %p266_p11, %s7846_s21, 1  ;;  %vm3230_vm14 = vcmask 89088   ;;  %vm3504_vm15 = vcmask 613376  }
  0x18   : > { %s7675_s8 = smul.u32 44, %s267_s7  ;;  %s7867_s7 = smov 17  }
  0x1a   : > { %s7987_s11 = scalar_lea.vmem %s8884_s0, %s7675_s8  ;;  %s7881_s8 = smov 19  }
  0x1b   : > { %v7990_v1 = vld [vmem:[%s7987_s11 + $0x10] sm:$0xff]  ;;  %v7993_v2 = vld [vmem:[%s7987_s11 + $0x8] sm:$0xff]  ;;  %v8002_v4 = vld [vmem:[%s7987_s11 + $0x18] sm:$0xff] }
  0x1c   : > { %312 = vrot.lane.b32.xlu0 %v7990_v1, %s7857_s12  ;;  %308 = vrot.lane.b32.xlu1 %v7993_v2, %s7857_s12  ;;  %v7999_v3 = vcombine.high %v7993_v2, %v7993_v2  ;;  %v8006_v5 = vcombine.high %v7990_v1, %v7990_v1  ;;  %v8010_v6 = vcombine.high %v8002_v4, %v8002_v4  ;;  %v8015_v7 = vld [vmem:[%s7987_s11 + $0xc] sm:$0xff]  ;;  %v575_v9 = vld [vmem:[%s7987_s11 + $0x14] sm:$0xff] }
  0x1d   : > { %v581_v8 = vcombine.high %v8015_v7, %v8015_v7  ;;  %v573_v10 = vld [vmem:[%s7987_s11 + $0x4] sm:$0xff]  ;;  %v582_v12 = vcombine.high %v575_v9, %v575_v9  ;;  %v1869_v13 = vld [vmem:[%s7987_s11 + $0x1c] sm:$0xff] }
  0x1e   : > { %v580_v11 = vcombine.high %v573_v10, %v573_v10  ;;  %v1877_v14 = vcombine.high %v1869_v13, %v1869_v13  ;;  %v8049_v15 = vld [vmem:[%s7987_s11] sm:$0xff] }
  0x1f   : > { %v8057_v16 = vcombine.high %v8049_v15, %v8049_v15 }
  0x20   : > { %316 = vrot.lane.b32.xlu1 %v8002_v4, %s7857_s12  ;;  %310 = vrot.lane.b32.xlu0 %v7999_v3, %s7857_s12 }
  0x24   : > { %314 = vrot.lane.b32.xlu1 %v8006_v5, %s7857_s12  ;;  %318 = vrot.lane.b32.xlu0 %v8010_v6, %s7857_s12  ;;  %s7882_s12 = smov 10  }
  0x28   : > { %591 = vrot.lane.b32.xlu1 %v575_v9, %s7858_s13  ;;  %589 = vrot.lane.b32.xlu0 %v581_v8, %s7858_s13 }
  0x2c   : > { %585 = vrot.lane.b32.xlu1 %v580_v11, %s7858_s13  ;;  %587 = vrot.lane.b32.xlu0 %v8015_v7, %s7858_s13 }
  0x30   : > { %848 = vrot.lane.b32.xlu1 %v581_v8, %s7859_s14  ;;  %583 = vrot.lane.b32.xlu0 %v573_v10, %s7858_s13 }
  0x34   : > { %846 = vrot.lane.b32.xlu1 %v8015_v7, %s7859_s14  ;;  %850 = vrot.lane.b32.xlu0 %v575_v9, %s7859_s14 }
  0x38   : > { %852 = vrot.lane.b32.xlu1 %v582_v12, %s7859_s14  ;;  %593 = vrot.lane.b32.xlu0 %v582_v12, %s7858_s13  ;;  %s7868_s13 = smov 11  }
  0x3c   : > { %842 = vrot.lane.b32.xlu1 %v573_v10, %s7859_s14  ;;  %844 = vrot.lane.b32.xlu0 %v580_v11, %s7859_s14  ;;  %s7874_s14 = smov 121  }
  0x40   : > { %1109 = vrot.lane.b32.xlu1 %v575_v9, %s7860_s15  ;;  %1107 = vrot.lane.b32.xlu0 %v581_v8, %s7860_s15 }
  0x44   : > { %1103 = vrot.lane.b32.xlu1 %v580_v11, %s7860_s15  ;;  %1105 = vrot.lane.b32.xlu0 %v8015_v7, %s7860_s15 }
  0x48   : > { %1366 = vrot.lane.b32.xlu1 %v8006_v5, %s7861_s16  ;;  %1101 = vrot.lane.b32.xlu0 %v573_v10, %s7860_s15 }
  0x4c   : > { %1364 = vrot.lane.b32.xlu1 %v7990_v1, %s7861_s16  ;;  %1368 = vrot.lane.b32.xlu0 %v8002_v4, %s7861_s16 }
  0x50   : > { %1370 = vrot.lane.b32.xlu1 %v8010_v6, %s7861_s16  ;;  %1111 = vrot.lane.b32.xlu0 %v582_v12, %s7860_s15 }
  0x54   : > { %1360 = vrot.lane.b32.xlu1 %v7993_v2, %s7861_s16  ;;  %1362 = vrot.lane.b32.xlu0 %v7999_v3, %s7861_s16  ;;  %s263_s16 = sand.u32 1, %s7838_s19  }
  0x58   : > { %1627 = vrot.lane.b32.xlu1 %v8002_v4, %s7862_s17  ;;  %1625 = vrot.lane.b32.xlu0 %v8006_v5, %s7862_s17 }
  0x5c   : > { %1621 = vrot.lane.b32.xlu1 %v7999_v3, %s7862_s17  ;;  %1623 = vrot.lane.b32.xlu0 %v7990_v1, %s7862_s17 }
  0x60   : > { %1884 = vrot.lane.b32.xlu1 %v582_v12, %s7863_s24  ;;  %1619 = vrot.lane.b32.xlu0 %v7993_v2, %s7862_s17 }
  0x64   : > { %1882 = vrot.lane.b32.xlu1 %v575_v9, %s7863_s24  ;;  %1886 = vrot.lane.b32.xlu0 %v1869_v13, %s7863_s24 }
  0x68   : > { %1888 = vrot.lane.b32.xlu1 %v1877_v14, %s7863_s24  ;;  %1629 = vrot.lane.b32.xlu0 %v8010_v6, %s7862_s17  ;;  %s7870_s17 = smov 75  }
  0x6c   : > { %1878 = vrot.lane.b32.xlu1 %v8015_v7, %s7863_s24  ;;  %1880 = vrot.lane.b32.xlu0 %v581_v8, %s7863_s24  ;;  %s7875_s24 = smov 115  }
  0x70   : > { %2145 = vrot.lane.b32.xlu1 %v1869_v13, %s7864_s25  ;;  %2143 = vrot.lane.b32.xlu0 %v582_v12, %s7864_s25 }
  0x74   : > { %2139 = vrot.lane.b32.xlu1 %v581_v8, %s7864_s25  ;;  %2141 = vrot.lane.b32.xlu0 %v575_v9, %s7864_s25 }
  0x78   : > { %2402 = vrot.lane.b32.xlu1 %v582_v12, %s7865_s27  ;;  %2137 = vrot.lane.b32.xlu0 %v8015_v7, %s7864_s25  ;;  %v7240_v12 = vld [vmem:[%s8886_s2 + $0xc] sm:$0xf] }
  0x7c   : > { %2400 = vrot.lane.b32.xlu1 %v575_v9, %s7865_s27  ;;  %2404 = vrot.lane.b32.xlu0 %v1869_v13, %s7865_s27 }
  0x80   : > { %2406 = vrot.lane.b32.xlu1 %v1877_v14, %s7865_s27  ;;  %2147 = vrot.lane.b32.xlu0 %v1877_v14, %s7864_s25  ;;  %s7676_s25 = smul.u32 1280, %s7846_s21  ;;  %s8837_s21 = scalar_lea.sflag [#allocation4], %s263_s16 }
  0x84   : > { %2396 = vrot.lane.b32.xlu1 %v8015_v7, %s7865_s27  ;;  %2398 = vrot.lane.b32.xlu0 %v581_v8, %s7865_s27  ;;  %s7880_s27 = smov 28  }
  0x88   : > { %2678 = vrot.lane.b32.xlu1 %v7990_v1, %s7866_s29  ;;  %2676 = vrot.lane.b32.xlu0 %v7999_v3, %s7866_s29 }
  0x8c   : > { %2672 = vrot.lane.b32.xlu1 %v8057_v16, %s7866_s29  ;;  %2674 = vrot.lane.b32.xlu0 %v7993_v2, %s7866_s29 }
  0x8e   : > { %v313_v17 = vpop.permute.xlu0 %312  ;;  %v309_v18 = vpop.permute.xlu1 %308 }
  0x90   : > { %2946 = vrot.lane.b32.xlu1 %v8057_v16, %s7867_s7  ;;  %2670 = vrot.lane.b32.xlu0 %v8049_v15, %s7866_s29 }
  0x92   : > { %v317_v19 = vpop.permute.xlu1 %316  ;;  %v311_v20 = vpop.permute.xlu0 %310 }
  0x93   : > { %v322_v21 = vsel %vm320_vm0, %v311_v20, %v313_v17  ;;  %v321_v22 = vsel %vm320_vm0, %v309_v18, %v311_v20 }
  0x94   : > { %2944 = vrot.lane.b32.xlu1 %v8049_v15, %s7867_s7  ;;  %2948 = vrot.lane.b32.xlu0 %v7993_v2, %s7867_s7 }
  0x95   : > { %7203 = vmatprep.subr.msk.mxu0 %vm333_vm1, %v322_v21 }
  0x96   : > { %7204 = vmatpush1.msk.msra.mxu0 %vm333_vm1, %v321_v22  ;;  %v315_v24 = vpop.permute.xlu1 %314  ;;  %v319_v25 = vpop.permute.xlu0 %318 }
  0x97   : > { %7205 = vmatmul.mubr.msk.f32.vlgmr.msra.gmra.mrb[0].mxu0 %vm326_vm2, %v300_v23  ;;  %v325_v26 = vsel %vm320_vm0, %v317_v19, %v319_v25  ;;  %v324_v27 = vsel %vm320_vm0, %v315_v24, %v317_v19  ;;  %v323_v28 = vsel %vm320_vm0, %v313_v17, %v315_v24  ;;  %v8221_v19 = vld [vmem:[%s7987_s11 + $0x20] sm:$0xff]  ;;  %vm3778_vm0 = vcmask 515072  }
  0x98   : > { %2952 = vrot.lane.b32.xlu1 %v7990_v1, %s7867_s7  ;;  %7207 = vmatprep.subr.msk.mxu1 %vm333_vm1, %v324_v27  ;;  %v8234_v24 = vcombine.high %v8221_v19, %v8221_v19 }
  0x99   : > { %2680 = vrot.lane.b32.xlu0 %v8006_v5, %s7866_s29  ;;  %7485 = vmatprep.subr.msk.mxu0 %vm333_vm1, %v325_v26  ;;  %s7876_s29 = smov 119  }
  0x9a   : > { %414 = vmatprep.mubr.f32.mxu0 %v7856_v0  ;;  %7208 = vmatpush1.msk.msra.mxu1 %vm333_vm1, %v323_v28  ;;  %v592_v30 = vpop.permute.xlu1 %591  ;;  %v590_v31 = vpop.permute.xlu0 %589 }
  0x9b   : > { %7486 = vmatpush3.msk.msra.mxu0 %vm333_vm1, %v325_v26  ;;  %7209 = vmatmul.mubr.msk.f32.vlgmr.msra.gmra.mrb[0].mxu1 %vm326_vm2, %v300_v23  ;;  %v599_v32 = vsel %vm595_vm3, %v590_v31, %v592_v30 }
  0x9c   : > { %7206 = vmatmul.mubr.msk.f32.gmra.mrb[2].mxu0 %vm326_vm2, %v301_v29  ;;  %2950 = vrot.lane.b32.xlu1 %v7999_v3, %s7867_s7 }
  0x9d   : > { %2954 = vrot.lane.b32.xlu0 %v8006_v5, %s7867_s7  ;;  %491 = vmatprep.mubr.f32.mxu1 %v7856_v0  ;;  %s7871_s7 = smov 63  }
  0x9e   : > { %7217 = vmatprep.subr.msk.mxu0 %vm333_vm1, %v599_v32  ;;  %v586_v33 = vpop.permute.xlu1 %585  ;;  %7487 = vmatprep.mubr.msk.f32.mxu0 %vm326_vm2, %v300_v23  ;;  %v588_v34 = vpop.permute.xlu0 %587 }
  0x9f   : > { %7210 = vmatmul.mubr.msk.f32.gmra.mrb[2].mxu1 %vm326_vm2, %v301_v29  ;;  %v598_v35 = vsel %vm595_vm3, %v588_v34, %v590_v31  ;;  %v597_v36 = vsel %vm595_vm3, %v586_v33, %v588_v34 }
  0xa0   : > { %7488 = vmatmul.mubr.msk.f32.vlgmr.msra.gmra.mrb[4].mxu0 %vm326_vm2, %v301_v29  ;;  %3226 = vrot.lane.b32.xlu1 %v7990_v1, %s7868_s13 }
  0xa1   : > { %3224 = vrot.lane.b32.xlu0 %v7999_v3, %s7868_s13  ;;  %7218 = vmatpush1.msk.msra.mxu0 %vm333_vm1, %v598_v35 }
  0xa2   : > { %7214 = vmatprep.subr.msk.mxu1 %vm333_vm1, %v597_v36  ;;  %v849_v38 = vpop.permute.xlu1 %848  ;;  %749 = vmatprep.mubr.f32.mxu0 %v7856_v0  ;;  %v584_v39 = vpop.permute.xlu0 %583 }
  0xa3   : > { %v596_v40 = vsel %vm595_vm3, %v584_v39, %v586_v33  ;;  %678 = vmatprep.mubr.f32.mxu1 %v7856_v0  ;;  %v7249_v33 = vld [vmem:[%s8886_s2 + $0x10] sm:$0xf] }
  0xa4   : > { %7219 = vmatmul.mubr.msk.f32.vlgmr.msra.gmra.mrb[6].mxu0 %vm326_vm2, %v576_v37  ;;  %3220 = vrot.lane.b32.xlu1 %v8057_v16, %s7868_s13 }
  0xa5   : > { %3222 = vrot.lane.b32.xlu0 %v7993_v2, %s7868_s13  ;;  %7215 = vmatpush1.msk.msra.mxu1 %vm333_vm1, %v596_v40 }
  0xa6   : > { %v847_v41 = vpop.permute.xlu1 %846  ;;  %v851_v42 = vpop.permute.xlu0 %850  ;;  %7216 = vmatmul.mubr.msk.f32.vlgmr.msra.gmra.mrb[4].mxu1 %vm326_vm2, %v576_v37  ;;  %1008 = vmatprep.mubr.f32.mxu0 %v7856_v0 }
  0xa7   : > { %v857_v43 = vsel %vm854_vm4, %v847_v41, %v849_v38  ;;  %v858_v44 = vsel %vm854_vm4, %v849_v38, %v851_v42  ;;  %7490 = vmatprep.subr.mxu1 %v7856_v0  ;;  %7492 = vmatprep.mubr.msk.f32.mxu1 %vm7869_vm5, %v7856_v0 }
  0xa8   : > { %3494 = vrot.lane.b32.xlu1 %v7999_v3, %s7870_s17  ;;  %7226 = vmatprep.subr.msk.mxu0 %vm333_vm1, %v858_v44 }
  0xa9   : > { %3218 = vrot.lane.b32.xlu0 %v8049_v15, %s7868_s13  ;;  %7227 = vmatpush1.msk.msra.mxu0 %vm333_vm1, %v857_v43 }
  0xaa   : > { %v853_v46 = vpop.permute.xlu1 %852  ;;  %v594_v47 = vpop.permute.xlu0 %593  ;;  %7495 = vmatprep.subr.mxu0 %v7856_v0 }
  0xab   : > { %v859_v48 = vsel %vm854_vm4, %v851_v42, %v853_v46  ;;  %v600_v49 = vsel %vm595_vm3, %v592_v30, %v594_v47  ;;  %v7873_v30 = vmov 0   ;;  %vm4052_vm3 = vcmask 1039360  }
  0xac   : > { %7228 = vmatmul.mubr.msk.f32.vlgmr.msra.gmra.mrb[6].mxu0 %vm326_vm2, %v7222_v45  ;;  %3492 = vrot.lane.b32.xlu1 %v7993_v2, %s7870_s17 }
  0xad   : > { %3496 = vrot.lane.b32.xlu0 %v7990_v1, %s7870_s17  ;;  %7491 = vmatpush3.msk.msra.mxu1 %vm333_vm1, %v600_v49 }
  0xae   : > { %7496 = vmatpush3.msk.msra.mxu0 %vm333_vm1, %v859_v48  ;;  %7493 = vmatmul.mubr.msk.f32.vlgmr.msra.gmra.mrb[6].mxu1 %vm326_vm2, %v576_v37  ;;  %v843_v50 = vpop.permute.xlu1 %842  ;;  %v845_v51 = vpop.permute.xlu0 %844 }
  0xaf   : > { %7497 = vmatprep.mubr.msk.f32.mxu0 %vm7869_vm5, %v7856_v0  ;;  %v855_v52 = vsel %vm854_vm4, %v843_v50, %v845_v51  ;;  %v856_v53 = vsel %vm854_vm4, %v845_v51, %v847_v41  ;;  %937 = vmatprep.mubr.f32.mxu1 %v7856_v0  ;;  %v7258_v41 = vld [vmem:[%s8886_s2 + $0x14] sm:$0xf]  ;;  %vm4326_vm4 = vcmask 990208  }
  0xb0   : > { %7498 = vmatmul.mubr.msk.f32.vlgmr.msra.gmra.mrb[8].mxu0 %vm326_vm2, %v7222_v45  ;;  %3500 = vrot.lane.b32.xlu1 %v8002_v4, %s7870_s17 }
  0xb1   : > { %3228 = vrot.lane.b32.xlu0 %v8006_v5, %s7868_s13  ;;  %7223 = vmatprep.subr.msk.mxu1 %vm333_vm1, %v856_v53  ;;  %s7878_s13 = smov 78  }
  0xb2   : > { %7224 = vmatpush1.msk.msra.mxu1 %vm333_vm1, %v855_v52  ;;  %v1110_v54 = vpop.permute.xlu1 %1109  ;;  %v1108_v55 = vpop.permute.xlu0 %1107  ;;  %1267 = vmatprep.mubr.f32.mxu0 %v7856_v0 }
  0xb3   : > { %v1117_v56 = vsel %vm1113_vm6, %v1108_v55, %v1110_v54  ;;  %7225 = vmatmul.mubr.msk.f32.vlgmr.msra.gmra.mrb[4].mxu1 %vm326_vm2, %v7222_v45  ;;  %7760 = vset.pattern.permute.xlu1 %v7873_v30 }
  0xb4   : > { %3498 = vrot.lane.b32.xlu1 %v8006_v5, %s7870_s17  ;;  %7235 = vmatprep.subr.msk.mxu0 %vm333_vm1, %v1117_v56 }
  0xb5   : > { %3502 = vrot.lane.b32.xlu0 %v8010_v6, %s7870_s17  ;;  %1196 = vmatprep.mubr.f32.mxu1 %v7856_v0  ;;  %s7879_s17 = smov 60  }
  0xb6   : > { %v1104_v57 = vpop.permute.xlu1 %1103  ;;  %v1106_v58 = vpop.permute.xlu0 %1105  ;;  %7761 = vset.pattern.permute.xlu0 %v7873_v30  ;;  %v8385_v30 = vld [vmem:[%s7987_s11 + $0x10] sm:$0xff] }
  0xb7   : > { %v1116_v59 = vsel %vm1113_vm6, %v1106_v58, %v1108_v55  ;;  %v1115_v60 = vsel %vm1113_vm6, %v1104_v57, %v1106_v58 }
  0xb8   : > { %3774 = vrot.lane.b32.xlu1 %v8002_v4, %s7871_s7  ;;  %7236 = vmatpush1.msk.msra.mxu0 %vm333_vm1, %v1116_v59 }
  0xb9   : > { %3772 = vrot.lane.b32.xlu0 %v8006_v5, %s7871_s7  ;;  %7232 = vmatprep.subr.msk.mxu1 %vm333_vm1, %v1115_v60 }
  0xba   : > { %v1367_v62 = vpop.permute.xlu1 %1366  ;;  %v1102_v63 = vpop.permute.xlu0 %1101  ;;  %7237 = vmatmul.mubr.msk.f32.vlgmr.msra.gmra.mrb[6].mxu0 %vm326_vm2, %v7231_v61 }
  0xbb   : > { %v1114_v7 = vsel %vm1113_vm6, %v1102_v63, %v1104_v57  ;;  %1526 = vmatprep.mubr.f32.mxu0 %v7856_v0  ;;  %v7267_v57 = vld [vmem:[%s8886_s2 + $0x18] sm:$0xf] }
  0xbc   : > { %3768 = vrot.lane.b32.xlu1 %v7999_v3, %s7871_s7  ;;  %7233 = vmatpush1.msk.msra.mxu1 %vm333_vm1, %v1114_v7 }
  0xbd   : > { %3770 = vrot.lane.b32.xlu0 %v7990_v1, %s7871_s7  ;;  %7234 = vmatmul.mubr.msk.f32.vlgmr.msra.gmra.mrb[4].mxu1 %vm326_vm2, %v7231_v61 }
  0xbe   : > { %v1365_v8 = vpop.permute.xlu1 %1364  ;;  %v1369_v9 = vpop.permute.xlu0 %1368  ;;  %7500 = vmatprep.subr.mxu1 %v7856_v0  ;;  %7502 = vmatprep.mubr.msk.f32.mxu1 %vm7869_vm5, %v7856_v0 }
  0xbf   : > { %v1375_v10 = vsel %vm1372_vm7, %v1365_v8, %v1367_v62  ;;  %v1376_v11 = vsel %vm1372_vm7, %v1367_v62, %v1369_v9 }
  0xc0   : > { %4042 = vrot.lane.b32.xlu1 %v8006_v5, %s7872_s10  ;;  %7244 = vmatprep.subr.msk.mxu0 %vm333_vm1, %v1376_v11 }
  0xc1   : > { %3766 = vrot.lane.b32.xlu0 %v7993_v2, %s7871_s7  ;;  %7245 = vmatpush1.msk.msra.mxu0 %vm333_vm1, %v1375_v10 }
  0xc2   : > { %v1371_v13 = vpop.permute.xlu1 %1370  ;;  %v1112_v14 = vpop.permute.xlu0 %1111  ;;  %7246 = vmatmul.mubr.msk.f32.vlgmr.msra.gmra.mrb[6].mxu0 %vm326_vm2, %v7240_v12  ;;  %7505 = vmatprep.subr.mxu0 %v7856_v0 }
  0xc3   : > { %v1377_v17 = vsel %vm1372_vm7, %v1369_v9, %v1371_v13  ;;  %v1118_v18 = vsel %vm1113_vm6, %v1110_v54, %v1112_v14  ;;  %7507 = vmatprep.mubr.msk.f32.mxu0 %vm7869_vm5, %v7856_v0  ;;  %vm4600_vm6 = vcmask 941056  }
  0xc4   : > { %4040 = vrot.lane.b32.xlu1 %v7990_v1, %s7872_s10  ;;  %7501 = vmatpush3.msk.msra.mxu1 %vm333_vm1, %v1118_v18 }
  0xc5   : > { %4044 = vrot.lane.b32.xlu0 %v8002_v4, %s7872_s10  ;;  %7506 = vmatpush3.msk.msra.mxu0 %vm333_vm1, %v1377_v17 }
  0xc6   : > { %7503 = vmatmul.mubr.msk.f32.vlgmr.msra.gmra.mrb[8].mxu1 %vm326_vm2, %v7231_v61  ;;  %v1361_v20 = vpop.permute.xlu1 %1360  ;;  %v1363_v21 = vpop.permute.xlu0 %1362  ;;  %7508 = vmatmul.mubr.msk.f32.vlgmr.msra.gmra.mrb[10].mxu0 %vm326_vm2, %v7240_v12 }
  0xc7   : > { %v1373_v22 = vsel %vm1372_vm7, %v1361_v20, %v1363_v21  ;;  %v1374_v23 = vsel %vm1372_vm7, %v1363_v21, %v1365_v8  ;;  %1455 = vmatprep.mubr.f32.mxu1 %v7856_v0  ;;  %1785 = vmatprep.mubr.f32.mxu0 %v7856_v0  ;;  %v7276_v8 = vld [vmem:[%s8886_s2 + $0x1c] sm:$0xf]  ;;  %vm5129_vm7 = vcmask 973824  }
  0xc8   : > { %4048 = vrot.lane.b32.xlu1 %v8221_v19, %s7872_s10  ;;  %7241 = vmatprep.subr.msk.mxu1 %vm333_vm1, %v1374_v23 }
  0xc9   : > { %3776 = vrot.lane.b32.xlu0 %v8010_v6, %s7871_s7  ;;  %7242 = vmatpush1.msk.msra.mxu1 %vm333_vm1, %v1373_v22 }
  0xca   : > { %v1628_v25 = vpop.permute.xlu1 %1627  ;;  %v1626_v26 = vpop.permute.xlu0 %1625  ;;  %7243 = vmatmul.mubr.msk.f32.vlgmr.msra.gmra.mrb[4].mxu1 %vm326_vm2, %v7240_v12 }
  0xcb   : > { %v1635_v27 = vsel %vm1631_vm8, %v1626_v26, %v1628_v25  ;;  %1714 = vmatprep.mubr.f32.mxu1 %v7856_v0 }
  0xcc   : > { %4046 = vrot.lane.b32.xlu1 %v8010_v6, %s7872_s10  ;;  %7253 = vmatprep.subr.msk.mxu0 %vm333_vm1, %v1635_v27  ;;  %v7285_v27 = vld [vmem:[%s8886_s2 + $0x20] sm:$0xf] }
  0xcd   : > { %4050 = vrot.lane.b32.xlu0 %v8234_v24, %s7872_s10  ;;  %s7883_s10 = smov [#allocation3]  }
  0xce   : > { %v1622_v28 = vpop.permute.xlu1 %1621  ;;  %v1624_v29 = vpop.permute.xlu0 %1623 }
  0xcf   : > { %v1634_v31 = vsel %vm1631_vm8, %v1624_v29, %v1626_v26  ;;  %v1633_v32 = vsel %vm1631_vm8, %v1622_v28, %v1624_v29 }
  0xd0   : > { %4322 = vrot.lane.b32.xlu1 %v8221_v19, %s7874_s14  ;;  %7254 = vmatpush1.msk.msra.mxu0 %vm333_vm1, %v1634_v31 }
  0xd1   : > { %4320 = vrot.lane.b32.xlu0 %v8010_v6, %s7874_s14  ;;  %7250 = vmatprep.subr.msk.mxu1 %vm333_vm1, %v1633_v32  ;;  %v8399_v32 = vld [vmem:[%s7987_s11 + $0x18] sm:$0xff] }
  0xd2   : > { %v1885_v34 = vpop.permute.xlu1 %1884  ;;  %v1620_v35 = vpop.permute.xlu0 %1619  ;;  %7255 = vmatmul.mubr.msk.f32.vlgmr.msra.gmra.mrb[6].mxu0 %vm326_vm2, %v7249_v33 }
  0xd3   : > { %v1632_v36 = vsel %vm1631_vm8, %v1620_v35, %v1622_v28  ;;  %2044 = vmatprep.mubr.f32.mxu0 %v7856_v0 }
  0xd4   : > { %4316 = vrot.lane.b32.xlu1 %v8006_v5, %s7874_s14  ;;  %7251 = vmatpush1.msk.msra.mxu1 %vm333_vm1, %v1632_v36 }
  0xd5   : > { %4318 = vrot.lane.b32.xlu0 %v8002_v4, %s7874_s14  ;;  %7252 = vmatmul.mubr.msk.f32.vlgmr.msra.gmra.mrb[4].mxu1 %vm326_vm2, %v7249_v33 }
  0xd6   : > { %v1883_v37 = vpop.permute.xlu1 %1882  ;;  %v1887_v38 = vpop.permute.xlu0 %1886  ;;  %7510 = vmatprep.subr.mxu1 %v7856_v0  ;;  %7512 = vmatprep.mubr.msk.f32.mxu1 %vm7869_vm5, %v7856_v0 }
  0xd7   : > { %v1893_v39 = vsel %vm1890_vm9, %v1883_v37, %v1885_v34  ;;  %v1894_v40 = vsel %vm1890_vm9, %v1885_v34, %v1887_v38  ;;  %v8406_v34 = vld [vmem:[%s7987_s11 + $0x8] sm:$0xff] }
  0xd8   : > { %4590 = vrot.lane.b32.xlu1 %v8006_v5, %s7875_s24  ;;  %7262 = vmatprep.subr.msk.mxu0 %vm333_vm1, %v1894_v40  ;;  %v8416_v36 = vcombine.high %v8406_v34, %v8406_v34 }
  0xd9   : > { %4314 = vrot.lane.b32.xlu0 %v7990_v1, %s7874_s14  ;;  %7263 = vmatpush1.msk.msra.mxu0 %vm333_vm1, %v1893_v39 }
  0xda   : > { %v1889_v42 = vpop.permute.xlu1 %1888  ;;  %v1630_v43 = vpop.permute.xlu0 %1629  ;;  %7264 = vmatmul.mubr.msk.f32.vlgmr.msra.gmra.mrb[6].mxu0 %vm326_vm2, %v7258_v41  ;;  %7515 = vmatprep.subr.mxu0 %v7856_v0 }
  0xdb   : > { %v1895_v44 = vsel %vm1890_vm9, %v1887_v38, %v1889_v42  ;;  %v1636_v45 = vsel %vm1631_vm8, %v1628_v25, %v1630_v43  ;;  %7517 = vmatprep.mubr.msk.f32.mxu0 %vm7869_vm5, %v7856_v0  ;;  %vm5388_vm8 = vcmask 900096  }
  0xdc   : > { %4588 = vrot.lane.b32.xlu1 %v7990_v1, %s7875_s24  ;;  %7511 = vmatpush3.msk.msra.mxu1 %vm333_vm1, %v1636_v45 }
  0xdd   : > { %4592 = vrot.lane.b32.xlu0 %v8002_v4, %s7875_s24  ;;  %7516 = vmatpush3.msk.msra.mxu0 %vm333_vm1, %v1895_v44 }
  0xde   : > { %7513 = vmatmul.mubr.msk.f32.vlgmr.msra.gmra.mrb[10].mxu1 %vm326_vm2, %v7249_v33  ;;  %v1879_v46 = vpop.permute.xlu1 %1878  ;;  %v1881_v47 = vpop.permute.xlu0 %1880  ;;  %7518 = vmatmul.mubr.msk.f32.vlgmr.msra.gmra.mrb[12].mxu0 %vm326_vm2, %v7258_v41  ;;  %v8403_v33 = vcombine.high %v8385_v30, %v8385_v30 }
  0xdf   : > { %v1891_v48 = vsel %vm1890_vm9, %v1879_v46, %v1881_v47  ;;  %v1892_v49 = vsel %vm1890_vm9, %v1881_v47, %v1883_v37  ;;  %1973 = vmatprep.mubr.f32.mxu1 %v7856_v0  ;;  %2303 = vmatprep.mubr.f32.mxu0 %v7856_v0  ;;  %vm5647_vm9 = vcmask 637952  }
  0xe0   : > { %4596 = vrot.lane.b32.xlu1 %v8221_v19, %s7875_s24  ;;  %7259 = vmatprep.subr.msk.mxu1 %vm333_vm1, %v1892_v49 }
  0xe1   : > { %4324 = vrot.lane.b32.xlu0 %v8234_v24, %s7874_s14  ;;  %7260 = vmatpush1.msk.msra.mxu1 %vm333_vm1, %v1891_v48  ;;  %v7303_v48 = vld [vmem:[%s8886_s2 + $0x28] sm:$0xf] }
  0xe2   : > { %v2146_v50 = vpop.permute.xlu1 %2145  ;;  %v2144_v51 = vpop.permute.xlu0 %2143  ;;  %7261 = vmatmul.mubr.msk.f32.vlgmr.msra.gmra.mrb[4].mxu1 %vm326_vm2, %v7258_v41  ;;  %v8426_v41 = vcombine.high %v8399_v32, %v8399_v32 }
  0xe3   : > { %v2153_v52 = vsel %vm2149_vm10, %v2144_v51, %v2146_v50  ;;  %2232 = vmatprep.mubr.f32.mxu1 %v7856_v0 }
  0xe4   : > { %4594 = vrot.lane.b32.xlu1 %v8010_v6, %s7875_s24  ;;  %7271 = vmatprep.subr.msk.mxu0 %vm333_vm1, %v2153_v52 }
  0xe5   : > { %4598 = vrot.lane.b32.xlu0 %v8234_v24, %s7875_s24 }
  0xe6   : > { %v2140_v53 = vpop.permute.xlu1 %2139  ;;  %v2142_v54 = vpop.permute.xlu0 %2141 }
  0xe7   : > { %v2152_v55 = vsel %vm2149_vm10, %v2142_v54, %v2144_v51  ;;  %v2151_v56 = vsel %vm2149_vm10, %v2140_v53, %v2142_v54 }
  0xe8   : > { %5125 = vrot.lane.b32.xlu1 %v7990_v1, %s7876_s29  ;;  %7272 = vmatpush1.msk.msra.mxu0 %vm333_vm1, %v2152_v55 }
  0xe9   : > { %5123 = vrot.lane.b32.xlu0 %v7999_v3, %s7876_s29  ;;  %7268 = vmatprep.subr.msk.mxu1 %vm333_vm1, %v2151_v56 }
  0xea   : > { %v2403_v58 = vpop.permute.xlu1 %2402  ;;  %7273 = vmatmul.mubr.msk.f32.vlgmr.msra.gmra.mrb[6].mxu0 %vm326_vm2, %v7267_v57  ;;  %v2138_v59 = vpop.permute.xlu0 %2137 }
  0xeb   : > { %v2150_v60 = vsel %vm2149_vm10, %v2138_v59, %v2140_v53  ;;  %2562 = vmatprep.mubr.f32.mxu0 %v7856_v0 }
  0xec   : > { %5119 = vrot.lane.b32.xlu1 %v8057_v16, %s7876_s29  ;;  %7269 = vmatpush1.msk.msra.mxu1 %vm333_vm1, %v2150_v60 }
  0xed   : > { %5121 = vrot.lane.b32.xlu0 %v7993_v2, %s7876_s29  ;;  %7270 = vmatmul.mubr.msk.f32.vlgmr.msra.gmra.mrb[4].mxu1 %vm326_vm2, %v7267_v57 }
  0xee   : > { %v2401_v61 = vpop.permute.xlu1 %2400  ;;  %v2405_v62 = vpop.permute.xlu0 %2404  ;;  %7520 = vmatprep.subr.mxu1 %v7856_v0  ;;  %7522 = vmatprep.mubr.msk.f32.mxu1 %vm7869_vm5, %v7856_v0 }
  0xef   : > { %v2411_v63 = vsel %vm2408_vm11, %v2401_v61, %v2403_v58  ;;  %v2412_v7 = vsel %vm2408_vm11, %v2403_v58, %v2405_v62  ;;  %v7312_v58 = vld [vmem:[%s8886_s2 + $0x2c] sm:$0xf] }
  0xf0   : > { %5127 = vrot.lane.b32.xlu1 %v8006_v5, %s7876_s29  ;;  %7280 = vmatprep.subr.msk.mxu0 %vm333_vm1, %v2412_v7 }
  0xf1   : > { %5117 = vrot.lane.b32.xlu0 %v8049_v15, %s7876_s29  ;;  %7281 = vmatpush1.msk.msra.mxu0 %vm333_vm1, %v2411_v63 }
  0xf2   : > { %v2407_v9 = vpop.permute.xlu1 %2406  ;;  %7282 = vmatmul.mubr.msk.f32.vlgmr.msra.gmra.mrb[6].mxu0 %vm326_vm2, %v7276_v8  ;;  %v2148_v10 = vpop.permute.xlu0 %2147  ;;  %7525 = vmatprep.subr.mxu0 %v7856_v0 }
  0xf3   : > { %v2413_v11 = vsel %vm2408_vm11, %v2405_v62, %v2407_v9  ;;  %v2154_v12 = vsel %vm2149_vm10, %v2146_v50, %v2148_v10  ;;  %7527 = vmatprep.mubr.msk.f32.mxu0 %vm7869_vm5, %v7856_v0  ;;  %v8474_v62 = vld [vmem:[#allocation2] sm:$0xff]  ;;  %vm7023_vm10 = vcmask 1047556  }
  0xf4   : > { %5384 = vrot.lane.b32.xlu1 %v7990_v1, %s7877_s9  ;;  %7521 = vmatpush3.msk.msra.mxu1 %vm333_vm1, %v2154_v12 }
  0xf5   : > { %5382 = vrot.lane.b32.xlu0 %v7999_v3, %s7877_s9  ;;  %7526 = vmatpush3.msk.msra.mxu0 %vm333_vm1, %v2413_v11 }
  0xf6   : > { %7523 = vmatmul.mubr.msk.f32.vlgmr.msra.gmra.mrb[12].mxu1 %vm326_vm2, %v7267_v57  ;;  %v2397_v13 = vpop.permute.xlu1 %2396  ;;  %v2399_v14 = vpop.permute.xlu0 %2398  ;;  %7528 = vmatmul.mubr.msk.f32.vlgmr.msra.gmra.mrb[14].mxu0 %vm326_vm2, %v7276_v8 }
  0xf7   : > { %v2409_v17 = vsel %vm2408_vm11, %v2397_v13, %v2399_v14  ;;  %v2410_v18 = vsel %vm2408_vm11, %v2399_v14, %v2401_v61  ;;  %2491 = vmatprep.mubr.f32.mxu1 %v7856_v0  ;;  %2836 = vmatprep.mubr.f32.mxu0 %v7856_v0  ;;  %vm5906_vm11 = vcmask 490496  }
  0xf8   : > { %5378 = vrot.lane.b32.xlu1 %v8057_v16, %s7877_s9  ;;  %7277 = vmatprep.subr.msk.mxu1 %vm333_vm1, %v2410_v18 }
  0xf9   : > { %5380 = vrot.lane.b32.xlu0 %v7993_v2, %s7877_s9  ;;  %7278 = vmatpush1.msk.msra.mxu1 %vm333_vm1, %v2409_v17  ;;  %v7321_v17 = vld [vmem:[%s8886_s2 + $0x30] sm:$0xf] }
  0xfa   : > { %v2679_v20 = vpop.permute.xlu1 %2678  ;;  %7279 = vmatmul.mubr.msk.f32.vlgmr.msra.gmra.mrb[4].mxu1 %vm326_vm2, %v7276_v8  ;;  %v2677_v21 = vpop.permute.xlu0 %2676 }
  0xfb   : > { %v2686_v22 = vsel %vm2682_vm12, %v2677_v21, %v2679_v20  ;;  %2765 = vmatprep.mubr.f32.mxu1 %v7856_v0 }
  0xfc   : > { %5386 = vrot.lane.b32.xlu1 %v8006_v5, %s7877_s9  ;;  %7289 = vmatprep.subr.msk.mxu0 %vm333_vm1, %v2686_v22 }
  0xfd   : > { %5376 = vrot.lane.b32.xlu0 %v8049_v15, %s7877_s9 }
  0xfe   : > { %v2673_v16 = vpop.permute.xlu1 %2672  ;;  %v2675_v23 = vpop.permute.xlu0 %2674 }
  0xff   : > { %v2684_v25 = vsel %vm2682_vm12, %v2673_v16, %v2675_v23  ;;  %v2685_v26 = vsel %vm2682_vm12, %v2675_v23, %v2677_v21 }
 0x100   : > { %5643 = vrot.lane.b32.xlu1 %v8002_v4, %s7878_s13  ;;  %7290 = vmatpush1.msk.msra.mxu0 %vm333_vm1, %v2685_v26 }
 0x101   : > { %5641 = vrot.lane.b32.xlu0 %v8006_v5, %s7878_s13  ;;  %7286 = vmatprep.subr.msk.mxu1 %vm333_vm1, %v2684_v25 }
 0x102   : > { %7291 = vmatmul.mubr.msk.f32.vlgmr.msra.gmra.mrb[16].mxu0 %vm326_vm2, %v7285_v27  ;;  %v2947_v15 = vpop.permute.xlu1 %2946  ;;  %v2671_v28 = vpop.permute.xlu0 %2670 }
 0x103   : > { %v2683_v29 = vsel %vm2682_vm12, %v2671_v28, %v2673_v16  ;;  %3039 = vmatprep.mubr.f32.mxu0 %v7856_v0 }
 0x104   : > { %5637 = vrot.lane.b32.xlu1 %v7999_v3, %s7878_s13  ;;  %7287 = vmatpush1.msk.msra.mxu1 %vm333_vm1, %v2683_v29 }
 0x105   : > { %5639 = vrot.lane.b32.xlu0 %v7990_v1, %s7878_s13  ;;  %7288 = vmatmul.mubr.msk.f32.vlgmr.msra.gmra.mrb[14].mxu1 %vm326_vm2, %v7285_v27  ;;  %v7294_v1 = vld [vmem:[%s8886_s2 + $0x24] sm:$0xf] }
 0x106   : > { %v2945_v4 = vpop.permute.xlu1 %2944  ;;  %v2949_v5 = vpop.permute.xlu0 %2948  ;;  %7530 = vmatprep.subr.mxu1 %v7856_v0  ;;  %7532 = vmatprep.mubr.msk.f32.mxu1 %vm7869_vm5, %v7856_v0 }
 0x107   : > { %v2957_v3 = vsel %vm2956_vm13, %v2945_v4, %v2947_v15  ;;  %v2958_v31 = vsel %vm2956_vm13, %v2947_v15, %v2949_v5  ;;  %v7429_v15 = vld [vmem:[%s8887_s3 + $0x4] sm:$0xf]  ;;  %v6957_v4 = vld [vmem:[%s8887_s3] sm:$0xf] }
 0x108   : > { %5645 = vrot.lane.b32.xlu1 %v8010_v6, %s7878_s13  ;;  %7295 = vmatprep.subr.msk.mxu0 %vm333_vm1, %v2958_v31 }
 0x109   : > { %5635 = vrot.lane.b32.xlu0 %v7993_v2, %s7878_s13  ;;  %7296 = vmatpush1.msk.msra.mxu0 %vm333_vm1, %v2957_v3 }
 0x10a   : > { %v2953_v35 = vpop.permute.xlu1 %2952  ;;  %7297 = vmatmul.mubr.msk.f32.vlgmr.msra.gmra.mrb[18].mxu0 %vm326_vm2, %v7294_v1  ;;  %7535 = vmatprep.subr.mxu0 %v7856_v0 }
 0x10b   : > { %v2681_v6 = vpop.permute.xlu0 %2680  ;;  %7537 = vmatprep.mubr.msk.f32.mxu0 %vm7869_vm5, %v7856_v0 }
 0x10c   : > { %v2687_v2 = vsel %vm2682_vm12, %v2679_v20, %v2681_v6  ;;  %5902 = vrot.lane.b32.xlu1 %v8399_v32, %s7879_s17  ;;  %vm6165_vm12 = vcmask 228352  }
 0x10d   : > { %5900 = vrot.lane.b32.xlu0 %v8403_v33, %s7879_s17  ;;  %7531 = vmatpush3.msk.msra.mxu1 %vm333_vm1, %v2687_v2 }
 0x10e   : > { %7533 = vmatmul.mubr.msk.f32.vlgmr.msra.gmra.mrb[16].mxu1 %vm326_vm2, %v7285_v27  ;;  %v2951_v37 = vpop.permute.xlu1 %2950  ;;  %v7330_v27 = vld [vmem:[%s8886_s2 + $0x34] sm:$0xf] }
 0x10f   : > { %v2959_v38 = vsel %vm2956_vm13, %v2949_v5, %v2951_v37  ;;  %v2960_v39 = vsel %vm2956_vm13, %v2951_v37, %v2953_v35  ;;  %v2955_v40 = vpop.permute.xlu0 %2954  ;;  %3110 = vmatprep.mubr.f32.mxu1 %v7856_v0  ;;  %v7339_v37 = vld [vmem:[%s8886_s2 + $0x38] sm:$0xf] }
 0x110   : > { %v2961_v42 = vsel %vm2956_vm13, %v2953_v35, %v2955_v40  ;;  %5896 = vrot.lane.b32.xlu1 %v8416_v36, %s7879_s17  ;;  %7298 = vmatprep.subr.msk.mxu1 %vm333_vm1, %v2960_v39  ;;  %vm6424_vm13 = vcmask 154624  }
 0x111   : > { %5898 = vrot.lane.b32.xlu0 %v8385_v30, %s7879_s17  ;;  %7536 = vmatpush3.msk.msra.mxu0 %vm333_vm1, %v2961_v42 }
 0x112   : > { %7299 = vmatpush1.msk.msra.mxu1 %vm333_vm1, %v2959_v38  ;;  %7538 = vmatmul.mubr.msk.f32.vlgmr.msra.gmra.mrb[20].mxu0 %vm326_vm2, %v7294_v1  ;;  %v3227_v43 = vpop.permute.xlu1 %3226 }
 0x113   : > { %7300 = vmatmul.mubr.msk.f32.vlgmr.msra.gmra.mrb[18].mxu1 %vm326_vm2, %v7294_v1  ;;  %v3225_v44 = vpop.permute.xlu0 %3224  ;;  %3384 = vmatprep.mubr.f32.mxu0 %v7856_v0 }
 0x114   : > { %v3234_v45 = vsel %vm3230_vm14, %v3225_v44, %v3227_v43  ;;  %5904 = vrot.lane.b32.xlu1 %v8426_v41, %s7879_s17  ;;  %3313 = vmatprep.mubr.f32.mxu1 %v7856_v0 }
 0x115   : > { %5894 = vrot.lane.b32.xlu0 %v8406_v34, %s7879_s17  ;;  %7307 = vmatprep.subr.msk.mxu0 %vm333_vm1, %v3234_v45  ;;  %s7674_s17 = smul.u32 80, %s263_s16 }
 0x116   : > { %v3221_v46 = vpop.permute.xlu1 %3220 }
 0x117   : > { %v3223_v47 = vpop.permute.xlu0 %3222  ;;  %s8810_s24 = scalar_lea.vmem [#allocation3], %s7674_s17 }
 0x118   : > { %v3232_v49 = vsel %vm3230_vm14, %v3221_v46, %v3223_v47  ;;  %v3233_v50 = vsel %vm3230_vm14, %v3223_v47, %v3225_v44  ;;  %6161 = vrot.lane.b32.xlu1 %v8221_v19, %s7880_s27  ;;  %v7348_v47 = vld [vmem:[%s8886_s2 + $0x3c] sm:$0xf] }
 0x119   : > { %6159 = vrot.lane.b32.xlu0 %v8426_v41, %s7880_s27  ;;  %7308 = vmatpush1.msk.msra.mxu0 %vm333_vm1, %v3233_v50 }
 0x11a   : > { %7304 = vmatprep.subr.msk.mxu1 %vm333_vm1, %v3232_v49  ;;  %7309 = vmatmul.mubr.msk.f32.vlgmr.msra.gmra.mrb[22].mxu0 %vm326_vm2, %v7303_v48  ;;  %v3495_v51 = vpop.permute.xlu1 %3494 }
 0x11b   : > { %v3219_v52 = vpop.permute.xlu0 %3218  ;;  %3587 = vmatprep.mubr.f32.mxu0 %v7856_v0 }
 0x11c   : > { %v3231_v53 = vsel %vm3230_vm14, %v3219_v52, %v3221_v46  ;;  %6155 = vrot.lane.b32.xlu1 %v8403_v33, %s7880_s27 }
 0x11d   : > { %6157 = vrot.lane.b32.xlu0 %v8399_v32, %s7880_s27  ;;  %7305 = vmatpush1.msk.msra.mxu1 %vm333_vm1, %v3231_v53 }
 0x11e   : > { %7306 = vmatmul.mubr.msk.f32.vlgmr.msra.gmra.mrb[20].mxu1 %vm326_vm2, %v7303_v48  ;;  %v3493_v54 = vpop.permute.xlu1 %3492  ;;  %7540 = vmatprep.subr.mxu1 %v7856_v0 }
 0x11f   : > { %v3505_v55 = vsel %vm3504_vm15, %v3493_v54, %v3495_v51  ;;  %v3497_v56 = vpop.permute.xlu0 %3496  ;;  %7542 = vmatprep.mubr.msk.f32.mxu1 %vm7869_vm5, %v7856_v0 }
 0x120   : > { %v3506_v57 = vsel %vm3504_vm15, %v3495_v51, %v3497_v56  ;;  %6163 = vrot.lane.b32.xlu1 %v8234_v24, %s7880_s27  ;;  %v4866_v51 = vld [vmem:[%s7987_s11] sm:$0xff] }
 0x121   : > { %6153 = vrot.lane.b32.xlu0 %v8385_v30, %s7880_s27  ;;  %7313 = vmatprep.subr.msk.mxu0 %vm333_vm1, %v3506_v57  ;;  %s7086_s27 = sshll.u32 %s8810_s24, 4  ;;  %s8828_s27 = int_to_ptr.vmem [resolvable:$true] %s7086_s27 }
 0x122   : > { %7314 = vmatpush1.msk.msra.mxu0 %vm333_vm1, %v3505_v55  ;;  %v3501_v59 = vpop.permute.xlu1 %3500  ;;  %s7776_s9 = scalar_lea.vmem %s8828_s27, 1280 }
 0x123   : > { %7315 = vmatmul.mubr.msk.f32.vlgmr.msra.gmra.mrb[24].mxu0 %vm326_vm2, %v7312_v58  ;;  %v3229_v60 = vpop.permute.xlu0 %3228  ;;  %7545 = vmatprep.subr.mxu0 %v7856_v0  ;;  %p7777_p12 = scmp.ne.s32.totalorder %s8828_s27, %s7776_s9 }
 0x124   : > { %v3235_v61 = vsel %vm3230_vm14, %v3227_v43, %v3229_v60  ;;  %6420 = vrot.lane.b32.xlu1 %v8221_v19, %s7881_s8  ;;  %7547 = vmatprep.mubr.msk.f32.mxu0 %vm7869_vm5, %v8474_v62  ;;  %v7357_v60 = vld [vmem:[%s8886_s2 + $0x40] sm:$0xf]  ;;  %vm6683_vm14 = vcmask 80896  }
 0x125   : > { %6418 = vrot.lane.b32.xlu0 %v8426_v41, %s7881_s8  ;;  %7541 = vmatpush3.msk.msra.mxu1 %vm333_vm1, %v3235_v61  ;;  %p7778_p13 = pnand %p7777_p12, %p7955_p4 }
 0x126   : > { %7543 = vmatmul.mubr.msk.f32.vlgmr.msra.gmra.mrb[22].mxu1 %vm326_vm2, %v7303_v48  ;;  %v3499_v63 = vpop.permute.xlu1 %3498 }
 0x127   : > { %v3507_v7 = vsel %vm3504_vm15, %v3497_v56, %v3499_v63  ;;  %v3508_v0 = vsel %vm3504_vm15, %v3499_v63, %v3501_v59  ;;  %v3503_v8 = vpop.permute.xlu0 %3502  ;;  %3658 = vmatprep.mubr.f32.mxu1 %v8474_v62  ;;  %v4874_v56 = vcombine.high %v4866_v51, %v4866_v51  ;;  %v4868_v63 = vld [vmem:[%s7987_s11 + $0x10] sm:$0xf]  ;;  %p7779_p0 = pneg %p7778_p13  ;;  %s7780_s11 = sshll.u32 %s7883_s10, 4  ;;  %s7781_s11 = int_to_ptr.vmem [resolvable:$false] %s7780_s11 }
 0x128   : > { %v3509_v9 = vsel %vm3504_vm15, %v3501_v59, %v3503_v8  ;;  %6414 = vrot.lane.b32.xlu1 %v8403_v33, %s7881_s8  ;;  %7316 = vmatprep.subr.msk.mxu1 %vm333_vm1, %v3508_v0  ;;  %p7783_p1 = scmp.lt.s32.totalorder %s8828_s27, %s7781_s11 }
 0x129   : > { %6416 = vrot.lane.b32.xlu0 %v8399_v32, %s7881_s8  ;;  %7546 = vmatpush3.msk.msra.mxu0 %vm333_vm1, %v3509_v9 }
 0x12a   : > { %7317 = vmatpush1.msk.msra.mxu1 %vm333_vm1, %v3507_v7  ;;  %7548 = vmatmul.mubr.msk.f32.vlgmr.msra.gmra.mrb[26].mxu0 %vm326_vm2, %v7312_v58  ;;  %v3775_v10 = vpop.permute.xlu1 %3774 }
 0x12b   : > { %7318 = vmatmul.mubr.msk.f32.vlgmr.msra.gmra.mrb[24].mxu1 %vm326_vm2, %v7312_v58  ;;  %v3773_v11 = vpop.permute.xlu0 %3772  ;;  %3932 = vmatprep.mubr.f32.mxu0 %v8474_v62 }
 0x12c   : > { %v3782_v12 = vsel %vm3778_vm0, %v3773_v11, %v3775_v10  ;;  %6422 = vrot.lane.b32.xlu1 %v8234_v24, %s7881_s8  ;;  %3861 = vmatprep.mubr.f32.mxu1 %v8474_v62 }
 0x12d   : > { %6412 = vrot.lane.b32.xlu0 %v8385_v30, %s7881_s8  ;;  %7325 = vmatprep.subr.msk.mxu0 %vm333_vm1, %v3782_v12  ;;  %s8826_s8 = scalar_lea.hbm %s8889_s5, %s7676_s25 }
 0x12e   : > { %v3769_v13 = vpop.permute.xlu1 %3768 }
 0x12f   : > { %v3771_v14 = vpop.permute.xlu0 %3770 }
 0x130   : > { %v3780_v18 = vsel %vm3778_vm0, %v3769_v13, %v3771_v14  ;;  %v3781_v20 = vsel %vm3778_vm0, %v3771_v14, %v3773_v11  ;;  %6679 = vrot.lane.b32.xlu1 %v8221_v19, %s7882_s12 }
 0x131   : > { %6677 = vrot.lane.b32.xlu0 %v8426_v41, %s7882_s12  ;;  %7326 = vmatpush1.msk.msra.mxu0 %vm333_vm1, %v3781_v20 }
 0x132   : > { %7322 = vmatprep.subr.msk.mxu1 %vm333_vm1, %v3780_v18  ;;  %7327 = vmatmul.mubr.msk.f32.vlgmr.msra.gmra.mrb[28].mxu0 %vm326_vm2, %v7321_v17  ;;  %v4043_v21 = vpop.permute.xlu1 %4042 }
 0x133   : > { %v3767_v22 = vpop.permute.xlu0 %3766  ;;  %4135 = vmatprep.mubr.f32.mxu0 %v8474_v62 }
 0x134   : > { %v3779_v16 = vsel %vm3778_vm0, %v3767_v22, %v3769_v13  ;;  %6673 = vrot.lane.b32.xlu1 %v8403_v33, %s7882_s12 }
 0x135   : > { %6675 = vrot.lane.b32.xlu0 %v8399_v32, %s7882_s12  ;;  %7323 = vmatpush1.msk.msra.mxu1 %vm333_vm1, %v3779_v16  ;;  %v7375_v16 = vld [vmem:[%s8886_s2 + $0x48] sm:$0xf] }
 0x136   : > { %7324 = vmatmul.mubr.msk.f32.vlgmr.msra.gmra.mrb[26].mxu1 %vm326_vm2, %v7321_v17  ;;  %v4041_v19 = vpop.permute.xlu1 %4040  ;;  %7550 = vmatprep.subr.mxu1 %v8474_v62 }
 0x137   : > { %v4053_v23 = vsel %vm4052_vm3, %v4041_v19, %v4043_v21  ;;  %v4045_v25 = vpop.permute.xlu0 %4044  ;;  %7552 = vmatprep.mubr.msk.f32.mxu1 %vm7869_vm5, %v8474_v62 }
 0x138   : > { %v4054_v26 = vsel %vm4052_vm3, %v4043_v21, %v4045_v25  ;;  %6681 = vrot.lane.b32.xlu1 %v8234_v24, %s7882_s12 }
 0x139   : > { %6671 = vrot.lane.b32.xlu0 %v8385_v30, %s7882_s12  ;;  %7331 = vmatprep.subr.msk.mxu0 %vm333_vm1, %v4054_v26  ;;  %s7782_s12 = scalar_lea.vmem %s7781_s11, 2560 }
 0x13a   : > { %7332 = vmatpush1.msk.msra.mxu0 %vm333_vm1, %v4053_v23  ;;  %v4049_v28 = vpop.permute.xlu1 %4048  ;;  %p7784_p2 = scmp.lt.s32.totalorder %s7782_s12, %s7776_s9 }
 0x13b   : > { %7333 = vmatmul.mubr.msk.f32.vlgmr.msra.gmra.mrb[30].mxu0 %vm326_vm2, %v7330_v27  ;;  %v3777_v29 = vpop.permute.xlu0 %3776  ;;  %7555 = vmatprep.subr.mxu0 %v8474_v62 }
 0x13c   : > { %v3783_v24 = vsel %vm3778_vm0, %v3775_v10, %v3777_v29  ;;  %7557 = vmatprep.mubr.msk.f32.mxu0 %vm7869_vm5, %v8474_v62  ;;  %6982 = vperm.xlu1 %7760, %v7429_v15   ;;  %v7366_v10 = vld [vmem:[%s8886_s2 + $0x44] sm:$0xf]  ;;  %v6935_v15 = vld [vmem:[#allocation2 + $0x30] sm:$0xf0]  ;;  %p7785_p3 = por %p7784_p2, %p7783_p1 }
 0x13d   : > { %7551 = vmatpush3.msk.msra.mxu1 %vm333_vm1, %v3783_v24 }
 0x13e   : > { %7553 = vmatmul.mubr.msk.f32.vlgmr.msra.gmra.mrb[28].mxu1 %vm326_vm2, %v7321_v17  ;;  %v4047_v5 = vpop.permute.xlu1 %4046  ;;  %p7786_p5 = pnand %p7785_p3, %p7779_p0 }
 0x13f   : > { %v4055_v30 = vsel %vm4052_vm3, %v4045_v25, %v4047_v5  ;;  %v4056_v3 = vsel %vm4052_vm3, %v4047_v5, %v4049_v28  ;;  %v4051_v31 = vpop.permute.xlu0 %4050  ;;  %4206 = vmatprep.mubr.f32.mxu1 %v8474_v62  ;;  %v6934_v25 = vld [vmem:[#allocation2 + $0x28] sm:$0xf0] }
 0x140   : > { %v4057_v1 = vsel %vm4052_vm3, %v4049_v28, %v4051_v31  ;;  %7334 = vmatprep.subr.msk.mxu1 %vm333_vm1, %v4056_v3  ;;  %6960 = vperm.xlu1 %7760, %v6957_v4  }
 0x141   : > { %7556 = vmatpush3.msk.msra.mxu0 %vm333_vm1, %v4057_v1  ;;  %7335 = vmatpush1.msk.msra.mxu1 %vm333_vm1, %v4055_v30  ;;  %v6936_v30 = vld [vmem:[#allocation2 + $0x38] sm:$0xf0]  ;;  %v6937_v1 = vld [vmem:[#allocation2 + $0x40] sm:$0xf0] }
 0x142   : > { %7558 = vmatmul.mubr.msk.f32.vlgmr.msra.gmra.mrb[32].mxu0 %vm326_vm2, %v7330_v27  ;;  %v4323_v32 = vpop.permute.xlu1 %4322  ;;  %7336 = vmatmul.mubr.msk.f32.vlgmr.msra.gmra.mrb[30].mxu1 %vm326_vm2, %v7330_v27 }
 0x143   : > { %v4321_v33 = vpop.permute.xlu0 %4320  ;;  %4480 = vmatprep.mubr.f32.mxu0 %v8474_v62  ;;  %4409 = vmatprep.mubr.f32.mxu1 %v8474_v62 }
 0x144   : > { %v4330_v35 = vsel %vm4326_vm4, %v4321_v33, %v4323_v32 }
 0x145   : > { %7343 = vmatprep.subr.msk.mxu0 %vm333_vm1, %v4330_v35 }
 0x146   : > { %v4317_v6 = vpop.permute.xlu1 %4316 }
 0x147   : > { %v4319_v2 = vpop.permute.xlu0 %4318 }
 0x148   : > { %v4328_v38 = vsel %vm4326_vm4, %v4317_v6, %v4319_v2  ;;  %v4329_v39 = vsel %vm4326_vm4, %v4319_v2, %v4321_v33 }
 0x149   : > { %7344 = vmatpush1.msk.msra.mxu0 %vm333_vm1, %v4329_v39  ;;  %7340 = vmatprep.subr.msk.mxu1 %vm333_vm1, %v4328_v38 }
 0x14a   : > { %7345 = vmatmul.mubr.msk.f32.vlgmr.msra.gmra.mrb[34].mxu0 %vm326_vm2, %v7339_v37  ;;  %v4591_v40 = vpop.permute.xlu1 %4590 }
 0x14b   : > { %v4315_v41 = vpop.permute.xlu0 %4314  ;;  %4683 = vmatprep.mubr.f32.mxu0 %v8474_v62 }
 0x14c   : > { %v4327_v42 = vsel %vm4326_vm4, %v4315_v41, %v4317_v6 }
 0x14d   : > { %7341 = vmatpush1.msk.msra.mxu1 %vm333_vm1, %v4327_v42 }
 0x14e   : > { %7342 = vmatmul.mubr.msk.f32.vlgmr.msra.gmra.mrb[32].mxu1 %vm326_vm2, %v7339_v37  ;;  %v4589_v43 = vpop.permute.xlu1 %4588  ;;  %7560 = vmatprep.subr.mxu1 %v8474_v62 }
 0x14f   : > { %v4601_v44 = vsel %vm4600_vm6, %v4589_v43, %v4591_v40  ;;  %v4593_v45 = vpop.permute.xlu0 %4592  ;;  %7562 = vmatprep.mubr.msk.f32.mxu1 %vm7869_vm5, %v8474_v62 }
 0x150   : > { %v4602_v46 = vsel %vm4600_vm6, %v4591_v40, %v4593_v45 }
 0x151   : > { %7349 = vmatprep.subr.msk.mxu0 %vm333_vm1, %v4602_v46  ;;  %v7384_v46 = vld [vmem:[%s8886_s2 + $0x4c] sm:$0xf] }
 0x152   : > { %7350 = vmatpush1.msk.msra.mxu0 %vm333_vm1, %v4601_v44  ;;  %v4597_v48 = vpop.permute.xlu1 %4596 }
 0x153   : > { %7351 = vmatmul.mubr.msk.f32.vlgmr.msra.gmra.mrb[36].mxu0 %vm326_vm2, %v7348_v47  ;;  %v4325_v49 = vpop.permute.xlu0 %4324  ;;  %7565 = vmatprep.subr.mxu0 %v8474_v62 }
 0x154   : > { %v4331_v50 = vsel %vm4326_vm4, %v4323_v32, %v4325_v49  ;;  %7567 = vmatprep.mubr.msk.f32.mxu0 %vm7869_vm5, %v8474_v62  ;;  %v6938_v32 = vld [vmem:[#allocation2 + $0x48] sm:$0xf0] }
 0x155   : > { %7561 = vmatpush3.msk.msra.mxu1 %vm333_vm1, %v4331_v50 }
 0x156   : > { %7563 = vmatmul.mubr.msk.f32.vlgmr.msra.gmra.mrb[34].mxu1 %vm326_vm2, %v7339_v37  ;;  %v4595_v52 = vpop.permute.xlu1 %4594 }
 0x157   : > { %v4603_v53 = vsel %vm4600_vm6, %v4593_v45, %v4595_v52  ;;  %v4604_v54 = vsel %vm4600_vm6, %v4595_v52, %v4597_v48  ;;  %v4599_v55 = vpop.permute.xlu0 %4598  ;;  %4754 = vmatprep.mubr.f32.mxu1 %v8474_v62 }
 0x158   : > { %v4605_v57 = vsel %vm4600_vm6, %v4597_v48, %v4599_v55  ;;  %7352 = vmatprep.subr.msk.mxu1 %vm333_vm1, %v4604_v54 }
 0x159   : > { %7566 = vmatpush3.msk.msra.mxu0 %vm333_vm1, %v4605_v57  ;;  %7353 = vmatpush1.msk.msra.mxu1 %vm333_vm1, %v4603_v53 }
 0x15a   : > { %7568 = vmatmul.mubr.msk.f32.vlgmr.msra.gmra.mrb[38].mxu0 %vm326_vm2, %v7348_v47  ;;  %v5126_v58 = vpop.permute.xlu1 %5125  ;;  %7354 = vmatmul.mubr.msk.f32.vlgmr.msra.gmra.mrb[36].mxu1 %vm326_vm2, %v7348_v47 }
 0x15b   : > { %v5124_v59 = vpop.permute.xlu0 %5123  ;;  %7361 = vmatprep.subr.msk.mxu0 %vm333_vm1, %v8416_v36  ;;  %7358 = vmatprep.subr.msk.mxu1 %vm333_vm1, %v4874_v56 }
 0x15c   : > { %v5133_v61 = vsel %vm5129_vm7, %v5124_v59, %v5126_v58  ;;  %7362 = vmatpush1.msk.msra.mxu0 %vm333_vm1, %v8406_v34  ;;  %5024 = vmatprep.mubr.f32.mxu0 %v8474_v62 }
 0x15d   : > { %7359 = vmatpush1.msk.msra.mxu1 %vm333_vm1, %v4866_v51  ;;  %4953 = vmatprep.mubr.f32.mxu1 %v8474_v62 }
 0x15e   : > { %7363 = vmatmul.mubr.msk.f32.vlgmr.msra.gmra.mrb[40].mxu0 %vm326_vm2, %v7357_v60  ;;  %7370 = vmatprep.subr.msk.mxu0 %vm333_vm1, %v5133_v61  ;;  %v5120_v36 = vpop.permute.xlu1 %5119 }
 0x15f   : > { %7360 = vmatmul.mubr.msk.f32.vlgmr.msra.gmra.mrb[38].mxu1 %vm326_vm2, %v7357_v60  ;;  %v5122_v7 = vpop.permute.xlu0 %5121  ;;  %7570 = vmatprep.subr.mxu1 %v8474_v62 }
 0x160   : > { %v5131_v0 = vsel %vm5129_vm7, %v5120_v36, %v5122_v7  ;;  %v5132_v34 = vsel %vm5129_vm7, %v5122_v7, %v5124_v59  ;;  %7571 = vmatpush3.msk.msra.mxu1 %vm333_vm1, %v4868_v63  ;;  %7572 = vmatprep.mubr.msk.f32.mxu1 %vm7869_vm5, %v8474_v62 }
 0x161   : > { %7371 = vmatpush1.msk.msra.mxu0 %vm333_vm1, %v5132_v34  ;;  %7367 = vmatprep.subr.msk.mxu1 %vm333_vm1, %v5131_v0 }
 0x162   : > { %v5128_v8 = vpop.permute.xlu1 %5127  ;;  %5283 = vmatprep.mubr.f32.mxu0 %v8474_v62  ;;  %7575 = vmatprep.subr.mxu0 %v8474_v62 }
 0x163   : > { %7573 = vmatmul.mubr.msk.f32.vlgmr.msra.gmra.mrb[40].mxu1 %vm326_vm2, %v7357_v60  ;;  %v5118_v9 = vpop.permute.xlu0 %5117  ;;  %v5134_v11 = vsel %vm5129_vm7, %v5126_v58, %v5128_v8 }
 0x164   : > { %v5130_v12 = vsel %vm5129_vm7, %v5118_v9, %v5120_v36  ;;  %5212 = vmatprep.mubr.f32.mxu1 %v8474_v62 }
 0x165   : > { %7368 = vmatpush1.msk.msra.mxu1 %vm333_vm1, %v5130_v12 }
 0x166   : > { %7372 = vmatmul.mubr.msk.f32.vlgmr.msra.gmra.mrb[40].mxu0 %vm326_vm2, %v7366_v10  ;;  %v5385_v13 = vpop.permute.xlu1 %5384 }
 0x167   : > { %7576 = vmatpush3.msk.msra.mxu0 %vm333_vm1, %v5134_v11  ;;  %v5383_v14 = vpop.permute.xlu0 %5382  ;;  %7577 = vmatprep.mubr.msk.f32.mxu0 %vm7869_vm5, %v8474_v62 }
 0x168   : > { %v5392_v17 = vsel %vm5388_vm8, %v5383_v14, %v5385_v13  ;;  %7369 = vmatmul.mubr.msk.f32.vlgmr.msra.gmra.mrb[38].mxu1 %vm326_vm2, %v7366_v10 }
 0x169   : > { %7379 = vmatprep.subr.msk.mxu0 %vm333_vm1, %v5392_v17  ;;  %5471 = vmatprep.mubr.f32.mxu1 %v8474_v62 }
 0x16a   : > { %v8633_v18 = vpop.f32.mrb[0].mxu0  ;;  %7578 = vmatmul.mubr.msk.f32.vlgmr.msra.gmra.mrb[42].mxu0 %vm326_vm2, %v7366_v10  ;;  %v5379_v20 = vpop.permute.xlu1 %5378 }
 0x16b   : > { %v8636_v21 = vpop.f32.mrb[1].mxu0  ;;  %v5381_v22 = vpop.permute.xlu0 %5380  ;;  %5542 = vmatprep.mubr.f32.mxu0 %v8474_v62 }
 0x16c   : > { %v5390_v19 = vsel %vm5388_vm8, %v5379_v20, %v5381_v22  ;;  %v5391_v23 = vsel %vm5388_vm8, %v5381_v22, %v5383_v14 }
 0x16d   : > { %7380 = vmatpush1.msk.msra.mxu0 %vm333_vm1, %v5391_v23  ;;  %7376 = vmatprep.subr.msk.mxu1 %vm333_vm1, %v5390_v19 }
 0x16e   : > { %v8646_v26 = vpop.f32.mrb[0].mxu1  ;;  %v5387_v27 = vpop.permute.xlu1 %5386  ;;  %7381 = vmatmul.mubr.msk.f32.vlgmr.msra.gmra.mrb[40].mxu0 %vm326_vm2, %v7375_v16 }
 0x16f   : > { %v8649_v28 = vpop.f32.mrb[2].mxu0  ;;  %v8651_v29 = vpop.f32.mrb[1].mxu1  ;;  %5801 = vmatprep.mubr.f32.mxu0 %v8474_v62  ;;  %v5393_v6 = vsel %vm5388_vm8, %v5385_v13, %v5387_v27 }
 0x170   : > { %v6939_v24 = vadd.f32 %v6934_v25, %v8649_v28  ;;  %v8655_v4 = vpop.f32.mrb[3].mxu0  ;;  %v5377_v5 = vpop.permute.xlu0 %5376 }
 0x171   : > { %v6940_v3 = vadd.f32 %v6935_v15, %v8655_v4  ;;  %v5389_v31 = vsel %vm5388_vm8, %v5377_v5, %v5379_v20 }
 0x172   : > { %6944 = vst [vmem:[#allocation2 + $0x28] sm:$0xf0] %v6939_v24  ;;  %7377 = vmatpush1.msk.msra.mxu1 %vm333_vm1, %v5389_v31  ;;  %v8660_v33 = vpop.f32.mrb[2].mxu1  ;;  %v5644_v35 = vpop.permute.xlu1 %5643 }
 0x173   : > { %6945 = vst [vmem:[#allocation2 + $0x30] sm:$0xf0] %v6940_v3  ;;  %v6941_v2 = vadd.f32 %v6936_v30, %v8660_v33  ;;  %7378 = vmatmul.mubr.msk.f32.vlgmr.msra.gmra.mrb[38].mxu1 %vm326_vm2, %v7375_v16  ;;  %7580 = vmatprep.subr.mxu1 %v8474_v62  ;;  %v8666_v37 = vpop.f32.mrb[3].mxu1  ;;  %v8668_v38 = vpop.f32.mrb[4].mxu0  ;;  %v7430_v30 = vld [vmem:[%s8887_s3 + $0x8] sm:$0xf] }
 0x174   : > { %v6942_v39 = vadd.f32 %v6937_v1, %v8666_v37  ;;  %7581 = vmatpush3.msk.msra.mxu1 %vm333_vm1, %v5393_v6  ;;  %v5642_v40 = vpop.permute.xlu0 %5641  ;;  %v6943_v41 = vadd.f32 %v8668_v38, %v6938_v32  ;;  %7582 = vmatprep.mubr.msk.f32.mxu1 %vm7869_vm5, %v8474_v62  ;;  %v8675_v42 = vpop.f32.mrb[5].mxu0  ;;  %v7402_v6 = vld [vmem:[%s8886_s2 + $0x54] sm:$0xf] }
 0x175   : > { %6946 = vst [vmem:[#allocation2 + $0x38] sm:$0xf0] %v6941_v2  ;;  %v5651_v43 = vsel %vm5647_vm9, %v5642_v40, %v5644_v35  ;;  %7005 = vperm.xlu1 %7760, %v7430_v30  }
 0x176   : > { %6947 = vst [vmem:[#allocation2 + $0x40] sm:$0xf0] %v6942_v39  ;;  %6948 = vst [vmem:[#allocation2 + $0x48] sm:$0xf0] %v6943_v41  ;;  %7388 = vmatprep.subr.msk.mxu0 %vm333_vm1, %v5651_v43  ;;  %v5638_v44 = vpop.permute.xlu1 %5637 }
 0x177   : > { %7583 = vmatmul.mubr.msk.f32.vlgmr.msra.gmra.mrb[42].mxu1 %vm326_vm2, %v7375_v16  ;;  %v7393_v16 = vld [vmem:[%s8886_s2 + $0x50] sm:$0xf] }
 0x178   : > { %v5640_v45 = vpop.permute.xlu0 %5639  ;;  %5730 = vmatprep.mubr.f32.mxu1 %v8474_v62 }
 0x179   : > { %v5649_v47 = vsel %vm5647_vm9, %v5638_v44, %v5640_v45  ;;  %v5650_v48 = vsel %vm5647_vm9, %v5640_v45, %v5642_v40  ;;  %v7018_v49 = vld [vmem:[#allocation2 + $0x28] sm:$0xf0] }
 0x17a   : > { %7389 = vmatpush1.msk.msra.mxu0 %vm333_vm1, %v5650_v48  ;;  %7385 = vmatprep.subr.msk.mxu1 %vm333_vm1, %v5649_v47  ;;  %v5646_v50 = vpop.permute.xlu1 %5645  ;;  %v7019_v51 = vld [vmem:[#allocation2 + $0x30] sm:$0xf0]  ;;  %v7024_v52 = vsel %vm7023_vm10, %v7018_v49, 0.0 }
 0x17b   : > { %7390 = vmatmul.mubr.msk.f32.vlgmr.msra.gmra.mrb[40].mxu0 %vm326_vm2, %v7384_v46  ;;  %v5652_v53 = vsel %vm5647_vm9, %v5644_v35, %v5646_v50  ;;  %7585 = vmatprep.subr.mxu0 %v8474_v62  ;;  %v7025_v54 = vsel %vm7023_vm10, %v7019_v51, 0.0 }
 0x17c   : > { %v5636_v55 = vpop.permute.xlu0 %5635  ;;  %7586 = vmatpush3.msk.msra.mxu0 %vm333_vm1, %v5652_v53  ;;  %7587 = vmatprep.mubr.msk.f32.mxu0 %vm7869_vm5, %v8474_v62  ;;  %v7020_v56 = vld [vmem:[#allocation2 + $0x38] sm:$0xf0]  ;;  %v7026_v57 = vadd.f32 %v7025_v54, %v7024_v52 }
 0x17d   : > { %v5648_v58 = vsel %vm5647_vm9, %v5636_v55, %v5638_v44  ;;  %v7021_v59 = vld [vmem:[#allocation2 + $0x40] sm:$0xf0]  ;;  %v7022_v60 = vld [vmem:[#allocation2 + $0x48] sm:$0xf0]  ;;  %v7027_v61 = vsel %vm7023_vm10, %v7020_v56, 0.0 }
 0x17e   : > { %7386 = vmatpush1.msk.msra.mxu1 %vm333_vm1, %v5648_v58  ;;  %v5903_v63 = vpop.permute.xlu1 %5902  ;;  %v7028_v36 = vadd.f32 %v7027_v61, %v7026_v57  ;;  %v7029_v7 = vsel %vm7023_vm10, %v7021_v59, 0.0  ;;  %v7031_v0 = vsel %vm7023_vm10, %v7022_v60, 0.0  ;;  %v7411_v56 = vld [vmem:[%s8886_s2 + $0x58] sm:$0xf] }
 0x17f   : > { %7588 = vmatmul.mubr.msk.f32.vlgmr.msra.gmra.mrb[44].mxu0 %vm326_vm2, %v7384_v46  ;;  %7387 = vmatmul.mubr.msk.f32.vlgmr.msra.gmra.mrb[38].mxu1 %vm326_vm2, %v7384_v46 }
 0x180   : > { %v5901_v34 = vpop.permute.xlu0 %5900  ;;  %v7030_v8 = vadd.f32 %v7029_v7, %v7028_v36  ;;  %5989 = vmatprep.mubr.f32.mxu1 %v8474_v62  ;;  %6060 = vmatprep.mubr.f32.mxu0 %v8474_v62 }
 0x181   : > { %v5910_v9 = vsel %vm5906_vm11, %v5901_v34, %v5903_v63  ;;  %v822_v10 = vpop.f32.mrb[6].mxu1 }
 0x182   : > { %v830_v11 = vadd.f32 %v822_v10, %v8675_v42  ;;  %7397 = vmatprep.subr.msk.mxu0 %vm333_vm1, %v5910_v9  ;;  %v5897_v12 = vpop.permute.xlu1 %5896  ;;  %v7032_v13 = vadd.f32 %v7031_v0, %v7030_v8  ;;  %v7494_v14 = vpop.f32.mrb[7].mxu1  ;;  %v7420_v9 = vld [vmem:[%s8886_s2 + $0x5c] sm:$0xf] }
 0x183   : > { %v1081_v17 = vpop.f32.mrb[8].mxu0 }
 0x184   : > { %v1089_v20 = vadd.f32 %v1081_v17, %v830_v11  ;;  %v5899_v22 = vpop.permute.xlu0 %5898  ;;  %7033 = vadd.xlane.f32.xlu0 %v7032_v13  ;;  %v7499_v19 = vpop.f32.mrb[9].mxu0 }
 0x185   : > { %v5908_v23 = vsel %vm5906_vm11, %v5897_v12, %v5899_v22  ;;  %v5909_v25 = vsel %vm5906_vm11, %v5899_v22, %v5901_v34 }
 0x186   : > { %7398 = vmatpush1.msk.msra.mxu0 %vm333_vm1, %v5909_v25  ;;  %7394 = vmatprep.subr.msk.mxu1 %vm333_vm1, %v5908_v23  ;;  %v5905_v27 = vpop.permute.xlu1 %5904 }
 0x187   : > { %7399 = vmatmul.mubr.msk.f32.vlgmr.msra.gmra.mrb[40].mxu0 %vm326_vm2, %v7393_v16  ;;  %v5911_v3 = vsel %vm5906_vm11, %v5903_v63, %v5905_v27 }
 0x188   : > { %v5895_v15 = vpop.permute.xlu0 %5894  ;;  %6319 = vmatprep.mubr.f32.mxu0 %v8474_v62 }
 0x189   : > { %v5907_v24 = vsel %vm5906_vm11, %v5895_v15, %v5897_v12  ;;  %v2646_v15 = vld [vmem:[#allocation2 + $0x10] sm:$0xf] }
 0x18a   : > { %7395 = vmatpush1.msk.msra.mxu1 %vm333_vm1, %v5907_v24  ;;  %v6162_v5 = vpop.permute.xlu1 %6161 }
 0x18b   : > { %7396 = vmatmul.mubr.msk.f32.vlgmr.msra.gmra.mrb[38].mxu1 %vm326_vm2, %v7393_v16  ;;  %7590 = vmatprep.subr.mxu1 %v8474_v62 }
 0x18c   : > { %7591 = vmatpush3.msk.msra.mxu1 %vm333_vm1, %v5911_v3  ;;  %v6160_v31 = vpop.permute.xlu0 %6159  ;;  %7592 = vmatprep.mubr.msk.f32.mxu1 %vm7869_vm5, %v8474_v62 }
 0x18d   : > { %v6169_v1 = vsel %vm6165_vm12, %v6160_v31, %v6162_v5 }
 0x18e   : > { %7406 = vmatprep.subr.msk.mxu0 %vm333_vm1, %v6169_v1  ;;  %v6156_v32 = vpop.permute.xlu1 %6155 }
 0x18f   : > { %7593 = vmatmul.mubr.msk.f32.vlgmr.msra.gmra.mrb[44].mxu1 %vm326_vm2, %v7393_v16 }
 0x190   : > { %v6158_v35 = vpop.permute.xlu0 %6157  ;;  %6248 = vmatprep.mubr.f32.mxu1 %v8474_v62 }
 0x191   : > { %v6167_v2 = vsel %vm6165_vm12, %v6156_v32, %v6158_v35  ;;  %v6168_v39 = vsel %vm6165_vm12, %v6158_v35, %v6160_v31 }
 0x192   : > { %7407 = vmatpush1.msk.msra.mxu0 %vm333_vm1, %v6168_v39  ;;  %7403 = vmatprep.subr.msk.mxu1 %vm333_vm1, %v6167_v2  ;;  %v6164_v40 = vpop.permute.xlu1 %6163 }
 0x193   : > { %7408 = vmatmul.mubr.msk.f32.vlgmr.msra.gmra.mrb[40].mxu0 %vm326_vm2, %v7402_v6  ;;  %v6170_v41 = vsel %vm6165_vm12, %v6162_v5, %v6164_v40  ;;  %7595 = vmatprep.subr.mxu0 %v8474_v62  ;;  %v2648_v40 = vld [vmem:[#allocation2 + $0x20] sm:$0xf] }
 0x194   : > { %v6154_v43 = vpop.permute.xlu0 %6153  ;;  %7596 = vmatpush3.msk.msra.mxu0 %vm333_vm1, %v6170_v41  ;;  %7597 = vmatprep.mubr.msk.f32.mxu0 %vm7869_vm5, %v8474_v62 }
 0x195   : > { %v6166_v44 = vsel %vm6165_vm12, %v6154_v43, %v6156_v32 }
 0x196   : > { %7404 = vmatpush1.msk.msra.mxu1 %vm333_vm1, %v6166_v44  ;;  %v6421_v45 = vpop.permute.xlu1 %6420  ;;  %v2644_v44 = vld [vmem:[#allocation2] sm:$0xf] }
 0x197   : > { %7598 = vmatmul.mubr.msk.f32.vlgmr.msra.gmra.mrb[46].mxu0 %vm326_vm2, %v7402_v6  ;;  %7405 = vmatmul.mubr.msk.f32.vlgmr.msra.gmra.mrb[38].mxu1 %vm326_vm2, %v7402_v6 }
 0x198   : > { %v6419_v46 = vpop.permute.xlu0 %6418  ;;  %6507 = vmatprep.mubr.f32.mxu1 %v8474_v62  ;;  %6578 = vmatprep.mubr.f32.mxu0 %v8474_v62 }
 0x199   : > { %v6428_v47 = vsel %vm6424_vm13, %v6419_v46, %v6421_v45  ;;  %v1340_v48 = vpop.f32.mrb[8].mxu1  ;;  %v1599_v49 = vpop.f32.mrb[10].mxu0 }
 0x19a   : > { %v1348_v50 = vadd.f32 %v1340_v48, %v1089_v20  ;;  %7415 = vmatprep.subr.msk.mxu0 %vm333_vm1, %v6428_v47  ;;  %v6415_v51 = vpop.permute.xlu1 %6414  ;;  %v7504_v52 = vpop.f32.mrb[9].mxu1  ;;  %v2645_v48 = vld [vmem:[#allocation2 + $0x8] sm:$0xf] }
 0x19b   : > { %v7509_v53 = vpop.f32.mrb[11].mxu0 }
 0x19c   : > { %v1607_v54 = vadd.f32 %v1599_v49, %v1348_v50  ;;  %v6417_v55 = vpop.permute.xlu0 %6416 }
 0x19d   : > { %v6426_v57 = vsel %vm6424_vm13, %v6415_v51, %v6417_v55  ;;  %v6427_v58 = vsel %vm6424_vm13, %v6417_v55, %v6419_v46 }
 0x19e   : > { %7416 = vmatpush1.msk.msra.mxu0 %vm333_vm1, %v6427_v58  ;;  %7412 = vmatprep.subr.msk.mxu1 %vm333_vm1, %v6426_v57  ;;  %v6423_v59 = vpop.permute.xlu1 %6422 }
 0x19f   : > { %7417 = vmatmul.mubr.msk.f32.vlgmr.msra.gmra.mrb[40].mxu0 %vm326_vm2, %v7411_v56  ;;  %v6429_v36 = vsel %vm6424_vm13, %v6421_v45, %v6423_v59 }
 0x1a0   : > { %v6413_v60 = vpop.permute.xlu0 %6412  ;;  %6837 = vmatprep.mubr.f32.mxu0 %v8474_v62 }
 0x1a1   : > { %v6425_v61 = vsel %vm6424_vm13, %v6413_v60, %v6415_v51 }
 0x1a2   : > { %7413 = vmatpush1.msk.msra.mxu1 %vm333_vm1, %v6425_v61  ;;  %v6680_v63 = vpop.permute.xlu1 %6679 }
 0x1a3   : > { %7414 = vmatmul.mubr.msk.f32.vlgmr.msra.gmra.mrb[38].mxu1 %vm326_vm2, %v7411_v56  ;;  %7600 = vmatprep.subr.mxu1 %v8474_v62 }
 0x1a4   : > { %7601 = vmatpush3.msk.msra.mxu1 %vm333_vm1, %v6429_v36  ;;  %v6678_v7 = vpop.permute.xlu0 %6677  ;;  %7602 = vmatprep.mubr.msk.f32.mxu1 %vm7869_vm5, %v8474_v62 }
 0x1a5   : > { %v6687_v0 = vsel %vm6683_vm14, %v6678_v7, %v6680_v63 }
 0x1a6   : > { %7424 = vmatprep.subr.msk.mxu0 %vm333_vm1, %v6687_v0  ;;  %v6674_v34 = vpop.permute.xlu1 %6673 }
 0x1a7   : > { %7603 = vmatmul.mubr.msk.f32.vlgmr.msra.gmra.mrb[46].mxu1 %vm326_vm2, %v7411_v56 }
 0x1a8   : > { %v6676_v8 = vpop.permute.xlu0 %6675  ;;  %6766 = vmatprep.mubr.f32.mxu1 %v8474_v62 }
 0x1a9   : > { %v6685_v10 = vsel %vm6683_vm14, %v6674_v34, %v6676_v8  ;;  %v6686_v11 = vsel %vm6683_vm14, %v6676_v8, %v6678_v7 }
 0x1aa   : > { %7425 = vmatpush1.msk.msra.mxu0 %vm333_vm1, %v6686_v11  ;;  %7421 = vmatprep.subr.msk.mxu1 %vm333_vm1, %v6685_v10  ;;  %v6682_v12 = vpop.permute.xlu1 %6681 }
 0x1ab   : > { %7426 = vmatmul.mubr.msk.f32.vlgmr.msra.gmra.mrb[40].mxu0 %vm326_vm2, %v7420_v9  ;;  %v6688_v13 = vsel %vm6683_vm14, %v6680_v63, %v6682_v12  ;;  %7605 = vmatprep.subr.mxu0 %v8474_v62 }
 0x1ac   : > { %v6672_v14 = vpop.permute.xlu0 %6671  ;;  %7606 = vmatpush3.msk.msra.mxu0 %vm333_vm1, %v6688_v13  ;;  %7607 = vmatprep.mubr.msk.f32.mxu0 %vm7869_vm5, %v8474_v62  ;;  %v2647_v62 = vld [vmem:[#allocation2 + $0x18] sm:$0xf] }
 0x1ad   : > { %v6684_v17 = vsel %vm6683_vm14, %v6672_v14, %v6674_v34 }
 0x1ae   : > { %7422 = vmatpush1.msk.msra.mxu1 %vm333_vm1, %v6684_v17 }
 0x1af   : > { %7423 = vmatmul.mubr.msk.f32.vlgmr.msra.gmra.mrb[38].mxu1 %vm326_vm2, %v7420_v9  ;;  %7608 = vmatmul.mubr.msk.f32.vlgmr.msra.gmra.mrb[48].mxu0 %vm326_vm2, %v7420_v9 }
 0x1b1   : > { %v1858_v20 = vpop.f32.mrb[10].mxu1  ;;  %v2117_v22 = vpop.f32.mrb[12].mxu0 }
 0x1b2   : > { %v1866_v16 = vadd.f32 %v1858_v20, %v1607_v54  ;;  %v7519_v19 = vpop.f32.mrb[13].mxu0  ;;  %v7514_v23 = vpop.f32.mrb[11].mxu1 }
 0x1b4   : > { %v2125_v25 = vadd.f32 %v2117_v22, %v1866_v16 }
 0x1bb   : > { %v8793_v31 = vpop.permute.xlu1 %6982 }
 0x1bf   : > { %v6961_v50 = vpop.permute.xlu1 %6960 }
 0x1c5   : > { %v2564_v27 = vpop.f32.mrb[6].mxu0 }
 0x1c6   : > { %v7612_v24 = vadd.f32 %v2564_v27, %v8646_v26  ;;  %v2566_v5 = vpop.f32.mrb[7].mxu0 }
 0x1c7   : > { %v7613_v30 = vadd.f32 %v2566_v5, %v8651_v29 }
 0x1c8   : > { %v2651_v3 = vadd.f32 %v7612_v24, %v2646_v15 }
 0x1c9   : > { %v2652_v1 = vadd.f32 %v7613_v30, %v2647_v62  ;;  %v2376_v32 = vpop.f32.mrb[12].mxu1  ;;  %v2635_v35 = vpop.f32.mrb[14].mxu0 }
 0x1ca   : > { %2656 = vst [vmem:[#allocation2 + $0x10] sm:$0xf] %v2651_v3  ;;  %v2384_v6 = vadd.f32 %v2376_v32, %v2125_v25  ;;  %v7524_v2 = vpop.f32.mrb[13].mxu1  ;;  %v7529_v39 = vpop.f32.mrb[15].mxu0 }
 0x1cb   : > { %2657 = vst [vmem:[#allocation2 + $0x18] sm:$0xf] %v2652_v1 }
 0x1cc   : > { %v2643_v41 = vadd.f32 %v2635_v35, %v2384_v6 }
 0x1cd   : > { %v2493_v43 = vpop.f32.mrb[4].mxu1 }
 0x1ce   : > { %v2653_v45 = vadd.f32 %v2648_v40, %v2643_v41  ;;  %v7610_v46 = vadd.f32 %v2493_v43, %v8633_v18  ;;  %v2495_v47 = vpop.f32.mrb[5].mxu1 }
 0x1cf   : > { %v7611_v49 = vadd.f32 %v2495_v47, %v8636_v21 }
 0x1d0   : > { %2658 = vst [vmem:[#allocation2 + $0x20] sm:$0xf] %v2653_v45  ;;  %v2649_v51 = vadd.f32 %v7610_v46, %v2644_v44 }
 0x1d1   : > { %v2650_v52 = vadd.f32 %v7611_v49, %v2645_v48  ;;  %v6954_v53 = vld [vmem:[#allocation2 + $0x10] sm:$0xf] }
 0x1d2   : > { %2654 = vst [vmem:[#allocation2] sm:$0xf] %v2649_v51  ;;  %v6955_v54 = vld [vmem:[#allocation2 + $0x18] sm:$0xf]  ;;  %v6965_v55 = vadd.f32 %v6961_v50, %v6954_v53 }
 0x1d3   : > { %2655 = vst [vmem:[#allocation2 + $0x8] sm:$0xf] %v2650_v52  ;;  %v6966_v56 = vadd.f32 %v6961_v50, %v6955_v54 }
 0x1d4   : > { %6970 = vst [vmem:[#allocation2 + $0x10] sm:$0xf] %v6965_v55 }
 0x1d5   : > { %6971 = vst [vmem:[#allocation2 + $0x18] sm:$0xf] %v6966_v56  ;;  %v2838_v57 = vpop.f32.mrb[16].mxu0 }
 0x1d6   : > { %v2920_v58 = vrot.slane %v2838_v57, 4  ;;  %v2840_v59 = vpop.f32.mrb[17].mxu0 }
 0x1d7   : > { %v6956_v60 = vld [vmem:[#allocation2 + $0x20] sm:$0xf]  ;;  %v2921_v61 = vrot.slane %v2840_v59, 4 }
 0x1d8   : > { %v6967_v63 = vadd.f32 %v6961_v50, %v6956_v60  ;;  %v2930_v36 = vadd.f32 %v2920_v58, %v8646_v26  ;;  %v2767_v7 = vpop.f32.mrb[14].mxu1 }
 0x1d9   : > { %v6952_v0 = vld [vmem:[#allocation2] sm:$0xf]  ;;  %v2931_v34 = vadd.f32 %v2921_v61, %v8651_v29  ;;  %v2918_v8 = vrot.slane %v2767_v7, 4  ;;  %v2769_v9 = vpop.f32.mrb[15].mxu1 }
 0x1da   : > { %v6953_v10 = vld [vmem:[#allocation2 + $0x8] sm:$0xf]  ;;  %v6963_v11 = vadd.f32 %v6961_v50, %v6952_v0  ;;  %6972 = vst [vmem:[#allocation2 + $0x20] sm:$0xf] %v6967_v63  ;;  %v2919_v12 = vrot.slane %v2769_v9, 4 }
 0x1db   : > { %v6964_v13 = vadd.f32 %v6961_v50, %v6953_v10  ;;  %v2928_v14 = vadd.f32 %v2918_v8, %v8633_v18 }
 0x1dc   : > { %6968 = vst [vmem:[#allocation2] sm:$0xf] %v6963_v11  ;;  %v2929_v17 = vadd.f32 %v2919_v12, %v8636_v21 }
 0x1dd   : > { %6969 = vst [vmem:[#allocation2 + $0x8] sm:$0xf] %v6964_v13  ;;  %v3041_v20 = vpop.f32.mrb[18].mxu0 }
 0x1de   : > { %v3192_v22 = vrot.slane %v3041_v20, 4  ;;  %v3043_v26 = vpop.f32.mrb[19].mxu0 }
 0x1df   : > { %v3193_v16 = vrot.slane %v3043_v26, 4 }
 0x1e0   : > { %v3202_v19 = vadd.f32 %v3192_v22, %v2928_v14 }
 0x1e1   : > { %v3203_v23 = vadd.f32 %v3193_v16, %v2929_v17  ;;  %v2909_v29 = vpop.f32.mrb[16].mxu1 }
 0x1e2   : > { %v2922_v25 = vrot.slane %v2909_v29, 4  ;;  %v7534_v27 = vpop.f32.mrb[17].mxu1  ;;  %v7036_v29 = vld [vmem:[%s8888_s4] sm:$0xf] }
 0x1e4   : > { %v2932_v15 = vadd.f32 %v2922_v25, %v8675_v42 }
 0x1e5   : > { %v3183_v24 = vpop.f32.mrb[20].mxu0 }
 0x1e6   : > { %v3196_v5 = vrot.slane %v3183_v24, 4  ;;  %v3112_v62 = vpop.f32.mrb[18].mxu1  ;;  %v7539_v30 = vpop.f32.mrb[21].mxu0 }
 0x1e7   : > { %v3194_v18 = vrot.slane %v3112_v62, 4  ;;  %v3114_v3 = vpop.f32.mrb[19].mxu1 }
 0x1e8   : > { %v3206_v1 = vadd.f32 %v3196_v5, %v2932_v15  ;;  %v3195_v21 = vrot.slane %v3114_v3, 4  ;;  %v7038_v5 = vrot.slane %v7036_v29, 4  ;;  %v4855_v29 = vld [vmem:[#allocation2 + $0x20] sm:$0xf0] }
 0x1e9   : > { %v3204_v32 = vadd.f32 %v3194_v18, %v2930_v36 }
 0x1ea   : > { %v3205_v35 = vadd.f32 %v3195_v21, %v2931_v34 }
 0x1ed   : > { %v3386_v6 = vpop.f32.mrb[22].mxu0 }
 0x1ee   : > { %v3468_v2 = vrot.slane %v3386_v6, 4  ;;  %v3388_v39 = vpop.f32.mrb[23].mxu0 }
 0x1ef   : > { %v3469_v40 = vrot.slane %v3388_v39, 4 }
 0x1f0   : > { %v3478_v41 = vadd.f32 %v3468_v2, %v3204_v32 }
 0x1f1   : > { %v3479_v43 = vadd.f32 %v3469_v40, %v3205_v35  ;;  %v3315_v44 = vpop.f32.mrb[20].mxu1 }
 0x1f2   : > { %v3466_v45 = vrot.slane %v3315_v44, 4  ;;  %v3317_v46 = vpop.f32.mrb[21].mxu1 }
 0x1f3   : > { %v3467_v42 = vrot.slane %v3317_v46, 4 }
 0x1f4   : > { %v3476_v47 = vadd.f32 %v3466_v45, %v3202_v19 }
 0x1f5   : > { %v3477_v48 = vadd.f32 %v3467_v42, %v3203_v23 }
 0x1f6   : > { %v3589_v49 = vpop.f32.mrb[24].mxu0 }
 0x1f7   : > { %v3740_v50 = vrot.slane %v3589_v49, 4  ;;  %v3591_v51 = vpop.f32.mrb[25].mxu0 }
 0x1f8   : > { %v3741_v52 = vrot.slane %v3591_v51, 4 }
 0x1f9   : > { %v3750_v53 = vadd.f32 %v3740_v50, %v3476_v47  ;;  %v3457_v54 = vpop.f32.mrb[22].mxu1 }
 0x1fa   : > { %v3751_v55 = vadd.f32 %v3741_v52, %v3477_v48  ;;  %v3470_v56 = vrot.slane %v3457_v54, 4  ;;  %v7544_v57 = vpop.f32.mrb[23].mxu1 }
 0x1fc   : > { %v3480_v58 = vadd.f32 %v3470_v56, %v3206_v1 }
 0x1fd   : > { %v3731_v59 = vpop.f32.mrb[26].mxu0 }
 0x1fe   : > { %v3744_v60 = vrot.slane %v3731_v59, 4  ;;  %v3660_v61 = vpop.f32.mrb[24].mxu1  ;;  %v7549_v63 = vpop.f32.mrb[27].mxu0 }
 0x1ff   : > { %v3742_v36 = vrot.slane %v3660_v61, 4  ;;  %v3662_v7 = vpop.f32.mrb[25].mxu1 }
 0x200   : > { %v3754_v0 = vadd.f32 %v3744_v60, %v3480_v58  ;;  %v3743_v34 = vrot.slane %v3662_v7, 4  ;;  %v4851_v7 = vld [vmem:[#allocation2] sm:$0xf0] }
 0x201   : > { %v3752_v8 = vadd.f32 %v3742_v36, %v3478_v41 }
 0x202   : > { %v3753_v9 = vadd.f32 %v3743_v34, %v3479_v43 }
 0x205   : > { %v3934_v10 = vpop.f32.mrb[28].mxu0 }
 0x206   : > { %v4016_v11 = vrot.slane %v3934_v10, 4  ;;  %v3936_v12 = vpop.f32.mrb[29].mxu0 }
 0x207   : > { %v4017_v13 = vrot.slane %v3936_v12, 4 }
 0x208   : > { %v4026_v14 = vadd.f32 %v4016_v11, %v3752_v8  ;;  %v4852_v8 = vld [vmem:[#allocation2 + $0x8] sm:$0xf0] }
 0x209   : > { %v4027_v17 = vadd.f32 %v4017_v13, %v3753_v9  ;;  %v3863_v20 = vpop.f32.mrb[26].mxu1 }
 0x20a   : > { %v4014_v22 = vrot.slane %v3863_v20, 4  ;;  %v3865_v26 = vpop.f32.mrb[27].mxu1 }
 0x20b   : > { %v4015_v16 = vrot.slane %v3865_v26, 4 }
 0x20c   : > { %v4024_v19 = vadd.f32 %v4014_v22, %v3750_v53 }
 0x20d   : > { %v4025_v23 = vadd.f32 %v4015_v16, %v3751_v55 }
 0x20e   : > { %v4137_v25 = vpop.f32.mrb[30].mxu0 }
 0x20f   : > { %v4288_v27 = vrot.slane %v4137_v25, 4  ;;  %v4139_v15 = vpop.f32.mrb[31].mxu0  ;;  %v4853_v25 = vld [vmem:[#allocation2 + $0x10] sm:$0xf0] }
 0x210   : > { %v4289_v24 = vrot.slane %v4139_v15, 4 }
 0x211   : > { %v4298_v62 = vadd.f32 %v4288_v27, %v4024_v19  ;;  %v4005_v30 = vpop.f32.mrb[28].mxu1  ;;  %v7034_v18 = vpop.xlane.xlu0 %7033 }
 0x212   : > { %v4299_v3 = vadd.f32 %v4289_v24, %v4025_v23  ;;  %v4018_v1 = vrot.slane %v4005_v30, 4  ;;  %v7035_v21 = vmul.f32 0.00390625, %v7034_v18  ;;  %v7554_v32 = vpop.f32.mrb[29].mxu1 }
 0x214   : > { %v4028_v35 = vadd.f32 %v4018_v1, %v3754_v0  ;;  %v7040_v6 = vadd.f32 %v7038_v5, %v7035_v21  ;;  %v4854_v5 = vld [vmem:[#allocation2 + $0x18] sm:$0xf0] }
 0x215   : > { %v4279_v2 = vpop.f32.mrb[32].mxu0  ;;  %v4208_v39 = vpop.f32.mrb[30].mxu1 }
 0x216   : > { %v7041_v40 = vmax.f32 %v7040_v6, 0.0  ;;  %v4292_v41 = vrot.slane %v4279_v2, 4  ;;  %v4290_v43 = vrot.slane %v4208_v39, 4  ;;  %v4210_v44 = vpop.f32.mrb[31].mxu1  ;;  %v7559_v45 = vpop.f32.mrb[33].mxu0 }
 0x217   : > { %v4291_v46 = vrot.slane %v4210_v44, 4 }
 0x218   : > { %v4302_v42 = vadd.f32 %v4292_v41, %v4028_v35  ;;  %v4300_v47 = vadd.f32 %v4290_v43, %v4026_v14  ;;  %7044 = vperm.xlu1 %7760, %v7041_v40  }
 0x219   : > { %v4301_v48 = vadd.f32 %v4291_v46, %v4027_v17 }
 0x21d   : > { %v4482_v49 = vpop.f32.mrb[34].mxu0 }
 0x21e   : > { %v4564_v50 = vrot.slane %v4482_v49, 4  ;;  %v4484_v51 = vpop.f32.mrb[35].mxu0 }
 0x21f   : > { %v4565_v52 = vrot.slane %v4484_v51, 4 }
 0x220   : > { %v4574_v53 = vadd.f32 %v4564_v50, %v4300_v47 }
 0x221   : > { %v4575_v54 = vadd.f32 %v4565_v52, %v4301_v48  ;;  %v4411_v55 = vpop.f32.mrb[32].mxu1 }
 0x222   : > { %v4562_v56 = vrot.slane %v4411_v55, 4  ;;  %v4413_v57 = vpop.f32.mrb[33].mxu1 }
 0x223   : > { %v4563_v58 = vrot.slane %v4413_v57, 4 }
 0x224   : > { %v4572_v59 = vadd.f32 %v4562_v56, %v4298_v62  ;;  %v6984_v62 = vrot.slane %v8793_v31, 4 }
 0x225   : > { %v4573_v60 = vadd.f32 %v4563_v58, %v4299_v3 }
 0x226   : > { %v4685_v61 = vpop.f32.mrb[36].mxu0 }
 0x227   : > { %v4836_v63 = vrot.slane %v4685_v61, 4  ;;  %v4687_v36 = vpop.f32.mrb[37].mxu0 }
 0x228   : > { %v4837_v0 = vrot.slane %v4687_v36, 4 }
 0x229   : > { %v4846_v34 = vadd.f32 %v4836_v63, %v4572_v59  ;;  %v4553_v9 = vpop.f32.mrb[34].mxu1 }
 0x22a   : > { %v4847_v10 = vadd.f32 %v4837_v0, %v4573_v60  ;;  %v4566_v11 = vrot.slane %v4553_v9, 4  ;;  %v7564_v12 = vpop.f32.mrb[35].mxu1 }
 0x22b   : > { %v4856_v13 = vadd.f32 %v4851_v7, %v4846_v34 }
 0x22c   : > { %v4857_v14 = vadd.f32 %v4852_v8, %v4847_v10  ;;  %v4576_v17 = vadd.f32 %v4566_v11, %v4302_v42  ;;  %v6921_v10 = vld [vmem:[#allocation2 + $0x38] sm:$0xf] }
 0x22d   : > { %4861 = vst [vmem:[#allocation2] sm:$0xf0] %v4856_v13  ;;  %v4827_v20 = vpop.f32.mrb[38].mxu0  ;;  %v4756_v22 = vpop.f32.mrb[36].mxu1  ;;  %v6922_v13 = vld [vmem:[#allocation2 + $0x40] sm:$0xf] }
 0x22e   : > { %4862 = vst [vmem:[#allocation2 + $0x8] sm:$0xf0] %v4857_v14  ;;  %v4840_v26 = vrot.slane %v4827_v20, 4  ;;  %v4838_v16 = vrot.slane %v4756_v22, 4  ;;  %v4758_v19 = vpop.f32.mrb[37].mxu1  ;;  %v7569_v23 = vpop.f32.mrb[39].mxu0 }
 0x22f   : > { %v4839_v27 = vrot.slane %v4758_v19, 4  ;;  %v6923_v19 = vld [vmem:[#allocation2 + $0x48] sm:$0xf] }
 0x230   : > { %v4850_v15 = vadd.f32 %v4840_v26, %v4576_v17  ;;  %v4848_v24 = vadd.f32 %v4838_v16, %v4574_v53  ;;  %v6919_v26 = vld [vmem:[#allocation2 + $0x28] sm:$0xf] }
 0x231   : > { %v4849_v30 = vadd.f32 %v4839_v27, %v4575_v54  ;;  %v6920_v27 = vld [vmem:[#allocation2 + $0x30] sm:$0xf] }
 0x232   : > { %v4860_v18 = vadd.f32 %v4855_v29, %v4850_v15  ;;  %v4858_v3 = vadd.f32 %v4853_v25, %v4848_v24 }
 0x233   : > { %v4859_v1 = vadd.f32 %v4854_v5, %v4849_v30 }
 0x234   : > { %v6973_v21 = vld [vmem:[#allocation2] sm:$0xf0]  ;;  %4865 = vst [vmem:[#allocation2 + $0x20] sm:$0xf0] %v4860_v18  ;;  %4863 = vst [vmem:[#allocation2 + $0x10] sm:$0xf0] %v4858_v3 }
 0x235   : > { %v6986_v32 = vadd.f32 %v6984_v62, %v6973_v21  ;;  %v6974_v35 = vld [vmem:[#allocation2 + $0x8] sm:$0xf0]  ;;  %4864 = vst [vmem:[#allocation2 + $0x18] sm:$0xf0] %v4859_v1 }
 0x236   : > { %v6987_v6 = vadd.f32 %v6984_v62, %v6974_v35  ;;  %v5097_v2 = vpop.f32.mrb[40].mxu1 }
 0x237   : > { %6991 = vst [vmem:[#allocation2] sm:$0xf0] %v6986_v32  ;;  %v5105_v39 = vadd.f32 %v8668_v38, %v5097_v2  ;;  %v7574_v40 = vpop.f32.mrb[41].mxu1 }
 0x238   : > { %6992 = vst [vmem:[#allocation2 + $0x8] sm:$0xf0] %v6987_v6 }
 0x23b   : > { %v6977_v31 = vld [vmem:[#allocation2 + $0x20] sm:$0xf0]  ;;  %v6975_v41 = vld [vmem:[#allocation2 + $0x10] sm:$0xf0] }
 0x23c   : > { %v6990_v43 = vadd.f32 %v6984_v62, %v6977_v31  ;;  %v6988_v44 = vadd.f32 %v6984_v62, %v6975_v41  ;;  %v6976_v45 = vld [vmem:[#allocation2 + $0x18] sm:$0xf0] }
 0x23d   : > { %v6989_v46 = vadd.f32 %v6984_v62, %v6976_v45  ;;  %v5356_v42 = vpop.f32.mrb[42].mxu0 }
 0x23e   : > { %v7052_v47 = vld [vmem:[#allocation2] sm:$0xff]  ;;  %6995 = vst [vmem:[#allocation2 + $0x20] sm:$0xf0] %v6990_v43  ;;  %6993 = vst [vmem:[#allocation2 + $0x10] sm:$0xf0] %v6988_v44  ;;  %v5364_v48 = vadd.f32 %v5356_v42, %v5105_v39  ;;  %v7579_v49 = vpop.f32.mrb[43].mxu0 }
 0x23f   : > { %7062 = vst [vmem:[%s8810_s24] sm:$0xff] %v7052_v47  ;;  %v7053_v38 = vld [vmem:[#allocation2 + $0x8] sm:$0xff]  ;;  %6994 = vst [vmem:[#allocation2 + $0x18] sm:$0xf0] %v6989_v46 }
 0x240   : > { %7063 = vst [vmem:[%s8810_s24 + $0x8] sm:$0xff] %v7053_v38 }
 0x245   : > { %v7056_v50 = vld [vmem:[#allocation2 + $0x20] sm:$0xff]  ;;  %v7054_v51 = vld [vmem:[#allocation2 + $0x10] sm:$0xff] }
 0x246   : > { %7066 = vst [vmem:[%s8810_s24 + $0x20] sm:$0xff] %v7056_v50  ;;  %7064 = vst [vmem:[%s8810_s24 + $0x10] sm:$0xff] %v7054_v51  ;;  %v7055_v52 = vld [vmem:[#allocation2 + $0x18] sm:$0xff] }
 0x247   : > { %7065 = vst [vmem:[%s8810_s24 + $0x18] sm:$0xff] %v7055_v52 }
 0x24a   : > { %v5615_v53 = vpop.f32.mrb[42].mxu1 }
 0x24b   : > { %v5623_v54 = vadd.f32 %v5615_v53, %v5364_v48  ;;  %v7584_v55 = vpop.f32.mrb[43].mxu1 }
 0x252   : > { %v5874_v56 = vpop.f32.mrb[44].mxu0 }
 0x253   : > { %v5882_v57 = vadd.f32 %v5874_v56, %v5623_v54  ;;  %v7589_v58 = vpop.f32.mrb[45].mxu0 }
 0x262   : > { %v6133_v59 = vpop.f32.mrb[44].mxu1 }
 0x263   : > { %v6141_v60 = vadd.f32 %v6133_v59, %v5882_v57  ;;  %v7594_v61 = vpop.f32.mrb[45].mxu1 }
 0x26a   : > { %v6392_v63 = vpop.f32.mrb[46].mxu0 }
 0x26b   : > { %v6400_v36 = vadd.f32 %v6392_v63, %v6141_v60  ;;  %v7599_v7 = vpop.f32.mrb[47].mxu0 }
 0x27a   : > { %v6651_v0 = vpop.f32.mrb[46].mxu1 }
 0x27b   : > { %v6659_v34 = vadd.f32 %v6651_v0, %v6400_v36  ;;  %v7604_v8 = vpop.f32.mrb[47].mxu1 }
 0x27e   : > { %v6839_v9 = vpop.f32.mrb[40].mxu0 }
 0x27f   : > { %v7616_v11 = vadd.f32 %v6839_v9, %v8660_v33  ;;  %v6841_v12 = vpop.f32.mrb[41].mxu0 }
 0x280   : > { %v7617_v14 = vadd.f32 %v6841_v12, %v8666_v37  ;;  %v7006_v37 = vpop.permute.xlu1 %7005 }
 0x281   : > { %v6926_v17 = vadd.f32 %v7616_v11, %v6921_v10 }
 0x282   : > { %v6927_v20 = vadd.f32 %v7617_v14, %v6922_v13  ;;  %v6768_v22 = vpop.f32.mrb[38].mxu1  ;;  %v6910_v16 = vpop.f32.mrb[48].mxu0 }
 0x283   : > { %6931 = vst [vmem:[#allocation2 + $0x38] sm:$0xf] %v6926_v17  ;;  %v7614_v23 = vadd.f32 %v6768_v22, %v8649_v28  ;;  %v6918_v29 = vadd.f32 %v6910_v16, %v6659_v34  ;;  %v6770_v25 = vpop.f32.mrb[39].mxu1  ;;  %v7609_v15 = vpop.f32.mrb[49].mxu0 }
 0x284   : > { %6932 = vst [vmem:[#allocation2 + $0x40] sm:$0xf] %v6927_v20  ;;  %v7615_v33 = vadd.f32 %v6770_v25, %v8655_v4 }
 0x285   : > { %v6924_v24 = vadd.f32 %v7614_v23, %v6919_v26  ;;  %v6928_v5 = vadd.f32 %v6923_v19, %v6918_v29 }
 0x286   : > { %v6925_v62 = vadd.f32 %v7615_v33, %v6920_v27 }
 0x287   : > { %6929 = vst [vmem:[#allocation2 + $0x28] sm:$0xf] %v6924_v24  ;;  %6933 = vst [vmem:[#allocation2 + $0x48] sm:$0xf] %v6928_v5 }
 0x288   : > { %6930 = vst [vmem:[#allocation2 + $0x30] sm:$0xf] %v6925_v62 }
 0x28a   : > { %v6998_v30 = vld [vmem:[#allocation2 + $0x38] sm:$0xf] }
 0x28b   : > { %v6999_v18 = vld [vmem:[#allocation2 + $0x40] sm:$0xf]  ;;  %v7010_v3 = vadd.f32 %v7006_v37, %v6998_v30 }
 0x28c   : > { %v7011_v1 = vadd.f32 %v7006_v37, %v6999_v18 }
 0x28d   : > { %7015 = vst [vmem:[#allocation2 + $0x38] sm:$0xf] %v7010_v3 }
 0x28e   : > { %v6996_v28 = vld [vmem:[#allocation2 + $0x28] sm:$0xf]  ;;  %7016 = vst [vmem:[#allocation2 + $0x40] sm:$0xf] %v7011_v1 }
 0x28f   : > { %v7000_v21 = vld [vmem:[#allocation2 + $0x48] sm:$0xf]  ;;  %v6997_v32 = vld [vmem:[#allocation2 + $0x30] sm:$0xf]  ;;  %v7008_v35 = vadd.f32 %v7006_v37, %v6996_v28 }
 0x290   : > { %v7012_v4 = vadd.f32 %v7006_v37, %v7000_v21  ;;  %v7009_v6 = vadd.f32 %v7006_v37, %v6997_v32 }
 0x291   : > { %7013 = vst [vmem:[#allocation2 + $0x28] sm:$0xf] %v7008_v35 }
 0x292   : > { %7017 = vst [vmem:[#allocation2 + $0x48] sm:$0xf] %v7012_v4  ;;  %7014 = vst [vmem:[#allocation2 + $0x30] sm:$0xf] %v7009_v6 }
 0x297   : > { %v7045_v2 = vpop.permute.xlu1 %7044 }
 0x298   : > { %7047 = vst [vmem:[#allocation2 + $0x28] sm:$0xf0] %v7045_v2  ;;  %7048 = vst [vmem:[#allocation2 + $0x30] sm:$0xf0] %v7045_v2 }
 0x299   : > { %7049 = vst [vmem:[#allocation2 + $0x38] sm:$0xf0] %v7045_v2  ;;  %7050 = vst [vmem:[#allocation2 + $0x40] sm:$0xf0] %v7045_v2 }
 0x29a   : > { %7051 = vst [vmem:[#allocation2 + $0x48] sm:$0xf0] %v7045_v2 }
 0x29f   : > { %v7057_v39 = vld [vmem:[#allocation2 + $0x28] sm:$0xff]  ;;  %v7058_v40 = vld [vmem:[#allocation2 + $0x30] sm:$0xff] }
 0x2a0   : > { %v7059_v31 = vld [vmem:[#allocation2 + $0x38] sm:$0xff]  ;;  %v7060_v41 = vld [vmem:[#allocation2 + $0x40] sm:$0xff]  ;;  %7067 = vst [vmem:[%s8810_s24 + $0x28] sm:$0xff] %v7057_v39  ;;  %7068 = vst [vmem:[%s8810_s24 + $0x30] sm:$0xff] %v7058_v40 }
 0x2a1   : > { %v7061_v43 = vld [vmem:[#allocation2 + $0x48] sm:$0xff]  ;;  %7069 = vst [vmem:[%s8810_s24 + $0x38] sm:$0xff] %v7059_v31  ;;  %7070 = vst [vmem:[%s8810_s24 + $0x40] sm:$0xff] %v7060_v41 }
 0x2a2   : > { %7071 = vst [vmem:[%s8810_s24 + $0x48] sm:$0xff] %v7061_v43 }
 0x2a3   : > { %7789 = shalt.err (!%p7786_p5)
}
 0x2a4   : > { %s7790_s13 = scalar_lea.hbm %s8826_s8, 1280  ;;  %s7794_s17 = scalar_lea.hbm %s8889_s5, 2560 }
 0x2a5   : > { %p7791_p6 = scmp.ne.s32.totalorder %s8826_s8, %s7790_s13  ;;  %p7795_p10 = scmp.lt.u32.totalorder %s8826_s8, %s8889_s5 }
 0x2a6   : > { %p7796_p11 = scmp.lt.u32.totalorder %s7794_s17, %s7790_s13  ;;  %p7798_p13 = scmp.lt.u32.totalorder %s7790_s13, %s8826_s8 }
 0x2a7   : > { %p7792_p7 = pnand %p7791_p6, %p7955_p4 }
 0x2a8   : > { %p7797_p12 = por %p7796_p11, %p7795_p10 }
 0x2a9   : > { %p7793_p9 = pneg %p7792_p7 }
 0x2aa   : > { %p7799_p0 = por %p7798_p13, %p7797_p12 }
 0x2ac   : > { %p7800_p1 = pnand %p7799_p0, %p7793_p9 }
 0x2ae   : > { %7803 = shalt.err (!%p7800_p1)
}
 0x2af   : > { %s7884_s29 = smov 640  }
 0x2b0   : > { %7677 = dma.vmem_to_hbm [thread:$0]  (%p7955_p4), %s8828_s27, 1280, %s8826_s8, %s8837_s21, %s7884_s29, %s7884_s29, %s7860_s15  }
 0x2b1 PF: > { %p7683_p2 = scmp.ge.s32.totalorder %s7854_s23, 2  ;;  %s7101_s7 = sand.u32 1, %s7834_s18  }
 0x2b2   : > { %s7102_s9 = scalar_lea.sflag [#allocation4], %s7101_s7 }
 0x2b3   : > { %p7680_p3 = pnand %p7683_p2, %p7962_p8 }
 0x2b5   : > { %7829 = dma.done.wait (!%p7680_p3), %s7102_s9, 1280  }
 0x2b6   : > { %7831 = vsyncadd (!%p7680_p3), %s7102_s9, 4294966016  ;;  %s18_s23 = sadd.s32 1, %s7854_s23   ;;  %s8892_s18 = smov %s7838_s19 }
 0x2b7   : > { %p15_p5 = scmp.ge.s32.totalorder %s18_s23, 4   ;;  %s8893_s19 = smov %s7842_s20 }
 0x2b8   : > { %s8894_s20 = smov %s7968_s6  ;;  %s8895_s21 = smov %s7850_s22 }
 0x2b9   : > { %s8896_s22 = smov %s8898_s26  ;;  %17 = sbr.rel (!%p15_p5) target bundleno = 4 (0x4), region = 114 }
 0x2c0   :  { %7107 = vsyncpa [#allocation4], 1 }
 0x2c1   :  { %7109 = vsyncpa [#allocation4 + $0x1], 1 }

// kernel: tpu_custom_call.1
= control target key start
LH: loop header
LB: loop body
LE: loop exit
PB: predicated region body
PF: predicated region fallthrough
CT: control target
= control target key end

     0   :  { %10 = vsyncpa [#allocation4], 0  ;;  %s8884_s0 = inlined_call_operand.vmem [shape: f32[2,4,1292], index: 0, kind: input, shape index: {}]   ;;  %s8885_s1 = inlined_call_operand.vmem [shape: f32[16,4], index: 1, kind: input, shape index: {}]   ;;  %s8886_s2 = inlined_call_operand.vmem [shape: f32[3,8,4,4], index: 2, kind: input, shape index: {}]   ;;  %s8887_s3 = inlined_call_operand.vmem [shape: f32[3,4,1], index: 3, kind: input, shape index: {}]   ;;  %s8888_s4 = inlined_call_operand.vmem [shape: f32[4,1], index: 4, kind: input, shape index: {}]   ;;  %s8889_s5 = inlined_call_operand.hbm [shape: f32[2,16,640], index: 5, kind: output, shape index: {}]  }
   0x1   :  { %12 = vsyncpa [#allocation4 + $0x1], 0  ;;  %s7915_s18 = smov 0   ;;  %s7917_s19 = smov 0  }
   0x2   :  { %s7919_s20 = smov 0   ;;  %s7921_s21 = smov 0  }
   0x3   :  { %s7923_s22 = smov 0   ;;  %s7925_s23 = smov 0  }
   0x4 LB: > { %s7195_s24 = sadd.s32 4294967295, %s7854_s23   ;;  %s7196_s25 = sadd.s32 4294967294, %s7854_s23   ;;  %s7854_s23 = sphi %s7925_s23, %s18_s23   ;;  %s7850_s22 = sphi %s7923_s22, %s8896_s22   ;;  %s7846_s21 = sphi %s7921_s21, %s8895_s21   ;;  %s7842_s20 = sphi %s7919_s20, %s8894_s20   ;;  %s7838_s19 = sphi %s7917_s19, %s8893_s19   ;;  %s7834_s18 = sphi %s7915_s18, %s8892_s18  }
   0x5   : > { %s30_s26 = sadd.s32 1, %s7850_s22  ;;  %s159_s27 = sadd.s32 1, %s7842_s20 }
   0x6   : > { %p32_p0 = scmp.ge.s32.totalorder %s30_s26, 2  ;;  %p169_p1 = scmp.ne.s32.totalorder %s7842_s20, %s7838_s19 }
   0x7   : > { %p170_p2 = scmp.eq.s32.totalorder %s7195_s24, 1  ;;  %p175_p3 = scmp.ne.s32.totalorder %s7838_s19, %s7834_s18 }
   0x8   : > { %s8898_s26 = smov (%p32_p0, %s30_s26), 0  ;;  %p176_p5 = scmp.eq.s32.totalorder %s7196_s25, 1 }
   0x9   : > { %p7955_p4 = por %p170_p2, %p169_p1  ;;  %s156_s29 = ssub.s32 %s7850_s22, %s8898_s26 }
   0xa   : > { %p7201_p6 = scmp.ge.s32.totalorder %s7854_s23, 1  ;;  %p157_p7 = scmp.eq.s32.totalorder %s156_s29, 0 }
   0xb   : > { %p7962_p8 = por %p176_p5, %p175_p3  ;;  %p226_p9 = scmp.lt.s32.totalorder %s7854_s23, 3 }
   0xc   : > { %s7968_s6 = scalar_select %p157_p7, %s7842_s20, %s159_s27  }
   0xd   : > { %p227_p10 = pnand %p7201_p6, %p226_p9 }
   0xe   : > { %p266_p11 = scmp.lt.s32.totalorder (!%p227_p10), %s7846_s21, 1  ;;  %v7856_v0 = vmov (!%p227_p10), 0.0   ;;  %s7857_s12 = smov (!%p227_p10), 69   ;;  %vm320_vm0 = vcmask (!%p227_p10), 564224   ;;  %vm333_vm1 = vcmask (!%p227_p10), 1043456   ;;  %v300_v23 = vld [vmem:[%s8885_s1] sm:$0xff] (!%p227_p10) }
   0xf   : > { %230 = sbr.rel (%p227_p10) target bundleno = 689 (0x2b1), region = 40  ;;  %408 = vmatprep.mubr.f32.mxu0 (!%p227_p10), %v7856_v0  ;;  %287 = vst [vmem:[#allocation2] sm:$0xff] (!%p227_p10), %v7856_v0  ;;  %288 = vst [vmem:[#allocation2 + $0x8] sm:$0xff] (!%p227_p10), %v7856_v0  ;;  %485 = vmatprep.mubr.f32.mxu1 (!%p227_p10), %v7856_v0  ;;  %s7858_s13 = smov (!%p227_p10), 46   ;;  %vm326_vm2 = vcmask (!%p227_p10), 31744   ;;  %vm595_vm3 = vcmask (!%p227_p10), 375808  }
  0x10   : > { %289 = vst [vmem:[#allocation2 + $0x10] sm:$0xff] (!%p227_p10), %v7856_v0  ;;  %290 = vst [vmem:[#allocation2 + $0x18] sm:$0xff] (!%p227_p10), %v7856_v0  ;;  %s7859_s14 = smov (!%p227_p10), 43   ;;  %s7860_s15 = smov (!%p227_p10), 40   ;;  %v301_v29 = vld [vmem:[%s8885_s1 + $0x8] sm:$0xff] (!%p227_p10)  ;;  %vm854_vm4 = vcmask (!%p227_p10), 351232  }
  0x11   : > { %291 = vst [vmem:[#allocation2 + $0x20] sm:$0xff] (!%p227_p10), %v7856_v0  ;;  %292 = vst [vmem:[#allocation2 + $0x28] sm:$0xff] (!%p227_p10), %v7856_v0  ;;  %s7861_s16 = smov (!%p227_p10), 72   ;;  %s7862_s17 = smov (!%p227_p10), 66   ;;  %v576_v37 = vld [vmem:[%s8886_s2] sm:$0xf] (!%p227_p10) }
  0x12   : > { %293 = vst [vmem:[#allocation2 + $0x30] sm:$0xff] (!%p227_p10), %v7856_v0  ;;  %294 = vst [vmem:[#allocation2 + $0x38] sm:$0xff] (!%p227_p10), %v7856_v0  ;;  %s7863_s24 = smov (!%p227_p10), 98   ;;  %s7864_s25 = smov (!%p227_p10), 95   ;;  %vm7869_vm5 = vmmov (!%p227_p10), 0   ;;  %vm1113_vm6 = vcmask (!%p227_p10), 326656  }
  0x13   : > { %295 = vst [vmem:[#allocation2 + $0x40] sm:$0xff] (!%p227_p10), %v7856_v0  ;;  %296 = vst [vmem:[#allocation2 + $0x48] sm:$0xff] (!%p227_p10), %v7856_v0  ;;  %s7865_s27 = smov (!%p227_p10), 92   ;;  %s7866_s29 = smov (!%p227_p10), 23   ;;  %v7222_v45 = vld [vmem:[%s8886_s2 + $0x4] sm:$0xf] (!%p227_p10) }
  0x14   : > { %v7231_v61 = vld [vmem:[%s8886_s2 + $0x8] sm:$0xf] (!%p227_p10)  ;;  %vm1372_vm7 = vcmask (!%p227_p10), 588800   ;;  %s7872_s10 = smov (!%p227_p10), 127   ;;  %vm1631_vm8 = vcmask (!%p227_p10), 539648   ;;  %vm1890_vm9 = vcmask (!%p227_p10), 801792  }
  0x15   : > { %vm2149_vm10 = vcmask (!%p227_p10), 777216   ;;  %vm2408_vm11 = vcmask (!%p227_p10), 752640   ;;  %s7877_s9 = smov (!%p227_p10), 110   ;;  %vm2682_vm12 = vcmask (!%p227_p10), 187392   ;;  %vm2956_vm13 = vcmask (!%p227_p10), 138240  }
  0x16   : > { %s267_s7 = scalar_select %p266_p11, %s7846_s21, 1  ;;  %vm3230_vm14 = vcmask 89088   ;;  %vm3504_vm15 = vcmask 613376  }
  0x18   : > { %s7675_s8 = smul.u32 44, %s267_s7  ;;  %s7867_s7 = smov 17  }
  0x1a   : > { %s7987_s11 = scalar_lea.vmem %s8884_s0, %s7675_s8  ;;  %s7881_s8 = smov 19  }
  0x1b   : > { %v7990_v1 = vld [vmem:[%s7987_s11 + $0x10] sm:$0xff]  ;;  %v7993_v2 = vld [vmem:[%s7987_s11 + $0x8] sm:$0xff]  ;;  %v8002_v4 = vld [vmem:[%s7987_s11 + $0x18] sm:$0xff] }
  0x1c   : > { %312 = vrot.lane.b32.xlu0 %v7990_v1, %s7857_s12  ;;  %308 = vrot.lane.b32.xlu1 %v7993_v2, %s7857_s12  ;;  %v7999_v3 = vcombine.high %v7993_v2, %v7993_v2  ;;  %v8006_v5 = vcombine.high %v7990_v1, %v7990_v1  ;;  %v8010_v6 = vcombine.high %v8002_v4, %v8002_v4  ;;  %v8015_v7 = vld [vmem:[%s7987_s11 + $0xc] sm:$0xff]  ;;  %v575_v9 = vld [vmem:[%s7987_s11 + $0x14] sm:$0xff] }
  0x1d   : > { %v581_v8 = vcombine.high %v8015_v7, %v8015_v7  ;;  %v573_v10 = vld [vmem:[%s7987_s11 + $0x4] sm:$0xff]  ;;  %v582_v12 = vcombine.high %v575_v9, %v575_v9  ;;  %v1869_v13 = vld [vmem:[%s7987_s11 + $0x1c] sm:$0xff] }
  0x1e   : > { %v580_v11 = vcombine.high %v573_v10, %v573_v10  ;;  %v1877_v14 = vcombine.high %v1869_v13, %v1869_v13  ;;  %v8049_v15 = vld [vmem:[%s7987_s11] sm:$0xff] }
  0x1f   : > { %v8057_v16 = vcombine.high %v8049_v15, %v8049_v15 }
  0x20   : > { %316 = vrot.lane.b32.xlu1 %v8002_v4, %s7857_s12  ;;  %310 = vrot.lane.b32.xlu0 %v7999_v3, %s7857_s12 }
  0x24   : > { %314 = vrot.lane.b32.xlu1 %v8006_v5, %s7857_s12  ;;  %318 = vrot.lane.b32.xlu0 %v8010_v6, %s7857_s12  ;;  %s7882_s12 = smov 10  }
  0x28   : > { %591 = vrot.lane.b32.xlu1 %v575_v9, %s7858_s13  ;;  %589 = vrot.lane.b32.xlu0 %v581_v8, %s7858_s13 }
  0x2c   : > { %585 = vrot.lane.b32.xlu1 %v580_v11, %s7858_s13  ;;  %587 = vrot.lane.b32.xlu0 %v8015_v7, %s7858_s13 }
  0x30   : > { %848 = vrot.lane.b32.xlu1 %v581_v8, %s7859_s14  ;;  %583 = vrot.lane.b32.xlu0 %v573_v10, %s7858_s13 }
  0x34   : > { %846 = vrot.lane.b32.xlu1 %v8015_v7, %s7859_s14  ;;  %850 = vrot.lane.b32.xlu0 %v575_v9, %s7859_s14 }
  0x38   : > { %852 = vrot.lane.b32.xlu1 %v582_v12, %s7859_s14  ;;  %593 = vrot.lane.b32.xlu0 %v582_v12, %s7858_s13  ;;  %s7868_s13 = smov 11  }
  0x3c   : > { %842 = vrot.lane.b32.xlu1 %v573_v10, %s7859_s14  ;;  %844 = vrot.lane.b32.xlu0 %v580_v11, %s7859_s14  ;;  %s7874_s14 = smov 121  }
  0x40   : > { %1109 = vrot.lane.b32.xlu1 %v575_v9, %s7860_s15  ;;  %1107 = vrot.lane.b32.xlu0 %v581_v8, %s7860_s15 }
  0x44   : > { %1103 = vrot.lane.b32.xlu1 %v580_v11, %s7860_s15  ;;  %1105 = vrot.lane.b32.xlu0 %v8015_v7, %s7860_s15 }
  0x48   : > { %1366 = vrot.lane.b32.xlu1 %v8006_v5, %s7861_s16  ;;  %1101 = vrot.lane.b32.xlu0 %v573_v10, %s7860_s15 }
  0x4c   : > { %1364 = vrot.lane.b32.xlu1 %v7990_v1, %s7861_s16  ;;  %1368 = vrot.lane.b32.xlu0 %v8002_v4, %s7861_s16 }
  0x50   : > { %1370 = vrot.lane.b32.xlu1 %v8010_v6, %s7861_s16  ;;  %1111 = vrot.lane.b32.xlu0 %v582_v12, %s7860_s15 }
  0x54   : > { %1360 = vrot.lane.b32.xlu1 %v7993_v2, %s7861_s16  ;;  %1362 = vrot.lane.b32.xlu0 %v7999_v3, %s7861_s16  ;;  %s263_s16 = sand.u32 1, %s7838_s19  }
  0x58   : > { %1627 = vrot.lane.b32.xlu1 %v8002_v4, %s7862_s17  ;;  %1625 = vrot.lane.b32.xlu0 %v8006_v5, %s7862_s17 }
  0x5c   : > { %1621 = vrot.lane.b32.xlu1 %v7999_v3, %s7862_s17  ;;  %1623 = vrot.lane.b32.xlu0 %v7990_v1, %s7862_s17 }
  0x60   : > { %1884 = vrot.lane.b32.xlu1 %v582_v12, %s7863_s24  ;;  %1619 = vrot.lane.b32.xlu0 %v7993_v2, %s7862_s17 }
  0x64   : > { %1882 = vrot.lane.b32.xlu1 %v575_v9, %s7863_s24  ;;  %1886 = vrot.lane.b32.xlu0 %v1869_v13, %s7863_s24 }
  0x68   : > { %1888 = vrot.lane.b32.xlu1 %v1877_v14, %s7863_s24  ;;  %1629 = vrot.lane.b32.xlu0 %v8010_v6, %s7862_s17  ;;  %s7870_s17 = smov 75  }
  0x6c   : > { %1878 = vrot.lane.b32.xlu1 %v8015_v7, %s7863_s24  ;;  %1880 = vrot.lane.b32.xlu0 %v581_v8, %s7863_s24  ;;  %s7875_s24 = smov 115  }
  0x70   : > { %2145 = vrot.lane.b32.xlu1 %v1869_v13, %s7864_s25  ;;  %2143 = vrot.lane.b32.xlu0 %v582_v12, %s7864_s25 }
  0x74   : > { %2139 = vrot.lane.b32.xlu1 %v581_v8, %s7864_s25  ;;  %2141 = vrot.lane.b32.xlu0 %v575_v9, %s7864_s25 }
  0x78   : > { %2402 = vrot.lane.b32.xlu1 %v582_v12, %s7865_s27  ;;  %2137 = vrot.lane.b32.xlu0 %v8015_v7, %s7864_s25  ;;  %v7240_v12 = vld [vmem:[%s8886_s2 + $0xc] sm:$0xf] }
  0x7c   : > { %2400 = vrot.lane.b32.xlu1 %v575_v9, %s7865_s27  ;;  %2404 = vrot.lane.b32.xlu0 %v1869_v13, %s7865_s27 }
  0x80   : > { %2406 = vrot.lane.b32.xlu1 %v1877_v14, %s7865_s27  ;;  %2147 = vrot.lane.b32.xlu0 %v1877_v14, %s7864_s25  ;;  %s7676_s25 = smul.u32 1280, %s7846_s21  ;;  %s8837_s21 = scalar_lea.sflag [#allocation4], %s263_s16 }
  0x84   : > { %2396 = vrot.lane.b32.xlu1 %v8015_v7, %s7865_s27  ;;  %2398 = vrot.lane.b32.xlu0 %v581_v8, %s7865_s27  ;;  %s7880_s27 = smov 28  }
  0x88   : > { %2678 = vrot.lane.b32.xlu1 %v7990_v1, %s7866_s29  ;;  %2676 = vrot.lane.b32.xlu0 %v7999_v3, %s7866_s29 }
  0x8c   : > { %2672 = vrot.lane.b32.xlu1 %v8057_v16, %s7866_s29  ;;  %2674 = vrot.lane.b32.xlu0 %v7993_v2, %s7866_s29 }
  0x8e   : > { %v313_v17 = vpop.permute.xlu0 %312  ;;  %v309_v18 = vpop.permute.xlu1 %308 }
  0x90   : > { %2946 = vrot.lane.b32.xlu1 %v8057_v16, %s7867_s7  ;;  %2670 = vrot.lane.b32.xlu0 %v8049_v15, %s7866_s29 }
  0x92   : > { %v317_v19 = vpop.permute.xlu1 %316  ;;  %v311_v20 = vpop.permute.xlu0 %310 }
  0x93   : > { %v322_v21 = vsel %vm320_vm0, %v311_v20, %v313_v17  ;;  %v321_v22 = vsel %vm320_vm0, %v309_v18, %v311_v20 }
  0x94   : > { %2944 = vrot.lane.b32.xlu1 %v8049_v15, %s7867_s7  ;;  %2948 = vrot.lane.b32.xlu0 %v7993_v2, %s7867_s7 }
  0x95   : > { %7203 = vmatprep.subr.msk.mxu0 %vm333_vm1, %v322_v21 }
  0x96   : > { %7204 = vmatpush1.msk.msra.mxu0 %vm333_vm1, %v321_v22  ;;  %v315_v24 = vpop.permute.xlu1 %314  ;;  %v319_v25 = vpop.permute.xlu0 %318 }
  0x97   : > { %7205 = vmatmul.mubr.msk.f32.vlgmr.msra.gmra.mrb[0].mxu0 %vm326_vm2, %v300_v23  ;;  %v325_v26 = vsel %vm320_vm0, %v317_v19, %v319_v25  ;;  %v324_v27 = vsel %vm320_vm0, %v315_v24, %v317_v19  ;;  %v323_v28 = vsel %vm320_vm0, %v313_v17, %v315_v24  ;;  %v8221_v19 = vld [vmem:[%s7987_s11 + $0x20] sm:$0xff]  ;;  %vm3778_vm0 = vcmask 515072  }
  0x98   : > { %2952 = vrot.lane.b32.xlu1 %v7990_v1, %s7867_s7  ;;  %7207 = vmatprep.subr.msk.mxu1 %vm333_vm1, %v324_v27  ;;  %v8234_v24 = vcombine.high %v8221_v19, %v8221_v19 }
  0x99   : > { %2680 = vrot.lane.b32.xlu0 %v8006_v5, %s7866_s29  ;;  %7485 = vmatprep.subr.msk.mxu0 %vm333_vm1, %v325_v26  ;;  %s7876_s29 = smov 119  }
  0x9a   : > { %414 = vmatprep.mubr.f32.mxu0 %v7856_v0  ;;  %7208 = vmatpush1.msk.msra.mxu1 %vm333_vm1, %v323_v28  ;;  %v592_v30 = vpop.permute.xlu1 %591  ;;  %v590_v31 = vpop.permute.xlu0 %589 }
  0x9b   : > { %7486 = vmatpush3.msk.msra.mxu0 %vm333_vm1, %v325_v26  ;;  %7209 = vmatmul.mubr.msk.f32.vlgmr.msra.gmra.mrb[0].mxu1 %vm326_vm2, %v300_v23  ;;  %v599_v32 = vsel %vm595_vm3, %v590_v31, %v592_v30 }
  0x9c   : > { %7206 = vmatmul.mubr.msk.f32.gmra.mrb[2].mxu0 %vm326_vm2, %v301_v29  ;;  %2950 = vrot.lane.b32.xlu1 %v7999_v3, %s7867_s7 }
  0x9d   : > { %2954 = vrot.lane.b32.xlu0 %v8006_v5, %s7867_s7  ;;  %491 = vmatprep.mubr.f32.mxu1 %v7856_v0  ;;  %s7871_s7 = smov 63  }
  0x9e   : > { %7217 = vmatprep.subr.msk.mxu0 %vm333_vm1, %v599_v32  ;;  %v586_v33 = vpop.permute.xlu1 %585  ;;  %7487 = vmatprep.mubr.msk.f32.mxu0 %vm326_vm2, %v300_v23  ;;  %v588_v34 = vpop.permute.xlu0 %587 }
  0x9f   : > { %7210 = vmatmul.mubr.msk.f32.gmra.mrb[2].mxu1 %vm326_vm2, %v301_v29  ;;  %v598_v35 = vsel %vm595_vm3, %v588_v34, %v590_v31  ;;  %v597_v36 = vsel %vm595_vm3, %v586_v33, %v588_v34 }
  0xa0   : > { %7488 = vmatmul.mubr.msk.f32.vlgmr.msra.gmra.mrb[4].mxu0 %vm326_vm2, %v301_v29  ;;  %3226 = vrot.lane.b32.xlu1 %v7990_v1, %s7868_s13 }
  0xa1   : > { %3224 = vrot.lane.b32.xlu0 %v7999_v3, %s7868_s13  ;;  %7218 = vmatpush1.msk.msra.mxu0 %vm333_vm1, %v598_v35 }
  0xa2   : > { %7214 = vmatprep.subr.msk.mxu1 %vm333_vm1, %v597_v36  ;;  %v849_v38 = vpop.permute.xlu1 %848  ;;  %749 = vmatprep.mubr.f32.mxu0 %v7856_v0  ;;  %v584_v39 = vpop.permute.xlu0 %583 }
  0xa3   : > { %v596_v40 = vsel %vm595_vm3, %v584_v39, %v586_v33  ;;  %678 = vmatprep.mubr.f32.mxu1 %v7856_v0  ;;  %v7249_v33 = vld [vmem:[%s8886_s2 + $0x10] sm:$0xf] }
  0xa4   : > { %7219 = vmatmul.mubr.msk.f32.vlgmr.msra.gmra.mrb[6].mxu0 %vm326_vm2, %v576_v37  ;;  %3220 = vrot.lane.b32.xlu1 %v8057_v16, %s7868_s13 }
  0xa5   : > { %3222 = vrot.lane.b32.xlu0 %v7993_v2, %s7868_s13  ;;  %7215 = vmatpush1.msk.msra.mxu1 %vm333_vm1, %v596_v40 }
  0xa6   : > { %v847_v41 = vpop.permute.xlu1 %846  ;;  %v851_v42 = vpop.permute.xlu0 %850  ;;  %7216 = vmatmul.mubr.msk.f32.vlgmr.msra.gmra.mrb[4].mxu1 %vm326_vm2, %v576_v37  ;;  %1008 = vmatprep.mubr.f32.mxu0 %v7856_v0 }
  0xa7   : > { %v857_v43 = vsel %vm854_vm4, %v847_v41, %v849_v38  ;;  %v858_v44 = vsel %vm854_vm4, %v849_v38, %v851_v42  ;;  %7490 = vmatprep.subr.mxu1 %v7856_v0  ;;  %7492 = vmatprep.mubr.msk.f32.mxu1 %vm7869_vm5, %v7856_v0 }
  0xa8   : > { %3494 = vrot.lane.b32.xlu1 %v7999_v3, %s7870_s17  ;;  %7226 = vmatprep.subr.msk.mxu0 %vm333_vm1, %v858_v44 }
  0xa9   : > { %3218 = vrot.lane.b32.xlu0 %v8049_v15, %s7868_s13  ;;  %7227 = vmatpush1.msk.msra.mxu0 %vm333_vm1, %v857_v43 }
  0xaa   : > { %v853_v46 = vpop.permute.xlu1 %852  ;;  %v594_v47 = vpop.permute.xlu0 %593  ;;  %7495 = vmatprep.subr.mxu0 %v7856_v0 }
  0xab   : > { %v859_v48 = vsel %vm854_vm4, %v851_v42, %v853_v46  ;;  %v600_v49 = vsel %vm595_vm3, %v592_v30, %v594_v47  ;;  %v7873_v30 = vmov 0   ;;  %vm4052_vm3 = vcmask 1039360  }
  0xac   : > { %7228 = vmatmul.mubr.msk.f32.vlgmr.msra.gmra.mrb[6].mxu0 %vm326_vm2, %v7222_v45  ;;  %3492 = vrot.lane.b32.xlu1 %v7993_v2, %s7870_s17 }
  0xad   : > { %3496 = vrot.lane.b32.xlu0 %v7990_v1, %s7870_s17  ;;  %7491 = vmatpush3.msk.msra.mxu1 %vm333_vm1, %v600_v49 }
  0xae   : > { %7496 = vmatpush3.msk.msra.mxu0 %vm333_vm1, %v859_v48  ;;  %7493 = vmatmul.mubr.msk.f32.vlgmr.msra.gmra.mrb[6].mxu1 %vm326_vm2, %v576_v37  ;;  %v843_v50 = vpop.permute.xlu1 %842  ;;  %v845_v51 = vpop.permute.xlu0 %844 }
  0xaf   : > { %7497 = vmatprep.mubr.msk.f32.mxu0 %vm7869_vm5, %v7856_v0  ;;  %v855_v52 = vsel %vm854_vm4, %v843_v50, %v845_v51  ;;  %v856_v53 = vsel %vm854_vm4, %v845_v51, %v847_v41  ;;  %937 = vmatprep.mubr.f32.mxu1 %v7856_v0  ;;  %v7258_v41 = vld [vmem:[%s8886_s2 + $0x14] sm:$0xf]  ;;  %vm4326_vm4 = vcmask 990208  }
  0xb0   : > { %7498 = vmatmul.mubr.msk.f32.vlgmr.msra.gmra.mrb[8].mxu0 %vm326_vm2, %v7222_v45  ;;  %3500 = vrot.lane.b32.xlu1 %v8002_v4, %s7870_s17 }
  0xb1   : > { %3228 = vrot.lane.b32.xlu0 %v8006_v5, %s7868_s13  ;;  %7223 = vmatprep.subr.msk.mxu1 %vm333_vm1, %v856_v53  ;;  %s7878_s13 = smov 78  }
  0xb2   : > { %7224 = vmatpush1.msk.msra.mxu1 %vm333_vm1, %v855_v52  ;;  %v1110_v54 = vpop.permute.xlu1 %1109  ;;  %v1108_v55 = vpop.permute.xlu0 %1107  ;;  %1267 = vmatprep.mubr.f32.mxu0 %v7856_v0 }
  0xb3   : > { %v1117_v56 = vsel %vm1113_vm6, %v1108_v55, %v1110_v54  ;;  %7225 = vmatmul.mubr.msk.f32.vlgmr.msra.gmra.mrb[4].mxu1 %vm326_vm2, %v7222_v45  ;;  %7760 = vset.pattern.permute.xlu1 %v7873_v30 }
  0xb4   : > { %3498 = vrot.lane.b32.xlu1 %v8006_v5, %s7870_s17  ;;  %7235 = vmatprep.subr.msk.mxu0 %vm333_vm1, %v1117_v56 }
  0xb5   : > { %3502 = vrot.lane.b32.xlu0 %v8010_v6, %s7870_s17  ;;  %1196 = vmatprep.mubr.f32.mxu1 %v7856_v0  ;;  %s7879_s17 = smov 60  }
  0xb6   : > { %v1104_v57 = vpop.permute.xlu1 %1103  ;;  %v1106_v58 = vpop.permute.xlu0 %1105  ;;  %7761 = vset.pattern.permute.xlu0 %v7873_v30  ;;  %v8385_v30 = vld [vmem:[%s7987_s11 + $0x10] sm:$0xff] }
  0xb7   : > { %v1116_v59 = vsel %vm1113_vm6, %v1106_v58, %v1108_v55  ;;  %v1115_v60 = vsel %vm1113_vm6, %v1104_v57, %v1106_v58 }
  0xb8   : > { %3774 = vrot.lane.b32.xlu1 %v8002_v4, %s7871_s7  ;;  %7236 = vmatpush1.msk.msra.mxu0 %vm333_vm1, %v1116_v59 }
  0xb9   : > { %3772 = vrot.lane.b32.xlu0 %v8006_v5, %s7871_s7  ;;  %7232 = vmatprep.subr.msk.mxu1 %vm333_vm1, %v1115_v60 }
  0xba   : > { %v1367_v62 = vpop.permute.xlu1 %1366  ;;  %v1102_v63 = vpop.permute.xlu0 %1101  ;;  %7237 = vmatmul.mubr.msk.f32.vlgmr.msra.gmra.mrb[6].mxu0 %vm326_vm2, %v7231_v61 }
  0xbb   : > { %v1114_v7 = vsel %vm1113_vm6, %v1102_v63, %v1104_v57  ;;  %1526 = vmatprep.mubr.f32.mxu0 %v7856_v0  ;;  %v7267_v57 = vld [vmem:[%s8886_s2 + $0x18] sm:$0xf] }
  0xbc   : > { %3768 = vrot.lane.b32.xlu1 %v7999_v3, %s7871_s7  ;;  %7233 = vmatpush1.msk.msra.mxu1 %vm333_vm1, %v1114_v7 }
  0xbd   : > { %3770 = vrot.lane.b32.xlu0 %v7990_v1, %s7871_s7  ;;  %7234 = vmatmul.mubr.msk.f32.vlgmr.msra.gmra.mrb[4].mxu1 %vm326_vm2, %v7231_v61 }
  0xbe   : > { %v1365_v8 = vpop.permute.xlu1 %1364  ;;  %v1369_v9 = vpop.permute.xlu0 %1368  ;;  %7500 = vmatprep.subr.mxu1 %v7856_v0  ;;  %7502 = vmatprep.mubr.msk.f32.mxu1 %vm7869_vm5, %v7856_v0 }
  0xbf   : > { %v1375_v10 = vsel %vm1372_vm7, %v1365_v8, %v1367_v62  ;;  %v1376_v11 = vsel %vm1372_vm7, %v1367_v62, %v1369_v9 }
  0xc0   : > { %4042 = vrot.lane.b32.xlu1 %v8006_v5, %s7872_s10  ;;  %7244 = vmatprep.subr.msk.mxu0 %vm333_vm1, %v1376_v11 }
  0xc1   : > { %3766 = vrot.lane.b32.xlu0 %v7993_v2, %s7871_s7  ;;  %7245 = vmatpush1.msk.msra.mxu0 %vm333_vm1, %v1375_v10 }
  0xc2   : > { %v1371_v13 = vpop.permute.xlu1 %1370  ;;  %v1112_v14 = vpop.permute.xlu0 %1111  ;;  %7246 = vmatmul.mubr.msk.f32.vlgmr.msra.gmra.mrb[6].mxu0 %vm326_vm2, %v7240_v12  ;;  %7505 = vmatprep.subr.mxu0 %v7856_v0 }
  0xc3   : > { %v1377_v17 = vsel %vm1372_vm7, %v1369_v9, %v1371_v13  ;;  %v1118_v18 = vsel %vm1113_vm6, %v1110_v54, %v1112_v14  ;;  %7507 = vmatprep.mubr.msk.f32.mxu0 %vm7869_vm5, %v7856_v0  ;;  %vm4600_vm6 = vcmask 941056  }
  0xc4   : > { %4040 = vrot.lane.b32.xlu1 %v7990_v1, %s7872_s10  ;;  %7501 = vmatpush3.msk.msra.mxu1 %vm333_vm1, %v1118_v18 }
  0xc5   : > { %4044 = vrot.lane.b32.xlu0 %v8002_v4, %s7872_s10  ;;  %7506 = vmatpush3.msk.msra.mxu0 %vm333_vm1, %v1377_v17 }
  0xc6   : > { %7503 = vmatmul.mubr.msk.f32.vlgmr.msra.gmra.mrb[8].mxu1 %vm326_vm2, %v7231_v61  ;;  %v1361_v20 = vpop.permute.xlu1 %1360  ;;  %v1363_v21 = vpop.permute.xlu0 %1362  ;;  %7508 = vmatmul.mubr.msk.f32.vlgmr.msra.gmra.mrb[10].mxu0 %vm326_vm2, %v7240_v12 }
  0xc7   : > { %v1373_v22 = vsel %vm1372_vm7, %v1361_v20, %v1363_v21  ;;  %v1374_v23 = vsel %vm1372_vm7, %v1363_v21, %v1365_v8  ;;  %1455 = vmatprep.mubr.f32.mxu1 %v7856_v0  ;;  %1785 = vmatprep.mubr.f32.mxu0 %v7856_v0  ;;  %v7276_v8 = vld [vmem:[%s8886_s2 + $0x1c] sm:$0xf]  ;;  %vm5129_vm7 = vcmask 973824  }
  0xc8   : > { %4048 = vrot.lane.b32.xlu1 %v8221_v19, %s7872_s10  ;;  %7241 = vmatprep.subr.msk.mxu1 %vm333_vm1, %v1374_v23 }
  0xc9   : > { %3776 = vrot.lane.b32.xlu0 %v8010_v6, %s7871_s7  ;;  %7242 = vmatpush1.msk.msra.mxu1 %vm333_vm1, %v1373_v22 }
  0xca   : > { %v1628_v25 = vpop.permute.xlu1 %1627  ;;  %v1626_v26 = vpop.permute.xlu0 %1625  ;;  %7243 = vmatmul.mubr.msk.f32.vlgmr.msra.gmra.mrb[4].mxu1 %vm326_vm2, %v7240_v12 }
  0xcb   : > { %v1635_v27 = vsel %vm1631_vm8, %v1626_v26, %v1628_v25  ;;  %1714 = vmatprep.mubr.f32.mxu1 %v7856_v0 }
  0xcc   : > { %4046 = vrot.lane.b32.xlu1 %v8010_v6, %s7872_s10  ;;  %7253 = vmatprep.subr.msk.mxu0 %vm333_vm1, %v1635_v27  ;;  %v7285_v27 = vld [vmem:[%s8886_s2 + $0x20] sm:$0xf] }
  0xcd   : > { %4050 = vrot.lane.b32.xlu0 %v8234_v24, %s7872_s10  ;;  %s7883_s10 = smov [#allocation3]  }
  0xce   : > { %v1622_v28 = vpop.permute.xlu1 %1621  ;;  %v1624_v29 = vpop.permute.xlu0 %1623 }
  0xcf   : > { %v1634_v31 = vsel %vm1631_vm8, %v1624_v29, %v1626_v26  ;;  %v1633_v32 = vsel %vm1631_vm8, %v1622_v28, %v1624_v29 }
  0xd0   : > { %4322 = vrot.lane.b32.xlu1 %v8221_v19, %s7874_s14  ;;  %7254 = vmatpush1.msk.msra.mxu0 %vm333_vm1, %v1634_v31 }
  0xd1   : > { %4320 = vrot.lane.b32.xlu0 %v8010_v6, %s7874_s14  ;;  %7250 = vmatprep.subr.msk.mxu1 %vm333_vm1, %v1633_v32  ;;  %v8399_v32 = vld [vmem:[%s7987_s11 + $0x18] sm:$0xff] }
  0xd2   : > { %v1885_v34 = vpop.permute.xlu1 %1884  ;;  %v1620_v35 = vpop.permute.xlu0 %1619  ;;  %7255 = vmatmul.mubr.msk.f32.vlgmr.msra.gmra.mrb[6].mxu0 %vm326_vm2, %v7249_v33 }
  0xd3   : > { %v1632_v36 = vsel %vm1631_vm8, %v1620_v35, %v1622_v28  ;;  %2044 = vmatprep.mubr.f32.mxu0 %v7856_v0 }
  0xd4   : > { %4316 = vrot.lane.b32.xlu1 %v8006_v5, %s7874_s14  ;;  %7251 = vmatpush1.msk.msra.mxu1 %vm333_vm1, %v1632_v36 }
  0xd5   : > { %4318 = vrot.lane.b32.xlu0 %v8002_v4, %s7874_s14  ;;  %7252 = vmatmul.mubr.msk.f32.vlgmr.msra.gmra.mrb[4].mxu1 %vm326_vm2, %v7249_v33 }
  0xd6   : > { %v1883_v37 = vpop.permute.xlu1 %1882  ;;  %v1887_v38 = vpop.permute.xlu0 %1886  ;;  %7510 = vmatprep.subr.mxu1 %v7856_v0  ;;  %7512 = vmatprep.mubr.msk.f32.mxu1 %vm7869_vm5, %v7856_v0 }
  0xd7   : > { %v1893_v39 = vsel %vm1890_vm9, %v1883_v37, %v1885_v34  ;;  %v1894_v40 = vsel %vm1890_vm9, %v1885_v34, %v1887_v38  ;;  %v8406_v34 = vld [vmem:[%s7987_s11 + $0x8] sm:$0xff] }
  0xd8   : > { %4590 = vrot.lane.b32.xlu1 %v8006_v5, %s7875_s24  ;;  %7262 = vmatprep.subr.msk.mxu0 %vm333_vm1, %v1894_v40  ;;  %v8416_v36 = vcombine.high %v8406_v34, %v8406_v34 }
  0xd9   : > { %4314 = vrot.lane.b32.xlu0 %v7990_v1, %s7874_s14  ;;  %7263 = vmatpush1.msk.msra.mxu0 %vm333_vm1, %v1893_v39 }
  0xda   : > { %v1889_v42 = vpop.permute.xlu1 %1888  ;;  %v1630_v43 = vpop.permute.xlu0 %1629  ;;  %7264 = vmatmul.mubr.msk.f32.vlgmr.msra.gmra.mrb[6].mxu0 %vm326_vm2, %v7258_v41  ;;  %7515 = vmatprep.subr.mxu0 %v7856_v0 }
  0xdb   : > { %v1895_v44 = vsel %vm1890_vm9, %v1887_v38, %v1889_v42  ;;  %v1636_v45 = vsel %vm1631_vm8, %v1628_v25, %v1630_v43  ;;  %7517 = vmatprep.mubr.msk.f32.mxu0 %vm7869_vm5, %v7856_v0  ;;  %vm5388_vm8 = vcmask 900096  }
  0xdc   : > { %4588 = vrot.lane.b32.xlu1 %v7990_v1, %s7875_s24  ;;  %7511 = vmatpush3.msk.msra.mxu1 %vm333_vm1, %v1636_v45 }
  0xdd   : > { %4592 = vrot.lane.b32.xlu0 %v8002_v4, %s7875_s24  ;;  %7516 = vmatpush3.msk.msra.mxu0 %vm333_vm1, %v1895_v44 }
  0xde   : > { %7513 = vmatmul.mubr.msk.f32.vlgmr.msra.gmra.mrb[10].mxu1 %vm326_vm2, %v7249_v33  ;;  %v1879_v46 = vpop.permute.xlu1 %1878  ;;  %v1881_v47 = vpop.permute.xlu0 %1880  ;;  %7518 = vmatmul.mubr.msk.f32.vlgmr.msra.gmra.mrb[12].mxu0 %vm326_vm2, %v7258_v41  ;;  %v8403_v33 = vcombine.high %v8385_v30, %v8385_v30 }
  0xdf   : > { %v1891_v48 = vsel %vm1890_vm9, %v1879_v46, %v1881_v47  ;;  %v1892_v49 = vsel %vm1890_vm9, %v1881_v47, %v1883_v37  ;;  %1973 = vmatprep.mubr.f32.mxu1 %v7856_v0  ;;  %2303 = vmatprep.mubr.f32.mxu0 %v7856_v0  ;;  %vm5647_vm9 = vcmask 637952  }
  0xe0   : > { %4596 = vrot.lane.b32.xlu1 %v8221_v19, %s7875_s24  ;;  %7259 = vmatprep.subr.msk.mxu1 %vm333_vm1, %v1892_v49 }
  0xe1   : > { %4324 = vrot.lane.b32.xlu0 %v8234_v24, %s7874_s14  ;;  %7260 = vmatpush1.msk.msra.mxu1 %vm333_vm1, %v1891_v48  ;;  %v7303_v48 = vld [vmem:[%s8886_s2 + $0x28] sm:$0xf] }
  0xe2   : > { %v2146_v50 = vpop.permute.xlu1 %2145  ;;  %v2144_v51 = vpop.permute.xlu0 %2143  ;;  %7261 = vmatmul.mubr.msk.f32.vlgmr.msra.gmra.mrb[4].mxu1 %vm326_vm2, %v7258_v41  ;;  %v8426_v41 = vcombine.high %v8399_v32, %v8399_v32 }
  0xe3   : > { %v2153_v52 = vsel %vm2149_vm10, %v2144_v51, %v2146_v50  ;;  %2232 = vmatprep.mubr.f32.mxu1 %v7856_v0 }
  0xe4   : > { %4594 = vrot.lane.b32.xlu1 %v8010_v6, %s7875_s24  ;;  %7271 = vmatprep.subr.msk.mxu0 %vm333_vm1, %v2153_v52 }
  0xe5   : > { %4598 = vrot.lane.b32.xlu0 %v8234_v24, %s7875_s24 }
  0xe6   : > { %v2140_v53 = vpop.permute.xlu1 %2139  ;;  %v2142_v54 = vpop.permute.xlu0 %2141 }
  0xe7   : > { %v2152_v55 = vsel %vm2149_vm10, %v2142_v54, %v2144_v51  ;;  %v2151_v56 = vsel %vm2149_vm10, %v2140_v53, %v2142_v54 }
  0xe8   : > { %5125 = vrot.lane.b32.xlu1 %v7990_v1, %s7876_s29  ;;  %7272 = vmatpush1.msk.msra.mxu0 %vm333_vm1, %v2152_v55 }
  0xe9   : > { %5123 = vrot.lane.b32.xlu0 %v7999_v3, %s7876_s29  ;;  %7268 = vmatprep.subr.msk.mxu1 %vm333_vm1, %v2151_v56 }
  0xea   : > { %v2403_v58 = vpop.permute.xlu1 %2402  ;;  %7273 = vmatmul.mubr.msk.f32.vlgmr.msra.gmra.mrb[6].mxu0 %vm326_vm2, %v7267_v57  ;;  %v2138_v59 = vpop.permute.xlu0 %2137 }
  0xeb   : > { %v2150_v60 = vsel %vm2149_vm10, %v2138_v59, %v2140_v53  ;;  %2562 = vmatprep.mubr.f32.mxu0 %v7856_v0 }
  0xec   : > { %5119 = vrot.lane.b32.xlu1 %v8057_v16, %s7876_s29  ;;  %7269 = vmatpush1.msk.msra.mxu1 %vm333_vm1, %v2150_v60 }
  0xed   : > { %5121 = vrot.lane.b32.xlu0 %v7993_v2, %s7876_s29  ;;  %7270 = vmatmul.mubr.msk.f32.vlgmr.msra.gmra.mrb[4].mxu1 %vm326_vm2, %v7267_v57 }
  0xee   : > { %v2401_v61 = vpop.permute.xlu1 %2400  ;;  %v2405_v62 = vpop.permute.xlu0 %2404  ;;  %7520 = vmatprep.subr.mxu1 %v7856_v0  ;;  %7522 = vmatprep.mubr.msk.f32.mxu1 %vm7869_vm5, %v7856_v0 }
  0xef   : > { %v2411_v63 = vsel %vm2408_vm11, %v2401_v61, %v2403_v58  ;;  %v2412_v7 = vsel %vm2408_vm11, %v2403_v58, %v2405_v62  ;;  %v7312_v58 = vld [vmem:[%s8886_s2 + $0x2c] sm:$0xf] }
  0xf0   : > { %5127 = vrot.lane.b32.xlu1 %v8006_v5, %s7876_s29  ;;  %7280 = vmatprep.subr.msk.mxu0 %vm333_vm1, %v2412_v7 }
  0xf1   : > { %5117 = vrot.lane.b32.xlu0 %v8049_v15, %s7876_s29  ;;  %7281 = vmatpush1.msk.msra.mxu0 %vm333_vm1, %v2411_v63 }
  0xf2   : > { %v2407_v9 = vpop.permute.xlu1 %2406  ;;  %7282 = vmatmul.mubr.msk.f32.vlgmr.msra.gmra.mrb[6].mxu0 %vm326_vm2, %v7276_v8  ;;  %v2148_v10 = vpop.permute.xlu0 %2147  ;;  %7525 = vmatprep.subr.mxu0 %v7856_v0 }
  0xf3   : > { %v2413_v11 = vsel %vm2408_vm11, %v2405_v62, %v2407_v9  ;;  %v2154_v12 = vsel %vm2149_vm10, %v2146_v50, %v2148_v10  ;;  %7527 = vmatprep.mubr.msk.f32.mxu0 %vm7869_vm5, %v7856_v0  ;;  %v8474_v62 = vld [vmem:[#allocation2] sm:$0xff]  ;;  %vm7023_vm10 = vcmask 1047556  }
  0xf4   : > { %5384 = vrot.lane.b32.xlu1 %v7990_v1, %s7877_s9  ;;  %7521 = vmatpush3.msk.msra.mxu1 %vm333_vm1, %v2154_v12 }
  0xf5   : > { %5382 = vrot.lane.b32.xlu0 %v7999_v3, %s7877_s9  ;;  %7526 = vmatpush3.msk.msra.mxu0 %vm333_vm1, %v2413_v11 }
  0xf6   : > { %7523 = vmatmul.mubr.msk.f32.vlgmr.msra.gmra.mrb[12].mxu1 %vm326_vm2, %v7267_v57  ;;  %v2397_v13 = vpop.permute.xlu1 %2396  ;;  %v2399_v14 = vpop.permute.xlu0 %2398  ;;  %7528 = vmatmul.mubr.msk.f32.vlgmr.msra.gmra.mrb[14].mxu0 %vm326_vm2, %v7276_v8 }
  0xf7   : > { %v2409_v17 = vsel %vm2408_vm11, %v2397_v13, %v2399_v14  ;;  %v2410_v18 = vsel %vm2408_vm11, %v2399_v14, %v2401_v61  ;;  %2491 = vmatprep.mubr.f32.mxu1 %v7856_v0  ;;  %2836 = vmatprep.mubr.f32.mxu0 %v7856_v0  ;;  %vm5906_vm11 = vcmask 490496  }
  0xf8   : > { %5378 = vrot.lane.b32.xlu1 %v8057_v16, %s7877_s9  ;;  %7277 = vmatprep.subr.msk.mxu1 %vm333_vm1, %v2410_v18 }
  0xf9   : > { %5380 = vrot.lane.b32.xlu0 %v7993_v2, %s7877_s9  ;;  %7278 = vmatpush1.msk.msra.mxu1 %vm333_vm1, %v2409_v17  ;;  %v7321_v17 = vld [vmem:[%s8886_s2 + $0x30] sm:$0xf] }
  0xfa   : > { %v2679_v20 = vpop.permute.xlu1 %2678  ;;  %7279 = vmatmul.mubr.msk.f32.vlgmr.msra.gmra.mrb[4].mxu1 %vm326_vm2, %v7276_v8  ;;  %v2677_v21 = vpop.permute.xlu0 %2676 }
  0xfb   : > { %v2686_v22 = vsel %vm2682_vm12, %v2677_v21, %v2679_v20  ;;  %2765 = vmatprep.mubr.f32.mxu1 %v7856_v0 }
  0xfc   : > { %5386 = vrot.lane.b32.xlu1 %v8006_v5, %s7877_s9  ;;  %7289 = vmatprep.subr.msk.mxu0 %vm333_vm1, %v2686_v22 }
  0xfd   : > { %5376 = vrot.lane.b32.xlu0 %v8049_v15, %s7877_s9 }
  0xfe   : > { %v2673_v16 = vpop.permute.xlu1 %2672  ;;  %v2675_v23 = vpop.permute.xlu0 %2674 }
  0xff   : > { %v2684_v25 = vsel %vm2682_vm12, %v2673_v16, %v2675_v23  ;;  %v2685_v26 = vsel %vm2682_vm12, %v2675_v23, %v2677_v21 }
 0x100   : > { %5643 = vrot.lane.b32.xlu1 %v8002_v4, %s7878_s13  ;;  %7290 = vmatpush1.msk.msra.mxu0 %vm333_vm1, %v2685_v26 }
 0x101   : > { %5641 = vrot.lane.b32.xlu0 %v8006_v5, %s7878_s13  ;;  %7286 = vmatprep.subr.msk.mxu1 %vm333_vm1, %v2684_v25 }
 0x102   : > { %7291 = vmatmul.mubr.msk.f32.vlgmr.msra.gmra.mrb[16].mxu0 %vm326_vm2, %v7285_v27  ;;  %v2947_v15 = vpop.permute.xlu1 %2946  ;;  %v2671_v28 = vpop.permute.xlu0 %2670 }
 0x103   : > { %v2683_v29 = vsel %vm2682_vm12, %v2671_v28, %v2673_v16  ;;  %3039 = vmatprep.mubr.f32.mxu0 %v7856_v0 }
 0x104   : > { %5637 = vrot.lane.b32.xlu1 %v7999_v3, %s7878_s13  ;;  %7287 = vmatpush1.msk.msra.mxu1 %vm333_vm1, %v2683_v29 }
 0x105   : > { %5639 = vrot.lane.b32.xlu0 %v7990_v1, %s7878_s13  ;;  %7288 = vmatmul.mubr.msk.f32.vlgmr.msra.gmra.mrb[14].mxu1 %vm326_vm2, %v7285_v27  ;;  %v7294_v1 = vld [vmem:[%s8886_s2 + $0x24] sm:$0xf] }
 0x106   : > { %v2945_v4 = vpop.permute.xlu1 %2944  ;;  %v2949_v5 = vpop.permute.xlu0 %2948  ;;  %7530 = vmatprep.subr.mxu1 %v7856_v0  ;;  %7532 = vmatprep.mubr.msk.f32.mxu1 %vm7869_vm5, %v7856_v0 }
 0x107   : > { %v2957_v3 = vsel %vm2956_vm13, %v2945_v4, %v2947_v15  ;;  %v2958_v31 = vsel %vm2956_vm13, %v2947_v15, %v2949_v5  ;;  %v7429_v15 = vld [vmem:[%s8887_s3 + $0x4] sm:$0xf]  ;;  %v6957_v4 = vld [vmem:[%s8887_s3] sm:$0xf] }
 0x108   : > { %5645 = vrot.lane.b32.xlu1 %v8010_v6, %s7878_s13  ;;  %7295 = vmatprep.subr.msk.mxu0 %vm333_vm1, %v2958_v31 }
 0x109   : > { %5635 = vrot.lane.b32.xlu0 %v7993_v2, %s7878_s13  ;;  %7296 = vmatpush1.msk.msra.mxu0 %vm333_vm1, %v2957_v3 }
 0x10a   : > { %v2953_v35 = vpop.permute.xlu1 %2952  ;;  %7297 = vmatmul.mubr.msk.f32.vlgmr.msra.gmra.mrb[18].mxu0 %vm326_vm2, %v7294_v1  ;;  %7535 = vmatprep.subr.mxu0 %v7856_v0 }
 0x10b   : > { %v2681_v6 = vpop.permute.xlu0 %2680  ;;  %7537 = vmatprep.mubr.msk.f32.mxu0 %vm7869_vm5, %v7856_v0 }
 0x10c   : > { %v2687_v2 = vsel %vm2682_vm12, %v2679_v20, %v2681_v6  ;;  %5902 = vrot.lane.b32.xlu1 %v8399_v32, %s7879_s17  ;;  %vm6165_vm12 = vcmask 228352  }
 0x10d   : > { %5900 = vrot.lane.b32.xlu0 %v8403_v33, %s7879_s17  ;;  %7531 = vmatpush3.msk.msra.mxu1 %vm333_vm1, %v2687_v2 }
 0x10e   : > { %7533 = vmatmul.mubr.msk.f32.vlgmr.msra.gmra.mrb[16].mxu1 %vm326_vm2, %v7285_v27  ;;  %v2951_v37 = vpop.permute.xlu1 %2950  ;;  %v7330_v27 = vld [vmem:[%s8886_s2 + $0x34] sm:$0xf] }
 0x10f   : > { %v2959_v38 = vsel %vm2956_vm13, %v2949_v5, %v2951_v37  ;;  %v2960_v39 = vsel %vm2956_vm13, %v2951_v37, %v2953_v35  ;;  %v2955_v40 = vpop.permute.xlu0 %2954  ;;  %3110 = vmatprep.mubr.f32.mxu1 %v7856_v0  ;;  %v7339_v37 = vld [vmem:[%s8886_s2 + $0x38] sm:$0xf] }
 0x110   : > { %v2961_v42 = vsel %vm2956_vm13, %v2953_v35, %v2955_v40  ;;  %5896 = vrot.lane.b32.xlu1 %v8416_v36, %s7879_s17  ;;  %7298 = vmatprep.subr.msk.mxu1 %vm333_vm1, %v2960_v39  ;;  %vm6424_vm13 = vcmask 154624  }
 0x111   : > { %5898 = vrot.lane.b32.xlu0 %v8385_v30, %s7879_s17  ;;  %7536 = vmatpush3.msk.msra.mxu0 %vm333_vm1, %v2961_v42 }
 0x112   : > { %7299 = vmatpush1.msk.msra.mxu1 %vm333_vm1, %v2959_v38  ;;  %7538 = vmatmul.mubr.msk.f32.vlgmr.msra.gmra.mrb[20].mxu0 %vm326_vm2, %v7294_v1  ;;  %v3227_v43 = vpop.permute.xlu1 %3226 }
 0x113   : > { %7300 = vmatmul.mubr.msk.f32.vlgmr.msra.gmra.mrb[18].mxu1 %vm326_vm2, %v7294_v1  ;;  %v3225_v44 = vpop.permute.xlu0 %3224  ;;  %3384 = vmatprep.mubr.f32.mxu0 %v7856_v0 }
 0x114   : > { %v3234_v45 = vsel %vm3230_vm14, %v3225_v44, %v3227_v43  ;;  %5904 = vrot.lane.b32.xlu1 %v8426_v41, %s7879_s17  ;;  %3313 = vmatprep.mubr.f32.mxu1 %v7856_v0 }
 0x115   : > { %5894 = vrot.lane.b32.xlu0 %v8406_v34, %s7879_s17  ;;  %7307 = vmatprep.subr.msk.mxu0 %vm333_vm1, %v3234_v45  ;;  %s7674_s17 = smul.u32 80, %s263_s16 }
 0x116   : > { %v3221_v46 = vpop.permute.xlu1 %3220 }
 0x117   : > { %v3223_v47 = vpop.permute.xlu0 %3222  ;;  %s8810_s24 = scalar_lea.vmem [#allocation3], %s7674_s17 }
 0x118   : > { %v3232_v49 = vsel %vm3230_vm14, %v3221_v46, %v3223_v47  ;;  %v3233_v50 = vsel %vm3230_vm14, %v3223_v47, %v3225_v44  ;;  %6161 = vrot.lane.b32.xlu1 %v8221_v19, %s7880_s27  ;;  %v7348_v47 = vld [vmem:[%s8886_s2 + $0x3c] sm:$0xf] }
 0x119   : > { %6159 = vrot.lane.b32.xlu0 %v8426_v41, %s7880_s27  ;;  %7308 = vmatpush1.msk.msra.mxu0 %vm333_vm1, %v3233_v50 }
 0x11a   : > { %7304 = vmatprep.subr.msk.mxu1 %vm333_vm1, %v3232_v49  ;;  %7309 = vmatmul.mubr.msk.f32.vlgmr.msra.gmra.mrb[22].mxu0 %vm326_vm2, %v7303_v48  ;;  %v3495_v51 = vpop.permute.xlu1 %3494 }
 0x11b   : > { %v3219_v52 = vpop.permute.xlu0 %3218  ;;  %3587 = vmatprep.mubr.f32.mxu0 %v7856_v0 }
 0x11c   : > { %v3231_v53 = vsel %vm3230_vm14, %v3219_v52, %v3221_v46  ;;  %6155 = vrot.lane.b32.xlu1 %v8403_v33, %s7880_s27 }
 0x11d   : > { %6157 = vrot.lane.b32.xlu0 %v8399_v32, %s7880_s27  ;;  %7305 = vmatpush1.msk.msra.mxu1 %vm333_vm1, %v3231_v53 }
 0x11e   : > { %7306 = vmatmul.mubr.msk.f32.vlgmr.msra.gmra.mrb[20].mxu1 %vm326_vm2, %v7303_v48  ;;  %v3493_v54 = vpop.permute.xlu1 %3492  ;;  %7540 = vmatprep.subr.mxu1 %v7856_v0 }
 0x11f   : > { %v3505_v55 = vsel %vm3504_vm15, %v3493_v54, %v3495_v51  ;;  %v3497_v56 = vpop.permute.xlu0 %3496  ;;  %7542 = vmatprep.mubr.msk.f32.mxu1 %vm7869_vm5, %v7856_v0 }
 0x120   : > { %v3506_v57 = vsel %vm3504_vm15, %v3495_v51, %v3497_v56  ;;  %6163 = vrot.lane.b32.xlu1 %v8234_v24, %s7880_s27  ;;  %v4866_v51 = vld [vmem:[%s7987_s11] sm:$0xff] }
 0x121   : > { %6153 = vrot.lane.b32.xlu0 %v8385_v30, %s7880_s27  ;;  %7313 = vmatprep.subr.msk.mxu0 %vm333_vm1, %v3506_v57  ;;  %s7086_s27 = sshll.u32 %s8810_s24, 4  ;;  %s8828_s27 = int_to_ptr.vmem [resolvable:$true] %s7086_s27 }
 0x122   : > { %7314 = vmatpush1.msk.msra.mxu0 %vm333_vm1, %v3505_v55  ;;  %v3501_v59 = vpop.permute.xlu1 %3500  ;;  %s7776_s9 = scalar_lea.vmem %s8828_s27, 1280 }
 0x123   : > { %7315 = vmatmul.mubr.msk.f32.vlgmr.msra.gmra.mrb[24].mxu0 %vm326_vm2, %v7312_v58  ;;  %v3229_v60 = vpop.permute.xlu0 %3228  ;;  %7545 = vmatprep.subr.mxu0 %v7856_v0  ;;  %p7777_p12 = scmp.ne.s32.totalorder %s8828_s27, %s7776_s9 }
 0x124   : > { %v3235_v61 = vsel %vm3230_vm14, %v3227_v43, %v3229_v60  ;;  %6420 = vrot.lane.b32.xlu1 %v8221_v19, %s7881_s8  ;;  %7547 = vmatprep.mubr.msk.f32.mxu0 %vm7869_vm5, %v8474_v62  ;;  %v7357_v60 = vld [vmem:[%s8886_s2 + $0x40] sm:$0xf]  ;;  %vm6683_vm14 = vcmask 80896  }
 0x125   : > { %6418 = vrot.lane.b32.xlu0 %v8426_v41, %s7881_s8  ;;  %7541 = vmatpush3.msk.msra.mxu1 %vm333_vm1, %v3235_v61  ;;  %p7778_p13 = pnand %p7777_p12, %p7955_p4 }
 0x126   : > { %7543 = vmatmul.mubr.msk.f32.vlgmr.msra.gmra.mrb[22].mxu1 %vm326_vm2, %v7303_v48  ;;  %v3499_v63 = vpop.permute.xlu1 %3498 }
 0x127   : > { %v3507_v7 = vsel %vm3504_vm15, %v3497_v56, %v3499_v63  ;;  %v3508_v0 = vsel %vm3504_vm15, %v3499_v63, %v3501_v59  ;;  %v3503_v8 = vpop.permute.xlu0 %3502  ;;  %3658 = vmatprep.mubr.f32.mxu1 %v8474_v62  ;;  %v4874_v56 = vcombine.high %v4866_v51, %v4866_v51  ;;  %v4868_v63 = vld [vmem:[%s7987_s11 + $0x10] sm:$0xf]  ;;  %p7779_p0 = pneg %p7778_p13  ;;  %s7780_s11 = sshll.u32 %s7883_s10, 4  ;;  %s7781_s11 = int_to_ptr.vmem [resolvable:$false] %s7780_s11 }
 0x128   : > { %v3509_v9 = vsel %vm3504_vm15, %v3501_v59, %v3503_v8  ;;  %6414 = vrot.lane.b32.xlu1 %v8403_v33, %s7881_s8  ;;  %7316 = vmatprep.subr.msk.mxu1 %vm333_vm1, %v3508_v0  ;;  %p7783_p1 = scmp.lt.s32.totalorder %s8828_s27, %s7781_s11 }
 0x129   : > { %6416 = vrot.lane.b32.xlu0 %v8399_v32, %s7881_s8  ;;  %7546 = vmatpush3.msk.msra.mxu0 %vm333_vm1, %v3509_v9 }
 0x12a   : > { %7317 = vmatpush1.msk.msra.mxu1 %vm333_vm1, %v3507_v7  ;;  %7548 = vmatmul.mubr.msk.f32.vlgmr.msra.gmra.mrb[26].mxu0 %vm326_vm2, %v7312_v58  ;;  %v3775_v10 = vpop.permute.xlu1 %3774 }
 0x12b   : > { %7318 = vmatmul.mubr.msk.f32.vlgmr.msra.gmra.mrb[24].mxu1 %vm326_vm2, %v7312_v58  ;;  %v3773_v11 = vpop.permute.xlu0 %3772  ;;  %3932 = vmatprep.mubr.f32.mxu0 %v8474_v62 }
 0x12c   : > { %v3782_v12 = vsel %vm3778_vm0, %v3773_v11, %v3775_v10  ;;  %6422 = vrot.lane.b32.xlu1 %v8234_v24, %s7881_s8  ;;  %3861 = vmatprep.mubr.f32.mxu1 %v8474_v62 }
 0x12d   : > { %6412 = vrot.lane.b32.xlu0 %v8385_v30, %s7881_s8  ;;  %7325 = vmatprep.subr.msk.mxu0 %vm333_vm1, %v3782_v12  ;;  %s8826_s8 = scalar_lea.hbm %s8889_s5, %s7676_s25 }
 0x12e   : > { %v3769_v13 = vpop.permute.xlu1 %3768 }
 0x12f   : > { %v3771_v14 = vpop.permute.xlu0 %3770 }
 0x130   : > { %v3780_v18 = vsel %vm3778_vm0, %v3769_v13, %v3771_v14  ;;  %v3781_v20 = vsel %vm3778_vm0, %v3771_v14, %v3773_v11  ;;  %6679 = vrot.lane.b32.xlu1 %v8221_v19, %s7882_s12 }
 0x131   : > { %6677 = vrot.lane.b32.xlu0 %v8426_v41, %s7882_s12  ;;  %7326 = vmatpush1.msk.msra.mxu0 %vm333_vm1, %v3781_v20 }
 0x132   : > { %7322 = vmatprep.subr.msk.mxu1 %vm333_vm1, %v3780_v18  ;;  %7327 = vmatmul.mubr.msk.f32.vlgmr.msra.gmra.mrb[28].mxu0 %vm326_vm2, %v7321_v17  ;;  %v4043_v21 = vpop.permute.xlu1 %4042 }
 0x133   : > { %v3767_v22 = vpop.permute.xlu0 %3766  ;;  %4135 = vmatprep.mubr.f32.mxu0 %v8474_v62 }
 0x134   : > { %v3779_v16 = vsel %vm3778_vm0, %v3767_v22, %v3769_v13  ;;  %6673 = vrot.lane.b32.xlu1 %v8403_v33, %s7882_s12 }
 0x135   : > { %6675 = vrot.lane.b32.xlu0 %v8399_v32, %s7882_s12  ;;  %7323 = vmatpush1.msk.msra.mxu1 %vm333_vm1, %v3779_v16  ;;  %v7375_v16 = vld [vmem:[%s8886_s2 + $0x48] sm:$0xf] }
 0x136   : > { %7324 = vmatmul.mubr.msk.f32.vlgmr.msra.gmra.mrb[26].mxu1 %vm326_vm2, %v7321_v17  ;;  %v4041_v19 = vpop.permute.xlu1 %4040  ;;  %7550 = vmatprep.subr.mxu1 %v8474_v62 }
 0x137   : > { %v4053_v23 = vsel %vm4052_vm3, %v4041_v19, %v4043_v21  ;;  %v4045_v25 = vpop.permute.xlu0 %4044  ;;  %7552 = vmatprep.mubr.msk.f32.mxu1 %vm7869_vm5, %v8474_v62 }
 0x138   : > { %v4054_v26 = vsel %vm4052_vm3, %v4043_v21, %v4045_v25  ;;  %6681 = vrot.lane.b32.xlu1 %v8234_v24, %s7882_s12 }
 0x139   : > { %6671 = vrot.lane.b32.xlu0 %v8385_v30, %s7882_s12  ;;  %7331 = vmatprep.subr.msk.mxu0 %vm333_vm1, %v4054_v26  ;;  %s7782_s12 = scalar_lea.vmem %s7781_s11, 2560 }
 0x13a   : > { %7332 = vmatpush1.msk.msra.mxu0 %vm333_vm1, %v4053_v23  ;;  %v4049_v28 = vpop.permute.xlu1 %4048  ;;  %p7784_p2 = scmp.lt.s32.totalorder %s7782_s12, %s7776_s9 }
 0x13b   : > { %7333 = vmatmul.mubr.msk.f32.vlgmr.msra.gmra.mrb[30].mxu0 %vm326_vm2, %v7330_v27  ;;  %v3777_v29 = vpop.permute.xlu0 %3776  ;;  %7555 = vmatprep.subr.mxu0 %v8474_v62 }
 0x13c   : > { %v3783_v24 = vsel %vm3778_vm0, %v3775_v10, %v3777_v29  ;;  %7557 = vmatprep.mubr.msk.f32.mxu0 %vm7869_vm5, %v8474_v62  ;;  %6982 = vperm.xlu1 %7760, %v7429_v15   ;;  %v7366_v10 = vld [vmem:[%s8886_s2 + $0x44] sm:$0xf]  ;;  %v6935_v15 = vld [vmem:[#allocation2 + $0x30] sm:$0xf0]  ;;  %p7785_p3 = por %p7784_p2, %p7783_p1 }
 0x13d   : > { %7551 = vmatpush3.msk.msra.mxu1 %vm333_vm1, %v3783_v24 }
 0x13e   : > { %7553 = vmatmul.mubr.msk.f32.vlgmr.msra.gmra.mrb[28].mxu1 %vm326_vm2, %v7321_v17  ;;  %v4047_v5 = vpop.permute.xlu1 %4046  ;;  %p7786_p5 = pnand %p7785_p3, %p7779_p0 }
 0x13f   : > { %v4055_v30 = vsel %vm4052_vm3, %v4045_v25, %v4047_v5  ;;  %v4056_v3 = vsel %vm4052_vm3, %v4047_v5, %v4049_v28  ;;  %v4051_v31 = vpop.permute.xlu0 %4050  ;;  %4206 = vmatprep.mubr.f32.mxu1 %v8474_v62  ;;  %v6934_v25 = vld [vmem:[#allocation2 + $0x28] sm:$0xf0] }
 0x140   : > { %v4057_v1 = vsel %vm4052_vm3, %v4049_v28, %v4051_v31  ;;  %7334 = vmatprep.subr.msk.mxu1 %vm333_vm1, %v4056_v3  ;;  %6960 = vperm.xlu1 %7760, %v6957_v4  }
 0x141   : > { %7556 = vmatpush3.msk.msra.mxu0 %vm333_vm1, %v4057_v1  ;;  %7335 = vmatpush1.msk.msra.mxu1 %vm333_vm1, %v4055_v30  ;;  %v6936_v30 = vld [vmem:[#allocation2 + $0x38] sm:$0xf0]  ;;  %v6937_v1 = vld [vmem:[#allocation2 + $0x40] sm:$0xf0] }
 0x142   : > { %7558 = vmatmul.mubr.msk.f32.vlgmr.msra.gmra.mrb[32].mxu0 %vm326_vm2, %v7330_v27  ;;  %v4323_v32 = vpop.permute.xlu1 %4322  ;;  %7336 = vmatmul.mubr.msk.f32.vlgmr.msra.gmra.mrb[30].mxu1 %vm326_vm2, %v7330_v27 }
 0x143   : > { %v4321_v33 = vpop.permute.xlu0 %4320  ;;  %4480 = vmatprep.mubr.f32.mxu0 %v8474_v62  ;;  %4409 = vmatprep.mubr.f32.mxu1 %v8474_v62 }
 0x144   : > { %v4330_v35 = vsel %vm4326_vm4, %v4321_v33, %v4323_v32 }
 0x145   : > { %7343 = vmatprep.subr.msk.mxu0 %vm333_vm1, %v4330_v35 }
 0x146   : > { %v4317_v6 = vpop.permute.xlu1 %4316 }
 0x147   : > { %v4319_v2 = vpop.permute.xlu0 %4318 }
 0x148   : > { %v4328_v38 = vsel %vm4326_vm4, %v4317_v6, %v4319_v2  ;;  %v4329_v39 = vsel %vm4326_vm4, %v4319_v2, %v4321_v33 }
 0x149   : > { %7344 = vmatpush1.msk.msra.mxu0 %vm333_vm1, %v4329_v39  ;;  %7340 = vmatprep.subr.msk.mxu1 %vm333_vm1, %v4328_v38 }
 0x14a   : > { %7345 = vmatmul.mubr.msk.f32.vlgmr.msra.gmra.mrb[34].mxu0 %vm326_vm2, %v7339_v37  ;;  %v4591_v40 = vpop.permute.xlu1 %4590 }
 0x14b   : > { %v4315_v41 = vpop.permute.xlu0 %4314  ;;  %4683 = vmatprep.mubr.f32.mxu0 %v8474_v62 }
 0x14c   : > { %v4327_v42 = vsel %vm4326_vm4, %v4315_v41, %v4317_v6 }
 0x14d   : > { %7341 = vmatpush1.msk.msra.mxu1 %vm333_vm1, %v4327_v42 }
 0x14e   : > { %7342 = vmatmul.mubr.msk.f32.vlgmr.msra.gmra.mrb[32].mxu1 %vm326_vm2, %v7339_v37  ;;  %v4589_v43 = vpop.permute.xlu1 %4588  ;;  %7560 = vmatprep.subr.mxu1 %v8474_v62 }
 0x14f   : > { %v4601_v44 = vsel %vm4600_vm6, %v4589_v43, %v4591_v40  ;;  %v4593_v45 = vpop.permute.xlu0 %4592  ;;  %7562 = vmatprep.mubr.msk.f32.mxu1 %vm7869_vm5, %v8474_v62 }
 0x150   : > { %v4602_v46 = vsel %vm4600_vm6, %v4591_v40, %v4593_v45 }
 0x151   : > { %7349 = vmatprep.subr.msk.mxu0 %vm333_vm1, %v4602_v46  ;;  %v7384_v46 = vld [vmem:[%s8886_s2 + $0x4c] sm:$0xf] }
 0x152   : > { %7350 = vmatpush1.msk.msra.mxu0 %vm333_vm1, %v4601_v44  ;;  %v4597_v48 = vpop.permute.xlu1 %4596 }
 0x153   : > { %7351 = vmatmul.mubr.msk.f32.vlgmr.msra.gmra.mrb[36].mxu0 %vm326_vm2, %v7348_v47  ;;  %v4325_v49 = vpop.permute.xlu0 %4324  ;;  %7565 = vmatprep.subr.mxu0 %v8474_v62 }
 0x154   : > { %v4331_v50 = vsel %vm4326_vm4, %v4323_v32, %v4325_v49  ;;  %7567 = vmatprep.mubr.msk.f32.mxu0 %vm7869_vm5, %v8474_v62  ;;  %v6938_v32 = vld [vmem:[#allocation2 + $0x48] sm:$0xf0] }
 0x155   : > { %7561 = vmatpush3.msk.msra.mxu1 %vm333_vm1, %v4331_v50 }
 0x156   : > { %7563 = vmatmul.mubr.msk.f32.vlgmr.msra.gmra.mrb[34].mxu1 %vm326_vm2, %v7339_v37  ;;  %v4595_v52 = vpop.permute.xlu1 %4594 }
 0x157   : > { %v4603_v53 = vsel %vm4600_vm6, %v4593_v45, %v4595_v52  ;;  %v4604_v54 = vsel %vm4600_vm6, %v4595_v52, %v4597_v48  ;;  %v4599_v55 = vpop.permute.xlu0 %4598  ;;  %4754 = vmatprep.mubr.f32.mxu1 %v8474_v62 }
 0x158   : > { %v4605_v57 = vsel %vm4600_vm6, %v4597_v48, %v4599_v55  ;;  %7352 = vmatprep.subr.msk.mxu1 %vm333_vm1, %v4604_v54 }
 0x159   : > { %7566 = vmatpush3.msk.msra.mxu0 %vm333_vm1, %v4605_v57  ;;  %7353 = vmatpush1.msk.msra.mxu1 %vm333_vm1, %v4603_v53 }
 0x15a   : > { %7568 = vmatmul.mubr.msk.f32.vlgmr.msra.gmra.mrb[38].mxu0 %vm326_vm2, %v7348_v47  ;;  %v5126_v58 = vpop.permute.xlu1 %5125  ;;  %7354 = vmatmul.mubr.msk.f32.vlgmr.msra.gmra.mrb[36].mxu1 %vm326_vm2, %v7348_v47 }
 0x15b   : > { %v5124_v59 = vpop.permute.xlu0 %5123  ;;  %7361 = vmatprep.subr.msk.mxu0 %vm333_vm1, %v8416_v36  ;;  %7358 = vmatprep.subr.msk.mxu1 %vm333_vm1, %v4874_v56 }
 0x15c   : > { %v5133_v61 = vsel %vm5129_vm7, %v5124_v59, %v5126_v58  ;;  %7362 = vmatpush1.msk.msra.mxu0 %vm333_vm1, %v8406_v34  ;;  %5024 = vmatprep.mubr.f32.mxu0 %v8474_v62 }
 0x15d   : > { %7359 = vmatpush1.msk.msra.mxu1 %vm333_vm1, %v4866_v51  ;;  %4953 = vmatprep.mubr.f32.mxu1 %v8474_v62 }
 0x15e   : > { %7363 = vmatmul.mubr.msk.f32.vlgmr.msra.gmra.mrb[40].mxu0 %vm326_vm2, %v7357_v60  ;;  %7370 = vmatprep.subr.msk.mxu0 %vm333_vm1, %v5133_v61  ;;  %v5120_v36 = vpop.permute.xlu1 %5119 }
 0x15f   : > { %7360 = vmatmul.mubr.msk.f32.vlgmr.msra.gmra.mrb[38].mxu1 %vm326_vm2, %v7357_v60  ;;  %v5122_v7 = vpop.permute.xlu0 %5121  ;;  %7570 = vmatprep.subr.mxu1 %v8474_v62 }
 0x160   : > { %v5131_v0 = vsel %vm5129_vm7, %v5120_v36, %v5122_v7  ;;  %v5132_v34 = vsel %vm5129_vm7, %v5122_v7, %v5124_v59  ;;  %7571 = vmatpush3.msk.msra.mxu1 %vm333_vm1, %v4868_v63  ;;  %7572 = vmatprep.mubr.msk.f32.mxu1 %vm7869_vm5, %v8474_v62 }
 0x161   : > { %7371 = vmatpush1.msk.msra.mxu0 %vm333_vm1, %v5132_v34  ;;  %7367 = vmatprep.subr.msk.mxu1 %vm333_vm1, %v5131_v0 }
 0x162   : > { %v5128_v8 = vpop.permute.xlu1 %5127  ;;  %5283 = vmatprep.mubr.f32.mxu0 %v8474_v62  ;;  %7575 = vmatprep.subr.mxu0 %v8474_v62 }
 0x163   : > { %7573 = vmatmul.mubr.msk.f32.vlgmr.msra.gmra.mrb[40].mxu1 %vm326_vm2, %v7357_v60  ;;  %v5118_v9 = vpop.permute.xlu0 %5117  ;;  %v5134_v11 = vsel %vm5129_vm7, %v5126_v58, %v5128_v8 }
 0x164   : > { %v5130_v12 = vsel %vm5129_vm7, %v5118_v9, %v5120_v36  ;;  %5212 = vmatprep.mubr.f32.mxu1 %v8474_v62 }
 0x165   : > { %7368 = vmatpush1.msk.msra.mxu1 %vm333_vm1, %v5130_v12 }
 0x166   : > { %7372 = vmatmul.mubr.msk.f32.vlgmr.msra.gmra.mrb[40].mxu0 %vm326_vm2, %v7366_v10  ;;  %v5385_v13 = vpop.permute.xlu1 %5384 }
 0x167   : > { %7576 = vmatpush3.msk.msra.mxu0 %vm333_vm1, %v5134_v11  ;;  %v5383_v14 = vpop.permute.xlu0 %5382  ;;  %7577 = vmatprep.mubr.msk.f32.mxu0 %vm7869_vm5, %v8474_v62 }
 0x168   : > { %v5392_v17 = vsel %vm5388_vm8, %v5383_v14, %v5385_v13  ;;  %7369 = vmatmul.mubr.msk.f32.vlgmr.msra.gmra.mrb[38].mxu1 %vm326_vm2, %v7366_v10 }
 0x169   : > { %7379 = vmatprep.subr.msk.mxu0 %vm333_vm1, %v5392_v17  ;;  %5471 = vmatprep.mubr.f32.mxu1 %v8474_v62 }
 0x16a   : > { %v8633_v18 = vpop.f32.mrb[0].mxu0  ;;  %7578 = vmatmul.mubr.msk.f32.vlgmr.msra.gmra.mrb[42].mxu0 %vm326_vm2, %v7366_v10  ;;  %v5379_v20 = vpop.permute.xlu1 %5378 }
 0x16b   : > { %v8636_v21 = vpop.f32.mrb[1].mxu0  ;;  %v5381_v22 = vpop.permute.xlu0 %5380  ;;  %5542 = vmatprep.mubr.f32.mxu0 %v8474_v62 }
 0x16c   : > { %v5390_v19 = vsel %vm5388_vm8, %v5379_v20, %v5381_v22  ;;  %v5391_v23 = vsel %vm5388_vm8, %v5381_v22, %v5383_v14 }
 0x16d   : > { %7380 = vmatpush1.msk.msra.mxu0 %vm333_vm1, %v5391_v23  ;;  %7376 = vmatprep.subr.msk.mxu1 %vm333_vm1, %v5390_v19 }
 0x16e   : > { %v8646_v26 = vpop.f32.mrb[0].mxu1  ;;  %v5387_v27 = vpop.permute.xlu1 %5386  ;;  %7381 = vmatmul.mubr.msk.f32.vlgmr.msra.gmra.mrb[40].mxu0 %vm326_vm2, %v7375_v16 }
 0x16f   : > { %v8649_v28 = vpop.f32.mrb[2].mxu0  ;;  %v8651_v29 = vpop.f32.mrb[1].mxu1  ;;  %5801 = vmatprep.mubr.f32.mxu0 %v8474_v62  ;;  %v5393_v6 = vsel %vm5388_vm8, %v5385_v13, %v5387_v27 }
 0x170   : > { %v6939_v24 = vadd.f32 %v6934_v25, %v8649_v28  ;;  %v8655_v4 = vpop.f32.mrb[3].mxu0  ;;  %v5377_v5 = vpop.permute.xlu0 %5376 }
 0x171   : > { %v6940_v3 = vadd.f32 %v6935_v15, %v8655_v4  ;;  %v5389_v31 = vsel %vm5388_vm8, %v5377_v5, %v5379_v20 }
 0x172   : > { %6944 = vst [vmem:[#allocation2 + $0x28] sm:$0xf0] %v6939_v24  ;;  %7377 = vmatpush1.msk.msra.mxu1 %vm333_vm1, %v5389_v31  ;;  %v8660_v33 = vpop.f32.mrb[2].mxu1  ;;  %v5644_v35 = vpop.permute.xlu1 %5643 }
 0x173   : > { %6945 = vst [vmem:[#allocation2 + $0x30] sm:$0xf0] %v6940_v3  ;;  %v6941_v2 = vadd.f32 %v6936_v30, %v8660_v33  ;;  %7378 = vmatmul.mubr.msk.f32.vlgmr.msra.gmra.mrb[38].mxu1 %vm326_vm2, %v7375_v16  ;;  %7580 = vmatprep.subr.mxu1 %v8474_v62  ;;  %v8666_v37 = vpop.f32.mrb[3].mxu1  ;;  %v8668_v38 = vpop.f32.mrb[4].mxu0  ;;  %v7430_v30 = vld [vmem:[%s8887_s3 + $0x8] sm:$0xf] }
 0x174   : > { %v6942_v39 = vadd.f32 %v6937_v1, %v8666_v37  ;;  %7581 = vmatpush3.msk.msra.mxu1 %vm333_vm1, %v5393_v6  ;;  %v5642_v40 = vpop.permute.xlu0 %5641  ;;  %v6943_v41 = vadd.f32 %v8668_v38, %v6938_v32  ;;  %7582 = vmatprep.mubr.msk.f32.mxu1 %vm7869_vm5, %v8474_v62  ;;  %v8675_v42 = vpop.f32.mrb[5].mxu0  ;;  %v7402_v6 = vld [vmem:[%s8886_s2 + $0x54] sm:$0xf] }
 0x175   : > { %6946 = vst [vmem:[#allocation2 + $0x38] sm:$0xf0] %v6941_v2  ;;  %v5651_v43 = vsel %vm5647_vm9, %v5642_v40, %v5644_v35  ;;  %7005 = vperm.xlu1 %7760, %v7430_v30  }
 0x176   : > { %6947 = vst [vmem:[#allocation2 + $0x40] sm:$0xf0] %v6942_v39  ;;  %6948 = vst [vmem:[#allocation2 + $0x48] sm:$0xf0] %v6943_v41  ;;  %7388 = vmatprep.subr.msk.mxu0 %vm333_vm1, %v5651_v43  ;;  %v5638_v44 = vpop.permute.xlu1 %5637 }
 0x177   : > { %7583 = vmatmul.mubr.msk.f32.vlgmr.msra.gmra.mrb[42].mxu1 %vm326_vm2, %v7375_v16  ;;  %v7393_v16 = vld [vmem:[%s8886_s2 + $0x50] sm:$0xf] }
 0x178   : > { %v5640_v45 = vpop.permute.xlu0 %5639  ;;  %5730 = vmatprep.mubr.f32.mxu1 %v8474_v62 }
 0x179   : > { %v5649_v47 = vsel %vm5647_vm9, %v5638_v44, %v5640_v45  ;;  %v5650_v48 = vsel %vm5647_vm9, %v5640_v45, %v5642_v40  ;;  %v7018_v49 = vld [vmem:[#allocation2 + $0x28] sm:$0xf0] }
 0x17a   : > { %7389 = vmatpush1.msk.msra.mxu0 %vm333_vm1, %v5650_v48  ;;  %7385 = vmatprep.subr.msk.mxu1 %vm333_vm1, %v5649_v47  ;;  %v5646_v50 = vpop.permute.xlu1 %5645  ;;  %v7019_v51 = vld [vmem:[#allocation2 + $0x30] sm:$0xf0]  ;;  %v7024_v52 = vsel %vm7023_vm10, %v7018_v49, 0.0 }
 0x17b   : > { %7390 = vmatmul.mubr.msk.f32.vlgmr.msra.gmra.mrb[40].mxu0 %vm326_vm2, %v7384_v46  ;;  %v5652_v53 = vsel %vm5647_vm9, %v5644_v35, %v5646_v50  ;;  %7585 = vmatprep.subr.mxu0 %v8474_v62  ;;  %v7025_v54 = vsel %vm7023_vm10, %v7019_v51, 0.0 }
 0x17c   : > { %v5636_v55 = vpop.permute.xlu0 %5635  ;;  %7586 = vmatpush3.msk.msra.mxu0 %vm333_vm1, %v5652_v53  ;;  %7587 = vmatprep.mubr.msk.f32.mxu0 %vm7869_vm5, %v8474_v62  ;;  %v7020_v56 = vld [vmem:[#allocation2 + $0x38] sm:$0xf0]  ;;  %v7026_v57 = vadd.f32 %v7025_v54, %v7024_v52 }
 0x17d   : > { %v5648_v58 = vsel %vm5647_vm9, %v5636_v55, %v5638_v44  ;;  %v7021_v59 = vld [vmem:[#allocation2 + $0x40] sm:$0xf0]  ;;  %v7022_v60 = vld [vmem:[#allocation2 + $0x48] sm:$0xf0]  ;;  %v7027_v61 = vsel %vm7023_vm10, %v7020_v56, 0.0 }
 0x17e   : > { %7386 = vmatpush1.msk.msra.mxu1 %vm333_vm1, %v5648_v58  ;;  %v5903_v63 = vpop.permute.xlu1 %5902  ;;  %v7028_v36 = vadd.f32 %v7027_v61, %v7026_v57  ;;  %v7029_v7 = vsel %vm7023_vm10, %v7021_v59, 0.0  ;;  %v7031_v0 = vsel %vm7023_vm10, %v7022_v60, 0.0  ;;  %v7411_v56 = vld [vmem:[%s8886_s2 + $0x58] sm:$0xf] }
 0x17f   : > { %7588 = vmatmul.mubr.msk.f32.vlgmr.msra.gmra.mrb[44].mxu0 %vm326_vm2, %v7384_v46  ;;  %7387 = vmatmul.mubr.msk.f32.vlgmr.msra.gmra.mrb[38].mxu1 %vm326_vm2, %v7384_v46 }
 0x180   : > { %v5901_v34 = vpop.permute.xlu0 %5900  ;;  %v7030_v8 = vadd.f32 %v7029_v7, %v7028_v36  ;;  %5989 = vmatprep.mubr.f32.mxu1 %v8474_v62  ;;  %6060 = vmatprep.mubr.f32.mxu0 %v8474_v62 }
 0x181   : > { %v5910_v9 = vsel %vm5906_vm11, %v5901_v34, %v5903_v63  ;;  %v822_v10 = vpop.f32.mrb[6].mxu1 }
 0x182   : > { %v830_v11 = vadd.f32 %v822_v10, %v8675_v42  ;;  %7397 = vmatprep.subr.msk.mxu0 %vm333_vm1, %v5910_v9  ;;  %v5897_v12 = vpop.permute.xlu1 %5896  ;;  %v7032_v13 = vadd.f32 %v7031_v0, %v7030_v8  ;;  %v7494_v14 = vpop.f32.mrb[7].mxu1  ;;  %v7420_v9 = vld [vmem:[%s8886_s2 + $0x5c] sm:$0xf] }
 0x183   : > { %v1081_v17 = vpop.f32.mrb[8].mxu0 }
 0x184   : > { %v1089_v20 = vadd.f32 %v1081_v17, %v830_v11  ;;  %v5899_v22 = vpop.permute.xlu0 %5898  ;;  %7033 = vadd.xlane.f32.xlu0 %v7032_v13  ;;  %v7499_v19 = vpop.f32.mrb[9].mxu0 }
 0x185   : > { %v5908_v23 = vsel %vm5906_vm11, %v5897_v12, %v5899_v22  ;;  %v5909_v25 = vsel %vm5906_vm11, %v5899_v22, %v5901_v34 }
 0x186   : > { %7398 = vmatpush1.msk.msra.mxu0 %vm333_vm1, %v5909_v25  ;;  %7394 = vmatprep.subr.msk.mxu1 %vm333_vm1, %v5908_v23  ;;  %v5905_v27 = vpop.permute.xlu1 %5904 }
 0x187   : > { %7399 = vmatmul.mubr.msk.f32.vlgmr.msra.gmra.mrb[40].mxu0 %vm326_vm2, %v7393_v16  ;;  %v5911_v3 = vsel %vm5906_vm11, %v5903_v63, %v5905_v27 }
 0x188   : > { %v5895_v15 = vpop.permute.xlu0 %5894  ;;  %6319 = vmatprep.mubr.f32.mxu0 %v8474_v62 }
 0x189   : > { %v5907_v24 = vsel %vm5906_vm11, %v5895_v15, %v5897_v12  ;;  %v2646_v15 = vld [vmem:[#allocation2 + $0x10] sm:$0xf] }
 0x18a   : > { %7395 = vmatpush1.msk.msra.mxu1 %vm333_vm1, %v5907_v24  ;;  %v6162_v5 = vpop.permute.xlu1 %6161 }
 0x18b   : > { %7396 = vmatmul.mubr.msk.f32.vlgmr.msra.gmra.mrb[38].mxu1 %vm326_vm2, %v7393_v16  ;;  %7590 = vmatprep.subr.mxu1 %v8474_v62 }
 0x18c   : > { %7591 = vmatpush3.msk.msra.mxu1 %vm333_vm1, %v5911_v3  ;;  %v6160_v31 = vpop.permute.xlu0 %6159  ;;  %7592 = vmatprep.mubr.msk.f32.mxu1 %vm7869_vm5, %v8474_v62 }
 0x18d   : > { %v6169_v1 = vsel %vm6165_vm12, %v6160_v31, %v6162_v5 }
 0x18e   : > { %7406 = vmatprep.subr.msk.mxu0 %vm333_vm1, %v6169_v1  ;;  %v6156_v32 = vpop.permute.xlu1 %6155 }
 0x18f   : > { %7593 = vmatmul.mubr.msk.f32.vlgmr.msra.gmra.mrb[44].mxu1 %vm326_vm2, %v7393_v16 }
 0x190   : > { %v6158_v35 = vpop.permute.xlu0 %6157  ;;  %6248 = vmatprep.mubr.f32.mxu1 %v8474_v62 }
 0x191   : > { %v6167_v2 = vsel %vm6165_vm12, %v6156_v32, %v6158_v35  ;;  %v6168_v39 = vsel %vm6165_vm12, %v6158_v35, %v6160_v31 }
 0x192   : > { %7407 = vmatpush1.msk.msra.mxu0 %vm333_vm1, %v6168_v39  ;;  %7403 = vmatprep.subr.msk.mxu1 %vm333_vm1, %v6167_v2  ;;  %v6164_v40 = vpop.permute.xlu1 %6163 }
 0x193   : > { %7408 = vmatmul.mubr.msk.f32.vlgmr.msra.gmra.mrb[40].mxu0 %vm326_vm2, %v7402_v6  ;;  %v6170_v41 = vsel %vm6165_vm12, %v6162_v5, %v6164_v40  ;;  %7595 = vmatprep.subr.mxu0 %v8474_v62  ;;  %v2648_v40 = vld [vmem:[#allocation2 + $0x20] sm:$0xf] }
 0x194   : > { %v6154_v43 = vpop.permute.xlu0 %6153  ;;  %7596 = vmatpush3.msk.msra.mxu0 %vm333_vm1, %v6170_v41  ;;  %7597 = vmatprep.mubr.msk.f32.mxu0 %vm7869_vm5, %v8474_v62 }
 0x195   : > { %v6166_v44 = vsel %vm6165_vm12, %v6154_v43, %v6156_v32 }
 0x196   : > { %7404 = vmatpush1.msk.msra.mxu1 %vm333_vm1, %v6166_v44  ;;  %v6421_v45 = vpop.permute.xlu1 %6420  ;;  %v2644_v44 = vld [vmem:[#allocation2] sm:$0xf] }
 0x197   : > { %7598 = vmatmul.mubr.msk.f32.vlgmr.msra.gmra.mrb[46].mxu0 %vm326_vm2, %v7402_v6  ;;  %7405 = vmatmul.mubr.msk.f32.vlgmr.msra.gmra.mrb[38].mxu1 %vm326_vm2, %v7402_v6 }
 0x198   : > { %v6419_v46 = vpop.permute.xlu0 %6418  ;;  %6507 = vmatprep.mubr.f32.mxu1 %v8474_v62  ;;  %6578 = vmatprep.mubr.f32.mxu0 %v8474_v62 }
 0x199   : > { %v6428_v47 = vsel %vm6424_vm13, %v6419_v46, %v6421_v45  ;;  %v1340_v48 = vpop.f32.mrb[8].mxu1  ;;  %v1599_v49 = vpop.f32.mrb[10].mxu0 }
 0x19a   : > { %v1348_v50 = vadd.f32 %v1340_v48, %v1089_v20  ;;  %7415 = vmatprep.subr.msk.mxu0 %vm333_vm1, %v6428_v47  ;;  %v6415_v51 = vpop.permute.xlu1 %6414  ;;  %v7504_v52 = vpop.f32.mrb[9].mxu1  ;;  %v2645_v48 = vld [vmem:[#allocation2 + $0x8] sm:$0xf] }
 0x19b   : > { %v7509_v53 = vpop.f32.mrb[11].mxu0 }
 0x19c   : > { %v1607_v54 = vadd.f32 %v1599_v49, %v1348_v50  ;;  %v6417_v55 = vpop.permute.xlu0 %6416 }
 0x19d   : > { %v6426_v57 = vsel %vm6424_vm13, %v6415_v51, %v6417_v55  ;;  %v6427_v58 = vsel %vm6424_vm13, %v6417_v55, %v6419_v46 }
 0x19e   : > { %7416 = vmatpush1.msk.msra.mxu0 %vm333_vm1, %v6427_v58  ;;  %7412 = vmatprep.subr.msk.mxu1 %vm333_vm1, %v6426_v57  ;;  %v6423_v59 = vpop.permute.xlu1 %6422 }
 0x19f   : > { %7417 = vmatmul.mubr.msk.f32.vlgmr.msra.gmra.mrb[40].mxu0 %vm326_vm2, %v7411_v56  ;;  %v6429_v36 = vsel %vm6424_vm13, %v6421_v45, %v6423_v59 }
 0x1a0   : > { %v6413_v60 = vpop.permute.xlu0 %6412  ;;  %6837 = vmatprep.mubr.f32.mxu0 %v8474_v62 }
 0x1a1   : > { %v6425_v61 = vsel %vm6424_vm13, %v6413_v60, %v6415_v51 }
 0x1a2   : > { %7413 = vmatpush1.msk.msra.mxu1 %vm333_vm1, %v6425_v61  ;;  %v6680_v63 = vpop.permute.xlu1 %6679 }
 0x1a3   : > { %7414 = vmatmul.mubr.msk.f32.vlgmr.msra.gmra.mrb[38].mxu1 %vm326_vm2, %v7411_v56  ;;  %7600 = vmatprep.subr.mxu1 %v8474_v62 }
 0x1a4   : > { %7601 = vmatpush3.msk.msra.mxu1 %vm333_vm1, %v6429_v36  ;;  %v6678_v7 = vpop.permute.xlu0 %6677  ;;  %7602 = vmatprep.mubr.msk.f32.mxu1 %vm7869_vm5, %v8474_v62 }
 0x1a5   : > { %v6687_v0 = vsel %vm6683_vm14, %v6678_v7, %v6680_v63 }
 0x1a6   : > { %7424 = vmatprep.subr.msk.mxu0 %vm333_vm1, %v6687_v0  ;;  %v6674_v34 = vpop.permute.xlu1 %6673 }
 0x1a7   : > { %7603 = vmatmul.mubr.msk.f32.vlgmr.msra.gmra.mrb[46].mxu1 %vm326_vm2, %v7411_v56 }
 0x1a8   : > { %v6676_v8 = vpop.permute.xlu0 %6675  ;;  %6766 = vmatprep.mubr.f32.mxu1 %v8474_v62 }
 0x1a9   : > { %v6685_v10 = vsel %vm6683_vm14, %v6674_v34, %v6676_v8  ;;  %v6686_v11 = vsel %vm6683_vm14, %v6676_v8, %v6678_v7 }
 0x1aa   : > { %7425 = vmatpush1.msk.msra.mxu0 %vm333_vm1, %v6686_v11  ;;  %7421 = vmatprep.subr.msk.mxu1 %vm333_vm1, %v6685_v10  ;;  %v6682_v12 = vpop.permute.xlu1 %6681 }
 0x1ab   : > { %7426 = vmatmul.mubr.msk.f32.vlgmr.msra.gmra.mrb[40].mxu0 %vm326_vm2, %v7420_v9  ;;  %v6688_v13 = vsel %vm6683_vm14, %v6680_v63, %v6682_v12  ;;  %7605 = vmatprep.subr.mxu0 %v8474_v62 }
 0x1ac   : > { %v6672_v14 = vpop.permute.xlu0 %6671  ;;  %7606 = vmatpush3.msk.msra.mxu0 %vm333_vm1, %v6688_v13  ;;  %7607 = vmatprep.mubr.msk.f32.mxu0 %vm7869_vm5, %v8474_v62  ;;  %v2647_v62 = vld [vmem:[#allocation2 + $0x18] sm:$0xf] }
 0x1ad   : > { %v6684_v17 = vsel %vm6683_vm14, %v6672_v14, %v6674_v34 }
 0x1ae   : > { %7422 = vmatpush1.msk.msra.mxu1 %vm333_vm1, %v6684_v17 }
 0x1af   : > { %7423 = vmatmul.mubr.msk.f32.vlgmr.msra.gmra.mrb[38].mxu1 %vm326_vm2, %v7420_v9  ;;  %7608 = vmatmul.mubr.msk.f32.vlgmr.msra.gmra.mrb[48].mxu0 %vm326_vm2, %v7420_v9 }
 0x1b1   : > { %v1858_v20 = vpop.f32.mrb[10].mxu1  ;;  %v2117_v22 = vpop.f32.mrb[12].mxu0 }
 0x1b2   : > { %v1866_v16 = vadd.f32 %v1858_v20, %v1607_v54  ;;  %v7519_v19 = vpop.f32.mrb[13].mxu0  ;;  %v7514_v23 = vpop.f32.mrb[11].mxu1 }
 0x1b4   : > { %v2125_v25 = vadd.f32 %v2117_v22, %v1866_v16 }
 0x1bb   : > { %v8793_v31 = vpop.permute.xlu1 %6982 }
 0x1bf   : > { %v6961_v50 = vpop.permute.xlu1 %6960 }
 0x1c5   : > { %v2564_v27 = vpop.f32.mrb[6].mxu0 }
 0x1c6   : > { %v7612_v24 = vadd.f32 %v2564_v27, %v8646_v26  ;;  %v2566_v5 = vpop.f32.mrb[7].mxu0 }
 0x1c7   : > { %v7613_v30 = vadd.f32 %v2566_v5, %v8651_v29 }
 0x1c8   : > { %v2651_v3 = vadd.f32 %v7612_v24, %v2646_v15 }
 0x1c9   : > { %v2652_v1 = vadd.f32 %v7613_v30, %v2647_v62  ;;  %v2376_v32 = vpop.f32.mrb[12].mxu1  ;;  %v2635_v35 = vpop.f32.mrb[14].mxu0 }
 0x1ca   : > { %2656 = vst [vmem:[#allocation2 + $0x10] sm:$0xf] %v2651_v3  ;;  %v2384_v6 = vadd.f32 %v2376_v32, %v2125_v25  ;;  %v7524_v2 = vpop.f32.mrb[13].mxu1  ;;  %v7529_v39 = vpop.f32.mrb[15].mxu0 }
 0x1cb   : > { %2657 = vst [vmem:[#allocation2 + $0x18] sm:$0xf] %v2652_v1 }
 0x1cc   : > { %v2643_v41 = vadd.f32 %v2635_v35, %v2384_v6 }
 0x1cd   : > { %v2493_v43 = vpop.f32.mrb[4].mxu1 }
 0x1ce   : > { %v2653_v45 = vadd.f32 %v2648_v40, %v2643_v41  ;;  %v7610_v46 = vadd.f32 %v2493_v43, %v8633_v18  ;;  %v2495_v47 = vpop.f32.mrb[5].mxu1 }
 0x1cf   : > { %v7611_v49 = vadd.f32 %v2495_v47, %v8636_v21 }
 0x1d0   : > { %2658 = vst [vmem:[#allocation2 + $0x20] sm:$0xf] %v2653_v45  ;;  %v2649_v51 = vadd.f32 %v7610_v46, %v2644_v44 }
 0x1d1   : > { %v2650_v52 = vadd.f32 %v7611_v49, %v2645_v48  ;;  %v6954_v53 = vld [vmem:[#allocation2 + $0x10] sm:$0xf] }
 0x1d2   : > { %2654 = vst [vmem:[#allocation2] sm:$0xf] %v2649_v51  ;;  %v6955_v54 = vld [vmem:[#allocation2 + $0x18] sm:$0xf]  ;;  %v6965_v55 = vadd.f32 %v6961_v50, %v6954_v53 }
 0x1d3   : > { %2655 = vst [vmem:[#allocation2 + $0x8] sm:$0xf] %v2650_v52  ;;  %v6966_v56 = vadd.f32 %v6961_v50, %v6955_v54 }
 0x1d4   : > { %6970 = vst [vmem:[#allocation2 + $0x10] sm:$0xf] %v6965_v55 }
 0x1d5   : > { %6971 = vst [vmem:[#allocation2 + $0x18] sm:$0xf] %v6966_v56  ;;  %v2838_v57 = vpop.f32.mrb[16].mxu0 }
 0x1d6   : > { %v2920_v58 = vrot.slane %v2838_v57, 4  ;;  %v2840_v59 = vpop.f32.mrb[17].mxu0 }
 0x1d7   : > { %v6956_v60 = vld [vmem:[#allocation2 + $0x20] sm:$0xf]  ;;  %v2921_v61 = vrot.slane %v2840_v59, 4 }
 0x1d8   : > { %v6967_v63 = vadd.f32 %v6961_v50, %v6956_v60  ;;  %v2930_v36 = vadd.f32 %v2920_v58, %v8646_v26  ;;  %v2767_v7 = vpop.f32.mrb[14].mxu1 }
 0x1d9   : > { %v6952_v0 = vld [vmem:[#allocation2] sm:$0xf]  ;;  %v2931_v34 = vadd.f32 %v2921_v61, %v8651_v29  ;;  %v2918_v8 = vrot.slane %v2767_v7, 4  ;;  %v2769_v9 = vpop.f32.mrb[15].mxu1 }
 0x1da   : > { %v6953_v10 = vld [vmem:[#allocation2 + $0x8] sm:$0xf]  ;;  %v6963_v11 = vadd.f32 %v6961_v50, %v6952_v0  ;;  %6972 = vst [vmem:[#allocation2 + $0x20] sm:$0xf] %v6967_v63  ;;  %v2919_v12 = vrot.slane %v2769_v9, 4 }
 0x1db   : > { %v6964_v13 = vadd.f32 %v6961_v50, %v6953_v10  ;;  %v2928_v14 = vadd.f32 %v2918_v8, %v8633_v18 }
 0x1dc   : > { %6968 = vst [vmem:[#allocation2] sm:$0xf] %v6963_v11  ;;  %v2929_v17 = vadd.f32 %v2919_v12, %v8636_v21 }
 0x1dd   : > { %6969 = vst [vmem:[#allocation2 + $0x8] sm:$0xf] %v6964_v13  ;;  %v3041_v20 = vpop.f32.mrb[18].mxu0 }
 0x1de   : > { %v3192_v22 = vrot.slane %v3041_v20, 4  ;;  %v3043_v26 = vpop.f32.mrb[19].mxu0 }
 0x1df   : > { %v3193_v16 = vrot.slane %v3043_v26, 4 }
 0x1e0   : > { %v3202_v19 = vadd.f32 %v3192_v22, %v2928_v14 }
 0x1e1   : > { %v3203_v23 = vadd.f32 %v3193_v16, %v2929_v17  ;;  %v2909_v29 = vpop.f32.mrb[16].mxu1 }
 0x1e2   : > { %v2922_v25 = vrot.slane %v2909_v29, 4  ;;  %v7534_v27 = vpop.f32.mrb[17].mxu1  ;;  %v7036_v29 = vld [vmem:[%s8888_s4] sm:$0xf] }
 0x1e4   : > { %v2932_v15 = vadd.f32 %v2922_v25, %v8675_v42 }
 0x1e5   : > { %v3183_v24 = vpop.f32.mrb[20].mxu0 }
 0x1e6   : > { %v3196_v5 = vrot.slane %v3183_v24, 4  ;;  %v3112_v62 = vpop.f32.mrb[18].mxu1  ;;  %v7539_v30 = vpop.f32.mrb[21].mxu0 }
 0x1e7   : > { %v3194_v18 = vrot.slane %v3112_v62, 4  ;;  %v3114_v3 = vpop.f32.mrb[19].mxu1 }
 0x1e8   : > { %v3206_v1 = vadd.f32 %v3196_v5, %v2932_v15  ;;  %v3195_v21 = vrot.slane %v3114_v3, 4  ;;  %v7038_v5 = vrot.slane %v7036_v29, 4  ;;  %v4855_v29 = vld [vmem:[#allocation2 + $0x20] sm:$0xf0] }
 0x1e9   : > { %v3204_v32 = vadd.f32 %v3194_v18, %v2930_v36 }
 0x1ea   : > { %v3205_v35 = vadd.f32 %v3195_v21, %v2931_v34 }
 0x1ed   : > { %v3386_v6 = vpop.f32.mrb[22].mxu0 }
 0x1ee   : > { %v3468_v2 = vrot.slane %v3386_v6, 4  ;;  %v3388_v39 = vpop.f32.mrb[23].mxu0 }
 0x1ef   : > { %v3469_v40 = vrot.slane %v3388_v39, 4 }
 0x1f0   : > { %v3478_v41 = vadd.f32 %v3468_v2, %v3204_v32 }
 0x1f1   : > { %v3479_v43 = vadd.f32 %v3469_v40, %v3205_v35  ;;  %v3315_v44 = vpop.f32.mrb[20].mxu1 }
 0x1f2   : > { %v3466_v45 = vrot.slane %v3315_v44, 4  ;;  %v3317_v46 = vpop.f32.mrb[21].mxu1 }
 0x1f3   : > { %v3467_v42 = vrot.slane %v3317_v46, 4 }
 0x1f4   : > { %v3476_v47 = vadd.f32 %v3466_v45, %v3202_v19 }
 0x1f5   : > { %v3477_v48 = vadd.f32 %v3467_v42, %v3203_v23 }
 0x1f6   : > { %v3589_v49 = vpop.f32.mrb[24].mxu0 }
 0x1f7   : > { %v3740_v50 = vrot.slane %v3589_v49, 4  ;;  %v3591_v51 = vpop.f32.mrb[25].mxu0 }
 0x1f8   : > { %v3741_v52 = vrot.slane %v3591_v51, 4 }
 0x1f9   : > { %v3750_v53 = vadd.f32 %v3740_v50, %v3476_v47  ;;  %v3457_v54 = vpop.f32.mrb[22].mxu1 }
 0x1fa   : > { %v3751_v55 = vadd.f32 %v3741_v52, %v3477_v48  ;;  %v3470_v56 = vrot.slane %v3457_v54, 4  ;;  %v7544_v57 = vpop.f32.mrb[23].mxu1 }
 0x1fc   : > { %v3480_v58 = vadd.f32 %v3470_v56, %v3206_v1 }
 0x1fd   : > { %v3731_v59 = vpop.f32.mrb[26].mxu0 }
 0x1fe   : > { %v3744_v60 = vrot.slane %v3731_v59, 4  ;;  %v3660_v61 = vpop.f32.mrb[24].mxu1  ;;  %v7549_v63 = vpop.f32.mrb[27].mxu0 }
 0x1ff   : > { %v3742_v36 = vrot.slane %v3660_v61, 4  ;;  %v3662_v7 = vpop.f32.mrb[25].mxu1 }
 0x200   : > { %v3754_v0 = vadd.f32 %v3744_v60, %v3480_v58  ;;  %v3743_v34 = vrot.slane %v3662_v7, 4  ;;  %v4851_v7 = vld [vmem:[#allocation2] sm:$0xf0] }
 0x201   : > { %v3752_v8 = vadd.f32 %v3742_v36, %v3478_v41 }
 0x202   : > { %v3753_v9 = vadd.f32 %v3743_v34, %v3479_v43 }
 0x205   : > { %v3934_v10 = vpop.f32.mrb[28].mxu0 }
 0x206   : > { %v4016_v11 = vrot.slane %v3934_v10, 4  ;;  %v3936_v12 = vpop.f32.mrb[29].mxu0 }
 0x207   : > { %v4017_v13 = vrot.slane %v3936_v12, 4 }
 0x208   : > { %v4026_v14 = vadd.f32 %v4016_v11, %v3752_v8  ;;  %v4852_v8 = vld [vmem:[#allocation2 + $0x8] sm:$0xf0] }
 0x209   : > { %v4027_v17 = vadd.f32 %v4017_v13, %v3753_v9  ;;  %v3863_v20 = vpop.f32.mrb[26].mxu1 }
 0x20a   : > { %v4014_v22 = vrot.slane %v3863_v20, 4  ;;  %v3865_v26 = vpop.f32.mrb[27].mxu1 }
 0x20b   : > { %v4015_v16 = vrot.slane %v3865_v26, 4 }
 0x20c   : > { %v4024_v19 = vadd.f32 %v4014_v22, %v3750_v53 }
 0x20d   : > { %v4025_v23 = vadd.f32 %v4015_v16, %v3751_v55 }
 0x20e   : > { %v4137_v25 = vpop.f32.mrb[30].mxu0 }
 0x20f   : > { %v4288_v27 = vrot.slane %v4137_v25, 4  ;;  %v4139_v15 = vpop.f32.mrb[31].mxu0  ;;  %v4853_v25 = vld [vmem:[#allocation2 + $0x10] sm:$0xf0] }
 0x210   : > { %v4289_v24 = vrot.slane %v4139_v15, 4 }
 0x211   : > { %v4298_v62 = vadd.f32 %v4288_v27, %v4024_v19  ;;  %v4005_v30 = vpop.f32.mrb[28].mxu1  ;;  %v7034_v18 = vpop.xlane.xlu0 %7033 }
 0x212   : > { %v4299_v3 = vadd.f32 %v4289_v24, %v4025_v23  ;;  %v4018_v1 = vrot.slane %v4005_v30, 4  ;;  %v7035_v21 = vmul.f32 0.00390625, %v7034_v18  ;;  %v7554_v32 = vpop.f32.mrb[29].mxu1 }
 0x214   : > { %v4028_v35 = vadd.f32 %v4018_v1, %v3754_v0  ;;  %v7040_v6 = vadd.f32 %v7038_v5, %v7035_v21  ;;  %v4854_v5 = vld [vmem:[#allocation2 + $0x18] sm:$0xf0] }
 0x215   : > { %v4279_v2 = vpop.f32.mrb[32].mxu0  ;;  %v4208_v39 = vpop.f32.mrb[30].mxu1 }
 0x216   : > { %v7041_v40 = vmax.f32 %v7040_v6, 0.0  ;;  %v4292_v41 = vrot.slane %v4279_v2, 4  ;;  %v4290_v43 = vrot.slane %v4208_v39, 4  ;;  %v4210_v44 = vpop.f32.mrb[31].mxu1  ;;  %v7559_v45 = vpop.f32.mrb[33].mxu0 }
 0x217   : > { %v4291_v46 = vrot.slane %v4210_v44, 4 }
 0x218   : > { %v4302_v42 = vadd.f32 %v4292_v41, %v4028_v35  ;;  %v4300_v47 = vadd.f32 %v4290_v43, %v4026_v14  ;;  %7044 = vperm.xlu1 %7760, %v7041_v40  }
 0x219   : > { %v4301_v48 = vadd.f32 %v4291_v46, %v4027_v17 }
 0x21d   : > { %v4482_v49 = vpop.f32.mrb[34].mxu0 }
 0x21e   : > { %v4564_v50 = vrot.slane %v4482_v49, 4  ;;  %v4484_v51 = vpop.f32.mrb[35].mxu0 }
 0x21f   : > { %v4565_v52 = vrot.slane %v4484_v51, 4 }
 0x220   : > { %v4574_v53 = vadd.f32 %v4564_v50, %v4300_v47 }
 0x221   : > { %v4575_v54 = vadd.f32 %v4565_v52, %v4301_v48  ;;  %v4411_v55 = vpop.f32.mrb[32].mxu1 }
 0x222   : > { %v4562_v56 = vrot.slane %v4411_v55, 4  ;;  %v4413_v57 = vpop.f32.mrb[33].mxu1 }
 0x223   : > { %v4563_v58 = vrot.slane %v4413_v57, 4 }
 0x224   : > { %v4572_v59 = vadd.f32 %v4562_v56, %v4298_v62  ;;  %v6984_v62 = vrot.slane %v8793_v31, 4 }
 0x225   : > { %v4573_v60 = vadd.f32 %v4563_v58, %v4299_v3 }
 0x226   : > { %v4685_v61 = vpop.f32.mrb[36].mxu0 }
 0x227   : > { %v4836_v63 = vrot.slane %v4685_v61, 4  ;;  %v4687_v36 = vpop.f32.mrb[37].mxu0 }
 0x228   : > { %v4837_v0 = vrot.slane %v4687_v36, 4 }
 0x229   : > { %v4846_v34 = vadd.f32 %v4836_v63, %v4572_v59  ;;  %v4553_v9 = vpop.f32.mrb[34].mxu1 }
 0x22a   : > { %v4847_v10 = vadd.f32 %v4837_v0, %v4573_v60  ;;  %v4566_v11 = vrot.slane %v4553_v9, 4  ;;  %v7564_v12 = vpop.f32.mrb[35].mxu1 }
 0x22b   : > { %v4856_v13 = vadd.f32 %v4851_v7, %v4846_v34 }
 0x22c   : > { %v4857_v14 = vadd.f32 %v4852_v8, %v4847_v10  ;;  %v4576_v17 = vadd.f32 %v4566_v11, %v4302_v42  ;;  %v6921_v10 = vld [vmem:[#allocation2 + $0x38] sm:$0xf] }
 0x22d   : > { %4861 = vst [vmem:[#allocation2] sm:$0xf0] %v4856_v13  ;;  %v4827_v20 = vpop.f32.mrb[38].mxu0  ;;  %v4756_v22 = vpop.f32.mrb[36].mxu1  ;;  %v6922_v13 = vld [vmem:[#allocation2 + $0x40] sm:$0xf] }
 0x22e   : > { %4862 = vst [vmem:[#allocation2 + $0x8] sm:$0xf0] %v4857_v14  ;;  %v4840_v26 = vrot.slane %v4827_v20, 4  ;;  %v4838_v16 = vrot.slane %v4756_v22, 4  ;;  %v4758_v19 = vpop.f32.mrb[37].mxu1  ;;  %v7569_v23 = vpop.f32.mrb[39].mxu0 }
 0x22f   : > { %v4839_v27 = vrot.slane %v4758_v19, 4  ;;  %v6923_v19 = vld [vmem:[#allocation2 + $0x48] sm:$0xf] }
 0x230   : > { %v4850_v15 = vadd.f32 %v4840_v26, %v4576_v17  ;;  %v4848_v24 = vadd.f32 %v4838_v16, %v4574_v53  ;;  %v6919_v26 = vld [vmem:[#allocation2 + $0x28] sm:$0xf] }
 0x231   : > { %v4849_v30 = vadd.f32 %v4839_v27, %v4575_v54  ;;  %v6920_v27 = vld [vmem:[#allocation2 + $0x30] sm:$0xf] }
 0x232   : > { %v4860_v18 = vadd.f32 %v4855_v29, %v4850_v15  ;;  %v4858_v3 = vadd.f32 %v4853_v25, %v4848_v24 }
 0x233   : > { %v4859_v1 = vadd.f32 %v4854_v5, %v4849_v30 }
 0x234   : > { %v6973_v21 = vld [vmem:[#allocation2] sm:$0xf0]  ;;  %4865 = vst [vmem:[#allocation2 + $0x20] sm:$0xf0] %v4860_v18  ;;  %4863 = vst [vmem:[#allocation2 + $0x10] sm:$0xf0] %v4858_v3 }
 0x235   : > { %v6986_v32 = vadd.f32 %v6984_v62, %v6973_v21  ;;  %v6974_v35 = vld [vmem:[#allocation2 + $0x8] sm:$0xf0]  ;;  %4864 = vst [vmem:[#allocation2 + $0x18] sm:$0xf0] %v4859_v1 }
 0x236   : > { %v6987_v6 = vadd.f32 %v6984_v62, %v6974_v35  ;;  %v5097_v2 = vpop.f32.mrb[40].mxu1 }
 0x237   : > { %6991 = vst [vmem:[#allocation2] sm:$0xf0] %v6986_v32  ;;  %v5105_v39 = vadd.f32 %v8668_v38, %v5097_v2  ;;  %v7574_v40 = vpop.f32.mrb[41].mxu1 }
 0x238   : > { %6992 = vst [vmem:[#allocation2 + $0x8] sm:$0xf0] %v6987_v6 }
 0x23b   : > { %v6977_v31 = vld [vmem:[#allocation2 + $0x20] sm:$0xf0]  ;;  %v6975_v41 = vld [vmem:[#allocation2 + $0x10] sm:$0xf0] }
 0x23c   : > { %v6990_v43 = vadd.f32 %v6984_v62, %v6977_v31  ;;  %v6988_v44 = vadd.f32 %v6984_v62, %v6975_v41  ;;  %v6976_v45 = vld [vmem:[#allocation2 + $0x18] sm:$0xf0] }
 0x23d   : > { %v6989_v46 = vadd.f32 %v6984_v62, %v6976_v45  ;;  %v5356_v42 = vpop.f32.mrb[42].mxu0 }
 0x23e   : > { %v7052_v47 = vld [vmem:[#allocation2] sm:$0xff]  ;;  %6995 = vst [vmem:[#allocation2 + $0x20] sm:$0xf0] %v6990_v43  ;;  %6993 = vst [vmem:[#allocation2 + $0x10] sm:$0xf0] %v6988_v44  ;;  %v5364_v48 = vadd.f32 %v5356_v42, %v5105_v39  ;;  %v7579_v49 = vpop.f32.mrb[43].mxu0 }
 0x23f   : > { %7062 = vst [vmem:[%s8810_s24] sm:$0xff] %v7052_v47  ;;  %v7053_v38 = vld [vmem:[#allocation2 + $0x8] sm:$0xff]  ;;  %6994 = vst [vmem:[#allocation2 + $0x18] sm:$0xf0] %v6989_v46 }
 0x240   : > { %7063 = vst [vmem:[%s8810_s24 + $0x8] sm:$0xff] %v7053_v38 }
 0x245   : > { %v7056_v50 = vld [vmem:[#allocation2 + $0x20] sm:$0xff]  ;;  %v7054_v51 = vld [vmem:[#allocation2 + $0x10] sm:$0xff] }
 0x246   : > { %7066 = vst [vmem:[%s8810_s24 + $0x20] sm:$0xff] %v7056_v50  ;;  %7064 = vst [vmem:[%s8810_s24 + $0x10] sm:$0xff] %v7054_v51  ;;  %v7055_v52 = vld [vmem:[#allocation2 + $0x18] sm:$0xff] }
 0x247   : > { %7065 = vst [vmem:[%s8810_s24 + $0x18] sm:$0xff] %v7055_v52 }
 0x24a   : > { %v5615_v53 = vpop.f32.mrb[42].mxu1 }
 0x24b   : > { %v5623_v54 = vadd.f32 %v5615_v53, %v5364_v48  ;;  %v7584_v55 = vpop.f32.mrb[43].mxu1 }
 0x252   : > { %v5874_v56 = vpop.f32.mrb[44].mxu0 }
 0x253   : > { %v5882_v57 = vadd.f32 %v5874_v56, %v5623_v54  ;;  %v7589_v58 = vpop.f32.mrb[45].mxu0 }
 0x262   : > { %v6133_v59 = vpop.f32.mrb[44].mxu1 }
 0x263   : > { %v6141_v60 = vadd.f32 %v6133_v59, %v5882_v57  ;;  %v7594_v61 = vpop.f32.mrb[45].mxu1 }
 0x26a   : > { %v6392_v63 = vpop.f32.mrb[46].mxu0 }
 0x26b   : > { %v6400_v36 = vadd.f32 %v6392_v63, %v6141_v60  ;;  %v7599_v7 = vpop.f32.mrb[47].mxu0 }
 0x27a   : > { %v6651_v0 = vpop.f32.mrb[46].mxu1 }
 0x27b   : > { %v6659_v34 = vadd.f32 %v6651_v0, %v6400_v36  ;;  %v7604_v8 = vpop.f32.mrb[47].mxu1 }
 0x27e   : > { %v6839_v9 = vpop.f32.mrb[40].mxu0 }
 0x27f   : > { %v7616_v11 = vadd.f32 %v6839_v9, %v8660_v33  ;;  %v6841_v12 = vpop.f32.mrb[41].mxu0 }
 0x280   : > { %v7617_v14 = vadd.f32 %v6841_v12, %v8666_v37  ;;  %v7006_v37 = vpop.permute.xlu1 %7005 }
 0x281   : > { %v6926_v17 = vadd.f32 %v7616_v11, %v6921_v10 }
 0x282   : > { %v6927_v20 = vadd.f32 %v7617_v14, %v6922_v13  ;;  %v6768_v22 = vpop.f32.mrb[38].mxu1  ;;  %v6910_v16 = vpop.f32.mrb[48].mxu0 }
 0x283   : > { %6931 = vst [vmem:[#allocation2 + $0x38] sm:$0xf] %v6926_v17  ;;  %v7614_v23 = vadd.f32 %v6768_v22, %v8649_v28  ;;  %v6918_v29 = vadd.f32 %v6910_v16, %v6659_v34  ;;  %v6770_v25 = vpop.f32.mrb[39].mxu1  ;;  %v7609_v15 = vpop.f32.mrb[49].mxu0 }
 0x284   : > { %6932 = vst [vmem:[#allocation2 + $0x40] sm:$0xf] %v6927_v20  ;;  %v7615_v33 = vadd.f32 %v6770_v25, %v8655_v4 }
 0x285   : > { %v6924_v24 = vadd.f32 %v7614_v23, %v6919_v26  ;;  %v6928_v5 = vadd.f32 %v6923_v19, %v6918_v29 }
 0x286   : > { %v6925_v62 = vadd.f32 %v7615_v33, %v6920_v27 }
 0x287   : > { %6929 = vst [vmem:[#allocation2 + $0x28] sm:$0xf] %v6924_v24  ;;  %6933 = vst [vmem:[#allocation2 + $0x48] sm:$0xf] %v6928_v5 }
 0x288   : > { %6930 = vst [vmem:[#allocation2 + $0x30] sm:$0xf] %v6925_v62 }
 0x28a   : > { %v6998_v30 = vld [vmem:[#allocation2 + $0x38] sm:$0xf] }
 0x28b   : > { %v6999_v18 = vld [vmem:[#allocation2 + $0x40] sm:$0xf]  ;;  %v7010_v3 = vadd.f32 %v7006_v37, %v6998_v30 }
 0x28c   : > { %v7011_v1 = vadd.f32 %v7006_v37, %v6999_v18 }
 0x28d   : > { %7015 = vst [vmem:[#allocation2 + $0x38] sm:$0xf] %v7010_v3 }
 0x28e   : > { %v6996_v28 = vld [vmem:[#allocation2 + $0x28] sm:$0xf]  ;;  %7016 = vst [vmem:[#allocation2 + $0x40] sm:$0xf] %v7011_v1 }
 0x28f   : > { %v7000_v21 = vld [vmem:[#allocation2 + $0x48] sm:$0xf]  ;;  %v6997_v32 = vld [vmem:[#allocation2 + $0x30] sm:$0xf]  ;;  %v7008_v35 = vadd.f32 %v7006_v37, %v6996_v28 }
 0x290   : > { %v7012_v4 = vadd.f32 %v7006_v37, %v7000_v21  ;;  %v7009_v6 = vadd.f32 %v7006_v37, %v6997_v32 }
 0x291   : > { %7013 = vst [vmem:[#allocation2 + $0x28] sm:$0xf] %v7008_v35 }
 0x292   : > { %7017 = vst [vmem:[#allocation2 + $0x48] sm:$0xf] %v7012_v4  ;;  %7014 = vst [vmem:[#allocation2 + $0x30] sm:$0xf] %v7009_v6 }
 0x297   : > { %v7045_v2 = vpop.permute.xlu1 %7044 }
 0x298   : > { %7047 = vst [vmem:[#allocation2 + $0x28] sm:$0xf0] %v7045_v2  ;;  %7048 = vst [vmem:[#allocation2 + $0x30] sm:$0xf0] %v7045_v2 }
 0x299   : > { %7049 = vst [vmem:[#allocation2 + $0x38] sm:$0xf0] %v7045_v2  ;;  %7050 = vst [vmem:[#allocation2 + $0x40] sm:$0xf0] %v7045_v2 }
 0x29a   : > { %7051 = vst [vmem:[#allocation2 + $0x48] sm:$0xf0] %v7045_v2 }
 0x29f   : > { %v7057_v39 = vld [vmem:[#allocation2 + $0x28] sm:$0xff]  ;;  %v7058_v40 = vld [vmem:[#allocation2 + $0x30] sm:$0xff] }
 0x2a0   : > { %v7059_v31 = vld [vmem:[#allocation2 + $0x38] sm:$0xff]  ;;  %v7060_v41 = vld [vmem:[#allocation2 + $0x40] sm:$0xff]  ;;  %7067 = vst [vmem:[%s8810_s24 + $0x28] sm:$0xff] %v7057_v39  ;;  %7068 = vst [vmem:[%s8810_s24 + $0x30] sm:$0xff] %v7058_v40 }
 0x2a1   : > { %v7061_v43 = vld [vmem:[#allocation2 + $0x48] sm:$0xff]  ;;  %7069 = vst [vmem:[%s8810_s24 + $0x38] sm:$0xff] %v7059_v31  ;;  %7070 = vst [vmem:[%s8810_s24 + $0x40] sm:$0xff] %v7060_v41 }
 0x2a2   : > { %7071 = vst [vmem:[%s8810_s24 + $0x48] sm:$0xff] %v7061_v43 }
 0x2a3   : > { %7789 = shalt.err (!%p7786_p5)
}
 0x2a4   : > { %s7790_s13 = scalar_lea.hbm %s8826_s8, 1280  ;;  %s7794_s17 = scalar_lea.hbm %s8889_s5, 2560 }
 0x2a5   : > { %p7791_p6 = scmp.ne.s32.totalorder %s8826_s8, %s7790_s13  ;;  %p7795_p10 = scmp.lt.u32.totalorder %s8826_s8, %s8889_s5 }
 0x2a6   : > { %p7796_p11 = scmp.lt.u32.totalorder %s7794_s17, %s7790_s13  ;;  %p7798_p13 = scmp.lt.u32.totalorder %s7790_s13, %s8826_s8 }
 0x2a7   : > { %p7792_p7 = pnand %p7791_p6, %p7955_p4 }
 0x2a8   : > { %p7797_p12 = por %p7796_p11, %p7795_p10 }
 0x2a9   : > { %p7793_p9 = pneg %p7792_p7 }
 0x2aa   : > { %p7799_p0 = por %p7798_p13, %p7797_p12 }
 0x2ac   : > { %p7800_p1 = pnand %p7799_p0, %p7793_p9 }
 0x2ae   : > { %7803 = shalt.err (!%p7800_p1)
}
 0x2af   : > { %s7884_s29 = smov 640  }
 0x2b0   : > { %7677 = dma.vmem_to_hbm [thread:$0]  (%p7955_p4), %s8828_s27, 1280, %s8826_s8, %s8837_s21, %s7884_s29, %s7884_s29, %s7860_s15  }
 0x2b1 PF: > { %p7683_p2 = scmp.ge.s32.totalorder %s7854_s23, 2  ;;  %s7101_s7 = sand.u32 1, %s7834_s18  }
 0x2b2   : > { %s7102_s9 = scalar_lea.sflag [#allocation4], %s7101_s7 }
 0x2b3   : > { %p7680_p3 = pnand %p7683_p2, %p7962_p8 }
 0x2b5   : > { %7829 = dma.done.wait (!%p7680_p3), %s7102_s9, 1280  }
 0x2b6   : > { %7831 = vsyncadd (!%p7680_p3), %s7102_s9, 4294966016  ;;  %s18_s23 = sadd.s32 1, %s7854_s23   ;;  %s8892_s18 = smov %s7838_s19 }
 0x2b7   : > { %p15_p5 = scmp.ge.s32.totalorder %s18_s23, 4   ;;  %s8893_s19 = smov %s7842_s20 }
 0x2b8   : > { %s8894_s20 = smov %s7968_s6  ;;  %s8895_s21 = smov %s7850_s22 }
 0x2b9   : > { %s8896_s22 = smov %s8898_s26  ;;  %17 = sbr.rel (!%p15_p5) target bundleno = 4 (0x4), region = 114 }
 0x2c0   :  { %7107 = vsyncpa [#allocation4], 1 }
 0x2c1   :  { %7109 = vsyncpa [#allocation4 + $0x1], 1 }

</bundles_post_ra>
